<compile_context>
chip_gen: v7x
topology: tpu7x:2x2x1
jax: 0.10.0
libtpu: 0.0.40
codegen_flags: <defaults>
</compile_context>

<pallas_src>
import jax
import jax.numpy as jnp
from jax.experimental import pallas as pl
from jax.experimental.pallas import tpu as pltpu

C_IN_SE = 56      # conv2d181 in channels
C_MID = 1344      # conv2d181 out channels == x583 channels
C_OUT = 384       # conv2d182 out channels
H = W = 7
HW = H * W
EPS = 1e-3
TILE_N = 128      # output-channel tile (384 = 3 * 128)


def _se_conv_bn_kernel(xse_ref, w1_ref, b1_ref, x_ref, w2_ref,
                       gamma_ref, beta_ref, o_ref):
    # xse_ref  : (1, 56)      f32   squeeze input (row vector)
    # w1_ref   : (1344, 56)   bf16  conv2d181 weight, raw OI layout
    # b1_ref   : (1344, 1)    f32   conv2d181 bias (column)
    # x_ref    : (1344, 49)   f32   x583 channel-major (C, H*W)
    # w2_ref   : (128, 1344)  bf16  conv2d182 weight tile, raw OI layout
    # gamma_ref/beta_ref: (128, 1) f32
    # o_ref    : (128, 49)    f32

    # SE excite (recomputed per output tile; ~75 KFLOP -- negligible).
    # pre[c] = sum_k w1[c, k] * xse[k] + b1[c]   (VPU mul + XLU lane-reduce)
    pre = jnp.sum(w1_ref[...].astype(jnp.float32) * xse_ref[...],
                  axis=1, keepdims=True) + b1_ref[...]            # (1344, 1)
    gate = jax.nn.sigmoid(pre)                                     # (1344, 1)

    # Channel-wise scale, broadcast over the 49 spatial lanes; round once to
    # bf16 so the projection matmul runs as a native bf16 MXU op.
    xs = (x_ref[...] * gate).astype(jnp.bfloat16)                  # (1344, 49)

    # Projection 1x1 conv, channel-major: Z_tile = W2_tile @ xs -> (128, 49)
    z = jnp.dot(w2_ref[...], xs, preferred_element_type=jnp.float32)

    # Training-mode BatchNorm: per-channel batch stats over N*H*W = 49
    # positions (rows = channels, lanes = positions), biased variance,
    # eps = 1e-3, affine.  All statistics in f32.
    mean = jnp.mean(z, axis=1, keepdims=True)                      # (128, 1)
    diff = z - mean
    var = jnp.mean(diff * diff, axis=1, keepdims=True)             # (128, 1)
    inv_std = jax.lax.rsqrt(var + EPS)
    o_ref[...] = gamma_ref[...] * diff * inv_std + beta_ref[...]


def prepare_params(w1, b1, w2, gamma, beta):
    """One-time parameter repack, done OUTSIDE the jitted hot path.

    Pure reshapes of the raw OIHW 1x1-conv weights (no transposes) plus a
    single bf16 cast of the two weight matrices.
    """
    return dict(
        w1=jnp.asarray(w1).reshape(C_MID, C_IN_SE).astype(jnp.bfloat16),
        b1=jnp.asarray(b1).reshape(C_MID, 1).astype(jnp.float32),
        w2=jnp.asarray(w2).reshape(C_OUT, C_MID).astype(jnp.bfloat16),
        gamma=jnp.asarray(gamma).reshape(C_OUT, 1).astype(jnp.float32),
        beta=jnp.asarray(beta).reshape(C_OUT, 1).astype(jnp.float32),
    )


@jax.jit
def se_conv_bn(x586, x583, params):
    """x586: [1,56,1,1], x583: [1,1344,7,7] (NCHW f32). Returns [1,384,7,7] f32."""
    # Channel-major views: pure reshapes of contiguous NCHW data (no copies).
    xse = x586.reshape(1, C_IN_SE)             # (1, 56)
    x_cm = x583.reshape(C_MID, HW)             # (1344, 49)

    full = lambda j: (0, 0)                    # grid-invariant blocks (DMA'd once)
    tile = lambda j: (j, 0)                    # output-channel tiles

    y = pl.pallas_call(
        _se_conv_bn_kernel,
        out_shape=jax.ShapeDtypeStruct((C_OUT, HW), jnp.float32),
        grid=(C_OUT // TILE_N,),
        in_specs=[
            pl.BlockSpec((1, C_IN_SE), full),          # xse
            pl.BlockSpec((C_MID, C_IN_SE), full),      # w1 (bf16)
            pl.BlockSpec((C_MID, 1), full),            # b1
            pl.BlockSpec((C_MID, HW), full),           # x583 channel-major
            pl.BlockSpec((TILE_N, C_MID), tile),       # w2 row tile (bf16)
            pl.BlockSpec((TILE_N, 1), tile),           # gamma tile
            pl.BlockSpec((TILE_N, 1), tile),           # beta tile
        ],
        out_specs=pl.BlockSpec((TILE_N, HW), tile),
        compiler_params=pltpu.CompilerParams(
            dimension_semantics=("parallel",)),
    )(xse, params["w1"], params["b1"], x_cm,
      params["w2"], params["gamma"], params["beta"])

    # (384, 49) is already channel-major: reshape straight back to NCHW.
    return y.reshape(1, C_OUT, H, W)


def _reference(x586, x583, w1, b1, w2, gamma, beta):
    """Pure-JAX f32 NCHW reference mirroring the PyTorch module (training BN)."""
    dn = ('NCHW', 'OIHW', 'NCHW')
    x587 = jax.lax.conv_general_dilated(x586, w1, (1, 1), 'VALID',
                                        dimension_numbers=dn)
    x587 = x587 + b1.reshape(1, -1, 1, 1)
    x588 = jax.nn.sigmoid(x587)
    x589 = x588 * x583
    x590 = jax.lax.conv_general_dilated(x589, w2, (1, 1), 'VALID',
                                        dimension_numbers=dn)
    mean = jnp.mean(x590, axis=(0, 2, 3), keepdims=True)
    var = jnp.mean((x590 - mean) ** 2, axis=(0, 2, 3), keepdims=True)
    return (gamma.reshape(1, -1, 1, 1) * (x590 - mean) /
            jnp.sqrt(var + EPS) + beta.reshape(1, -1, 1, 1))


if __name__ == "__main__":
    key = jax.random.PRNGKey(0)
    k_x583, k_x586, k_w1, k_b1, k_w2, k_g, k_b = jax.random.split(key, 7)

    # Inputs (same shapes as the PyTorch script).
    x583 = jax.random.normal(k_x583, (1, C_MID, H, W), jnp.float32)
    x586 = jax.random.normal(k_x586, (1, C_IN_SE, 1, 1), jnp.float32)

    # Deterministic synthetic parameters (shapes from the module __init__).
    w1 = 0.05 * jax.random.normal(k_w1, (C_MID, C_IN_SE, 1, 1), jnp.float32)
    b1 = 0.05 * jax.random.normal(k_b1, (C_MID,), jnp.float32)
    w2 = 0.02 * jax.random.normal(k_w2, (C_OUT, C_MID, 1, 1), jnp.float32)
    gamma = 1.0 + 0.1 * jax.random.normal(k_g, (C_OUT,), jnp.float32)
    beta = 0.1 * jax.random.normal(k_b, (C_OUT,), jnp.float32)

    # One-time weight repack + bf16 cast (outside the jitted hot path).
    params = prepare_params(w1, b1, w2, gamma, beta)

    out = se_conv_bn(x586, x583, params)
    out = jax.block_until_ready(out)
    assert out.shape == (1, C_OUT, H, W), out.shape

    ref = jax.block_until_ready(_reference(x586, x583, w1, b1, w2, gamma, beta))
    # Tolerance loosened vs. the pure-f32 version because weights / scaled
    # activations go through the MXU in bf16 (f32 accumulation, f32 BN stats).
    assert jnp.allclose(out, ref, rtol=5e-2, atol=5e-2), \
        float(jnp.max(jnp.abs(out - ref)))

    print("KERNEL_OK")
</pallas_src>

<mosaic_0001>
module attributes {stable_mosaic.version = 11 : i64} {
  func.func @_se_conv_bn_kernel(%arg0: i32, %arg1: memref<1x56xf32, #tpu.memory_space<vmem>>, %arg2: memref<1344x56xbf16, #tpu.memory_space<vmem>>, %arg3: memref<1344x1xf32, #tpu.memory_space<vmem>>, %arg4: memref<1344x49xf32, #tpu.memory_space<vmem>>, %arg5: memref<128x1344xbf16, #tpu.memory_space<vmem>>, %arg6: memref<128x1xf32, #tpu.memory_space<vmem>>, %arg7: memref<128x1xf32, #tpu.memory_space<vmem>>, %arg8: memref<128x49xf32, #tpu.memory_space<vmem>>) attributes {dimension_semantics = [#tpu.dimension_semantics<parallel>], iteration_bounds = array<i64: 3>, scalar_prefetch = 0 : i64, scratch_operands = 0 : i64, tpu.core_type = #tpu.core_type<tc>, window_params = [{pipeline_mode = #tpu.pipeline_mode<synchronous>, transform_indices = @transform_0, window_bounds = array<i64: 1, 56>}, {pipeline_mode = #tpu.pipeline_mode<synchronous>, transform_indices = @transform_1, window_bounds = array<i64: 1344, 56>}, {pipeline_mode = #tpu.pipeline_mode<synchronous>, transform_indices = @transform_2, window_bounds = array<i64: 1344, 1>}, {pipeline_mode = #tpu.pipeline_mode<synchronous>, transform_indices = @transform_3, window_bounds = array<i64: 1344, 49>}, {transform_indices = @transform_4, window_bounds = array<i64: 128, 1344>}, {transform_indices = @transform_5, window_bounds = array<i64: 128, 1>}, {transform_indices = @transform_6, window_bounds = array<i64: 128, 1>}, {transform_indices = @transform_7, window_bounds = array<i64: 128, 49>}]} {
    %c0 = arith.constant 0 : index
    %c0_0 = arith.constant 0 : index
    %0 = vector.load %arg2[%c0, %c0_0] : memref<1344x56xbf16, #tpu.memory_space<vmem>>, vector<1344x56xbf16>
    %1 = arith.extf %0 : vector<1344x56xbf16> to vector<1344x56xf32>
    %c0_1 = arith.constant 0 : index
    %c0_2 = arith.constant 0 : index
    %2 = vector.load %arg1[%c0_1, %c0_2] : memref<1x56xf32, #tpu.memory_space<vmem>>, vector<1x56xf32>
    %3 = vector.broadcast %2 : vector<1x56xf32> to vector<1344x56xf32>
    %4 = arith.mulf %1, %3 : vector<1344x56xf32>
    %cst = arith.constant dense<0.000000e+00> : vector<1344xf32>
    %5 = vector.multi_reduction <add>, %4, %cst [1] : vector<1344x56xf32> to vector<1344xf32>
    %6 = vector.shape_cast %5 : vector<1344xf32> to vector<1344x1xf32>
    %c0_3 = arith.constant 0 : index
    %c0_4 = arith.constant 0 : index
    %7 = vector.load %arg3[%c0_3, %c0_4] : memref<1344x1xf32, #tpu.memory_space<vmem>>, vector<1344x1xf32>
    %8 = arith.addf %6, %7 : vector<1344x1xf32>
    %9 = arith.negf %8 : vector<1344x1xf32>
    %10 = math.exp %9 : vector<1344x1xf32>
    %cst_5 = arith.constant 1.000000e+00 : f32
    %11 = vector.broadcast %cst_5 : f32 to vector<1344x1xf32>
    %12 = arith.addf %11, %10 : vector<1344x1xf32>
    %13 = arith.divf %11, %12 : vector<1344x1xf32>
    %c0_6 = arith.constant 0 : index
    %c0_7 = arith.constant 0 : index
    %14 = vector.load %arg4[%c0_6, %c0_7] : memref<1344x49xf32, #tpu.memory_space<vmem>>, vector<1344x49xf32>
    %15 = vector.broadcast %13 : vector<1344x1xf32> to vector<1344x49xf32>
    %16 = arith.mulf %14, %15 : vector<1344x49xf32>
    %17 = arith.truncf %16 : vector<1344x49xf32> to vector<1344x49xbf16>
    %c0_8 = arith.constant 0 : index
    %c0_9 = arith.constant 0 : index
    %18 = vector.load %arg5[%c0_8, %c0_9] : memref<128x1344xbf16, #tpu.memory_space<vmem>>, vector<128x1344xbf16>
    %cst_10 = arith.constant dense<0.000000e+00> : vector<128x49xf32>
    %19 = tpu.matmul %18, %17, %cst_10 {dimension_numbers = #tpu.dot_dimension_numbers<[1], [0], [0], [1], [0, 0, 1, 1], [], []>} : vector<128x1344xbf16>, vector<1344x49xbf16>, vector<128x49xf32> -> vector<128x49xf32>
    %cst_11 = arith.constant dense<0.000000e+00> : vector<128xf32>
    %20 = vector.multi_reduction <add>, %19, %cst_11 [1] : vector<128x49xf32> to vector<128xf32>
    %21 = vector.shape_cast %20 : vector<128xf32> to vector<128x1xf32>
    %cst_12 = arith.constant 4.900000e+01 : f32
    %22 = vector.broadcast %cst_12 : f32 to vector<128x1xf32>
    %23 = arith.divf %21, %22 : vector<128x1xf32>
    %24 = vector.broadcast %23 : vector<128x1xf32> to vector<128x49xf32>
    %25 = arith.subf %19, %24 : vector<128x49xf32>
    %26 = arith.mulf %25, %25 : vector<128x49xf32>
    %cst_13 = arith.constant dense<0.000000e+00> : vector<128xf32>
    %27 = vector.multi_reduction <add>, %26, %cst_13 [1] : vector<128x49xf32> to vector<128xf32>
    %28 = vector.shape_cast %27 : vector<128xf32> to vector<128x1xf32>
    %cst_14 = arith.constant 4.900000e+01 : f32
    %29 = vector.broadcast %cst_14 : f32 to vector<128x1xf32>
    %30 = arith.divf %28, %29 : vector<128x1xf32>
    %cst_15 = arith.constant 1.000000e-03 : f32
    %31 = vector.broadcast %cst_15 : f32 to vector<128x1xf32>
    %32 = arith.addf %30, %31 : vector<128x1xf32>
    %33 = math.rsqrt %32 : vector<128x1xf32>
    %c0_16 = arith.constant 0 : index
    %c0_17 = arith.constant 0 : index
    %34 = vector.load %arg6[%c0_16, %c0_17] : memref<128x1xf32, #tpu.memory_space<vmem>>, vector<128x1xf32>
    %35 = vector.broadcast %34 : vector<128x1xf32> to vector<128x49xf32>
    %36 = arith.mulf %35, %25 : vector<128x49xf32>
    %37 = vector.broadcast %33 : vector<128x1xf32> to vector<128x49xf32>
    %38 = arith.mulf %36, %37 : vector<128x49xf32>
    %c0_18 = arith.constant 0 : index
    %c0_19 = arith.constant 0 : index
    %39 = vector.load %arg7[%c0_18, %c0_19] : memref<128x1xf32, #tpu.memory_space<vmem>>, vector<128x1xf32>
    %40 = vector.broadcast %39 : vector<128x1xf32> to vector<128x49xf32>
    %41 = arith.addf %38, %40 : vector<128x49xf32>
    %c0_20 = arith.constant 0 : index
    %c0_21 = arith.constant 0 : index
    %42 = vector.load %arg8[%c0_20, %c0_21] : memref<128x49xf32, #tpu.memory_space<vmem>>, vector<128x49xf32>
    tpu.vector_store %arg8[%c0_20, %c0_21], %41 {strides = array<i32>} : memref<128x49xf32, #tpu.memory_space<vmem>>, vector<128x49xf32>,
    return
  }
  func.func @transform_0(%arg0: i32) -> (i32, i32) {
    %c0_i32 = arith.constant 0 : i32
    %c0_i32_0 = arith.constant 0 : i32
    %c0_i32_1 = arith.constant 0 : i32
    return %c0_i32, %c0_i32_0 : i32, i32
  }
  func.func @transform_1(%arg0: i32) -> (i32, i32) {
    %c0_i32 = arith.constant 0 : i32
    %c0_i32_0 = arith.constant 0 : i32
    %c0_i32_1 = arith.constant 0 : i32
    return %c0_i32, %c0_i32_0 : i32, i32
  }
  func.func @transform_2(%arg0: i32) -> (i32, i32) {
    %c0_i32 = arith.constant 0 : i32
    %c0_i32_0 = arith.constant 0 : i32
    %c0_i32_1 = arith.constant 0 : i32
    return %c0_i32, %c0_i32_0 : i32, i32
  }
  func.func @transform_3(%arg0: i32) -> (i32, i32) {
    %c0_i32 = arith.constant 0 : i32
    %c0_i32_0 = arith.constant 0 : i32
    %c0_i32_1 = arith.constant 0 : i32
    return %c0_i32, %c0_i32_0 : i32, i32
  }
  func.func @transform_4(%arg0: i32) -> (i32, i32) {
    %c0_i32 = arith.constant 0 : i32
    %c0_i32_0 = arith.constant 0 : i32
    return %arg0, %c0_i32 : i32, i32
  }
  func.func @transform_5(%arg0: i32) -> (i32, i32) {
    %c0_i32 = arith.constant 0 : i32
    %c0_i32_0 = arith.constant 0 : i32
    return %arg0, %c0_i32 : i32, i32
  }
  func.func @transform_6(%arg0: i32) -> (i32, i32) {
    %c0_i32 = arith.constant 0 : i32
    %c0_i32_0 = arith.constant 0 : i32
    return %arg0, %c0_i32 : i32, i32
  }
  func.func @transform_7(%arg0: i32) -> (i32, i32) {
    %c0_i32 = arith.constant 0 : i32
    %c0_i32_0 = arith.constant 0 : i32
    return %arg0, %c0_i32 : i32, i32
  }
}

</mosaic_0001>

<bundles_post_ra>
// kernel: se_conv_bn.1
= control target key start
LH: loop header
LB: loop body
LE: loop exit
PB: predicated region body
PF: predicated region fallthrough
CT: control target
= control target key end

     0   :  { %s7588_s24 = smov 0   ;;  %s10679_s0 = inlined_call_operand.vmem [shape: f32[1,56], index: 0, kind: input, shape index: {}]   ;;  %s10680_s1 = inlined_call_operand.vmem [shape: bf16[1344,56], index: 1, kind: input, shape index: {}]   ;;  %s10681_s2 = inlined_call_operand.vmem [shape: f32[1344,1], index: 2, kind: input, shape index: {}]   ;;  %s10682_s3 = inlined_call_operand.vmem [shape: f32[1344,49], index: 3, kind: input, shape index: {}]   ;;  %s10683_s4 = inlined_call_operand.vmem [shape: bf16[384,1344], index: 4, kind: input, shape index: {}]   ;;  %s10684_s5 = inlined_call_operand.vmem [shape: f32[384,1], index: 5, kind: input, shape index: {}]   ;;  %s10685_s6 = inlined_call_operand.vmem [shape: f32[384,1], index: 6, kind: input, shape index: {}]   ;;  %s10686_s7 = inlined_call_operand.vmem [shape: f32[384,49], index: 7, kind: output, shape index: {}]  }
   0x1 LB: > { %s5623_s25 = sadd.s32 4294967295, %s7545_s24   ;;  %p5627_p0 = scmp.ge.s32.totalorder %s7545_s24, 1  ;;  %s7545_s24 = sphi %s7588_s24, %s17_s24  }
   0x2   : > { %p261_p1 = scmp.lt.s32.totalorder %s7545_s24, 4 }
   0x4   : > { %p262_p2 = pnand %p5627_p0, %p261_p1 }
   0x6   : > { %265 = sbr.rel (%p262_p2) target bundleno = 1421 (0x58d), region = 48 }
   0xd   : > { %v6239_v0 = vld [vmem:[%s10680_s1 + $0x8] sm:$0xff]   ;;  %v7602_v1 = vld [vmem:[%s10679_s0] ss:$0 sm:$0xff]  ;;  %v6240_v7 = vld [vmem:[%s10680_s1 + $0x10] sm:$0xff]   ;;  %vm841_vm0 = vcmask 457728   ;;  %s5628_s11 = sshll.u32 %s5623_s25, 4 }
   0xe   : > { %v5904_v2 = vld [vmem:[%s10680_s1] sm:$0xff]   ;;  %v5909_v3 = vunpack.c.l.bf16 %v6239_v0  ;;  %v5910_v5 = vunpack.c.h.bf16 %v6239_v0  ;;  %v5914_v8 = vunpack.c.h.bf16 %v6240_v7  ;;  %v5913_v9 = vunpack.c.l.bf16 %v6240_v7  ;;  %v6241_v14 = vld [vmem:[%s10680_s1 + $0x18] sm:$0xff]   ;;  %v6243_v30 = vld [vmem:[%s10680_s1 + $0x28] sm:$0xff]   ;;  %p305_p3 = scmp.lt.s32.totalorder %s5628_s11, 47 }
   0xf   : > { %v5905_v4 = vunpack.c.l.bf16 %v5904_v2  ;;  %v5906_v6 = vunpack.c.h.bf16 %v5904_v2  ;;  %v5918_v17 = vunpack.c.h.bf16 %v6241_v14  ;;  %v5917_v18 = vunpack.c.l.bf16 %v6241_v14  ;;  %v6242_v23 = vld [vmem:[%s10680_s1 + $0x20] sm:$0xff]   ;;  %v6244_v37 = vld [vmem:[%s10680_s1 + $0x30] sm:$0xff]   ;;  %v6245_v44 = vld [vmem:[%s10680_s1 + $0x38] sm:$0xff]  }
  0x10   : > { %v675_v10 = vmul.f32 %v5909_v3, %v7602_v1  ;;  %v676_v12 = vmul.f32 %v5910_v5, %v7602_v1  ;;  %v678_v21 = vmul.f32 %v5914_v8, %v7602_v1  ;;  %v677_v22 = vmul.f32 %v5913_v9, %v7602_v1  ;;  %v6246_v51 = vld [vmem:[%s10680_s1 + $0x40] sm:$0xff]   ;;  %v6247_v58 = vld [vmem:[%s10680_s1 + $0x48] sm:$0xff]   ;;  %v6248_v2 = vld [vmem:[%s10680_s1 + $0x50] sm:$0xff]   ;;  %s10872_s11 = smov (!%p305_p3, %s5628_s11), 47 }
  0x11   : > { %v673_v11 = vmul.f32 %v5905_v4, %v7602_v1  ;;  %v674_v13 = vmul.f32 %v5906_v6, %v7602_v1  ;;  %v680_v24 = vmul.f32 %v5918_v17, %v7602_v1  ;;  %v679_v25 = vmul.f32 %v5917_v18, %v7602_v1  ;;  %v6249_v9 = vld [vmem:[%s10680_s1 + $0x58] sm:$0xff]   ;;  %s6694_s13 = smul.u32 44, %s10872_s11 }
  0x12   : > { %v848_v15 = vsel %vm841_vm0, %v675_v10, 0.0  ;;  %v851_v19 = vsel %vm841_vm0, %v676_v12, 0.0  ;;  %v857_v26 = vsel %vm841_vm0, %v678_v21, 0.0  ;;  %v854_v27 = vsel %vm841_vm0, %v677_v22, 0.0 }
  0x13   : > { %v842_v16 = vsel %vm841_vm0, %v673_v11, 0.0  ;;  %849 = vadd.xlane.f32.xlu1 %v848_v15  ;;  %v845_v20 = vsel %vm841_vm0, %v674_v13, 0.0  ;;  %v5922_v28 = vunpack.c.h.bf16 %v6242_v23  ;;  %v5921_v29 = vunpack.c.l.bf16 %v6242_v23  ;;  %v6251_v23 = vld [vmem:[%s10680_s1 + $0x68] sm:$0xff]   ;;  %s9141_s22 = scalar_lea.vmem %s10683_s4, %s6694_s13 }
  0x14   : > { %843 = vadd.xlane.f32.xlu0 %v842_v16  ;;  %v863_v31 = vsel %vm841_vm0, %v680_v24, 0.0  ;;  %v860_v32 = vsel %vm841_vm0, %v679_v25, 0.0  ;;  %v5926_v35 = vunpack.c.h.bf16 %v6243_v30  ;;  %v5925_v36 = vunpack.c.l.bf16 %v6243_v30  ;;  %v6250_v16 = vld [vmem:[%s10680_s1 + $0x60] sm:$0xff]   ;;  %v6252_v30 = vld [vmem:[%s10680_s1 + $0x70] sm:$0xff]  }
  0x15   : > { %v682_v33 = vmul.f32 %v5922_v28, %v7602_v1  ;;  %v681_v34 = vmul.f32 %v5921_v29, %v7602_v1  ;;  %v5930_v38 = vunpack.c.h.bf16 %v6244_v37  ;;  %v5929_v39 = vunpack.c.l.bf16 %v6244_v37  ;;  %v6253_v37 = vld [vmem:[%s10680_s1 + $0x78] sm:$0xff]  }
  0x16   : > { %v684_v42 = vmul.f32 %v5926_v35, %v7602_v1  ;;  %v683_v43 = vmul.f32 %v5925_v36, %v7602_v1  ;;  %v5934_v45 = vunpack.c.h.bf16 %v6245_v44  ;;  %v5933_v46 = vunpack.c.l.bf16 %v6245_v44  ;;  %v6254_v44 = vld [vmem:[%s10680_s1 + $0x80] sm:$0xff]  }
  0x17   : > { %852 = vadd.xlane.f32.xlu1 %v851_v19  ;;  %v869_v40 = vsel %vm841_vm0, %v682_v33, 0.0  ;;  %v866_v41 = vsel %vm841_vm0, %v681_v34, 0.0  ;;  %v686_v49 = vmul.f32 %v5930_v38, %v7602_v1  ;;  %v685_v50 = vmul.f32 %v5929_v39, %v7602_v1 }
  0x18   : > { %846 = vadd.xlane.f32.xlu0 %v845_v20  ;;  %v875_v47 = vsel %vm841_vm0, %v684_v42, 0.0  ;;  %v872_v48 = vsel %vm841_vm0, %v683_v43, 0.0  ;;  %v688_v52 = vmul.f32 %v5934_v45, %v7602_v1  ;;  %v5938_v53 = vunpack.c.h.bf16 %v6246_v51 }
  0x19   : > { %v881_v54 = vsel %vm841_vm0, %v686_v49, 0.0  ;;  %v878_v55 = vsel %vm841_vm0, %v685_v50, 0.0  ;;  %v687_v56 = vmul.f32 %v5933_v46, %v7602_v1  ;;  %v5937_v57 = vunpack.c.l.bf16 %v6246_v51  ;;  %v6255_v51 = vld [vmem:[%s10680_s1 + $0x88] sm:$0xff]  }
  0x1a   : > { %v887_v59 = vsel %vm841_vm0, %v688_v52, 0.0  ;;  %v690_v60 = vmul.f32 %v5938_v53, %v7602_v1  ;;  %v5942_v63 = vunpack.c.h.bf16 %v6247_v58  ;;  %v5941_v0 = vunpack.c.l.bf16 %v6247_v58  ;;  %v6256_v58 = vld [vmem:[%s10680_s1 + $0x90] sm:$0xff]  }
  0x1b   : > { %858 = vadd.xlane.f32.xlu1 %v857_v26  ;;  %v884_v61 = vsel %vm841_vm0, %v687_v56, 0.0  ;;  %v689_v62 = vmul.f32 %v5937_v57, %v7602_v1  ;;  %v5946_v3 = vunpack.c.h.bf16 %v6248_v2  ;;  %v5945_v4 = vunpack.c.l.bf16 %v6248_v2  ;;  %v6257_v2 = vld [vmem:[%s10680_s1 + $0x98] sm:$0xff]  }
  0x1c   : > { %855 = vadd.xlane.f32.xlu0 %v854_v27  ;;  %v893_v5 = vsel %vm841_vm0, %v690_v60, 0.0  ;;  %v692_v7 = vmul.f32 %v5942_v63, %v7602_v1  ;;  %v691_v8 = vmul.f32 %v5941_v0, %v7602_v1  ;;  %v5950_v11 = vunpack.c.h.bf16 %v6249_v9 }
  0x1d   : > { %v890_v6 = vsel %vm841_vm0, %v689_v62, 0.0  ;;  %v694_v10 = vmul.f32 %v5946_v3, %v7602_v1  ;;  %v693_v14 = vmul.f32 %v5945_v4, %v7602_v1  ;;  %v5949_v15 = vunpack.c.l.bf16 %v6249_v9  ;;  %v6258_v9 = vld [vmem:[%s10680_s1 + $0xa0] sm:$0xff]  }
  0x1e   : > { %v899_v12 = vsel %vm841_vm0, %v692_v7, 0.0  ;;  %v896_v13 = vsel %vm841_vm0, %v691_v8, 0.0  ;;  %v696_v17 = vmul.f32 %v5950_v11, %v7602_v1  ;;  %v5954_v18 = vunpack.c.h.bf16 %v6250_v16 }
  0x1f   : > { %864 = vadd.xlane.f32.xlu1 %v863_v31  ;;  %v905_v19 = vsel %vm841_vm0, %v694_v10, 0.0  ;;  %v902_v20 = vsel %vm841_vm0, %v693_v14, 0.0  ;;  %v695_v21 = vmul.f32 %v5949_v15, %v7602_v1  ;;  %v5953_v22 = vunpack.c.l.bf16 %v6250_v16  ;;  %v6259_v16 = vld [vmem:[%s10680_s1 + $0xa8] sm:$0xff]  }
  0x20   : > { %861 = vadd.xlane.f32.xlu0 %v860_v32  ;;  %v911_v24 = vsel %vm841_vm0, %v696_v17, 0.0  ;;  %v698_v25 = vmul.f32 %v5954_v18, %v7602_v1  ;;  %v5958_v28 = vunpack.c.h.bf16 %v6251_v23  ;;  %v5957_v29 = vunpack.c.l.bf16 %v6251_v23  ;;  %v6260_v23 = vld [vmem:[%s10680_s1 + $0xb0] sm:$0xff]  }
  0x21   : > { %v908_v26 = vsel %vm841_vm0, %v695_v21, 0.0  ;;  %v697_v27 = vmul.f32 %v5953_v22, %v7602_v1  ;;  %v5962_v31 = vunpack.c.h.bf16 %v6252_v30  ;;  %v5961_v32 = vunpack.c.l.bf16 %v6252_v30  ;;  %v6261_v30 = vld [vmem:[%s10680_s1 + $0xb8] sm:$0xff]  }
  0x22   : > { %v917_v33 = vsel %vm841_vm0, %v698_v25, 0.0  ;;  %v700_v35 = vmul.f32 %v5958_v28, %v7602_v1  ;;  %v699_v36 = vmul.f32 %v5957_v29, %v7602_v1  ;;  %v5966_v39 = vunpack.c.h.bf16 %v6253_v37 }
  0x23   : > { %870 = vadd.xlane.f32.xlu1 %v869_v40  ;;  %v914_v34 = vsel %vm841_vm0, %v697_v27, 0.0  ;;  %v702_v38 = vmul.f32 %v5962_v31, %v7602_v1  ;;  %v701_v42 = vmul.f32 %v5961_v32, %v7602_v1  ;;  %v5965_v43 = vunpack.c.l.bf16 %v6253_v37  ;;  %v6262_v37 = vld [vmem:[%s10680_s1 + $0xc0] sm:$0xff]  }
  0x24   : > { %867 = vadd.xlane.f32.xlu0 %v866_v41  ;;  %v923_v40 = vsel %vm841_vm0, %v700_v35, 0.0  ;;  %v920_v41 = vsel %vm841_vm0, %v699_v36, 0.0  ;;  %v704_v45 = vmul.f32 %v5966_v39, %v7602_v1  ;;  %v5970_v46 = vunpack.c.h.bf16 %v6254_v44 }
  0x25   : > { %v703_v49 = vmul.f32 %v5965_v43, %v7602_v1  ;;  %v5969_v50 = vunpack.c.l.bf16 %v6254_v44  ;;  %v5974_v56 = vunpack.c.h.bf16 %v6255_v51  ;;  %v5973_v57 = vunpack.c.l.bf16 %v6255_v51  ;;  %v6263_v44 = vld [vmem:[%s10680_s1 + $0xc8] sm:$0xff]   ;;  %v6264_v51 = vld [vmem:[%s10680_s1 + $0xd0] sm:$0xff]  }
  0x26   : > { %v935_v52 = vsel %vm841_vm0, %v704_v45, 0.0  ;;  %v706_v53 = vmul.f32 %v5970_v46, %v7602_v1  ;;  %v5977_v60 = vunpack.c.l.bf16 %v6256_v58  ;;  %v5982_v4 = vunpack.c.h.bf16 %v6257_v2 }
  0x27   : > { %876 = vadd.xlane.f32.xlu1 %v875_v47  ;;  %v929_v47 = vsel %vm841_vm0, %v702_v38, 0.0  ;;  %v708_v63 = vmul.f32 %v5974_v56, %v7602_v1  ;;  %v707_v0 = vmul.f32 %v5973_v57, %v7602_v1  ;;  %v5981_v8 = vunpack.c.l.bf16 %v6257_v2  ;;  %v6266_v2 = vld [vmem:[%s10680_s1 + $0xe0] sm:$0xff]  }
  0x28   : > { %873 = vadd.xlane.f32.xlu0 %v872_v48  ;;  %v926_v48 = vsel %vm841_vm0, %v701_v42, 0.0  ;;  %v709_v7 = vmul.f32 %v5977_v60, %v7602_v1  ;;  %v712_v10 = vmul.f32 %v5982_v4, %v7602_v1  ;;  %v5986_v11 = vunpack.c.h.bf16 %v6258_v9 }
  0x29   : > { %v711_v14 = vmul.f32 %v5981_v8, %v7602_v1  ;;  %v5985_v15 = vunpack.c.l.bf16 %v6258_v9  ;;  %v5990_v21 = vunpack.c.h.bf16 %v6259_v16  ;;  %v5989_v22 = vunpack.c.l.bf16 %v6259_v16  ;;  %v6267_v9 = vld [vmem:[%s10680_s1 + $0xe8] sm:$0xff]   ;;  %v6268_v16 = vld [vmem:[%s10680_s1 + $0xf0] sm:$0xff]  }
  0x2a   : > { %v959_v17 = vsel %vm841_vm0, %v712_v10, 0.0  ;;  %v714_v18 = vmul.f32 %v5986_v11, %v7602_v1  ;;  %v5993_v25 = vunpack.c.l.bf16 %v6260_v23  ;;  %v5998_v32 = vunpack.c.h.bf16 %v6261_v30 }
  0x2b   : > { %882 = vadd.xlane.f32.xlu1 %v881_v54  ;;  %v932_v54 = vsel %vm841_vm0, %v703_v49, 0.0  ;;  %v716_v28 = vmul.f32 %v5990_v21, %v7602_v1  ;;  %v715_v29 = vmul.f32 %v5989_v22, %v7602_v1  ;;  %v5997_v36 = vunpack.c.l.bf16 %v6261_v30  ;;  %v6270_v30 = vld [vmem:[%s10680_s1 + $0x100] sm:$0xff]  }
  0x2c   : > { %879 = vadd.xlane.f32.xlu0 %v878_v55  ;;  %v705_v55 = vmul.f32 %v5969_v50, %v7602_v1  ;;  %v717_v35 = vmul.f32 %v5993_v25, %v7602_v1  ;;  %v720_v38 = vmul.f32 %v5998_v32, %v7602_v1  ;;  %v6002_v39 = vunpack.c.h.bf16 %v6262_v37 }
  0x2d   : > { %v719_v42 = vmul.f32 %v5997_v36, %v7602_v1  ;;  %v6001_v43 = vunpack.c.l.bf16 %v6262_v37  ;;  %v6006_v49 = vunpack.c.h.bf16 %v6263_v44  ;;  %v6005_v50 = vunpack.c.l.bf16 %v6263_v44  ;;  %v6271_v37 = vld [vmem:[%s10680_s1 + $0x108] sm:$0xff]   ;;  %v6272_v44 = vld [vmem:[%s10680_s1 + $0x110] sm:$0xff]  }
  0x2e   : > { %v938_v62 = vsel %vm841_vm0, %v705_v55, 0.0  ;;  %v983_v45 = vsel %vm841_vm0, %v720_v38, 0.0  ;;  %v722_v46 = vmul.f32 %v6002_v39, %v7602_v1  ;;  %v6018_v4 = vunpack.c.h.bf16 %v6266_v2 }
  0x2f   : > { %888 = vadd.xlane.f32.xlu1 %v887_v59  ;;  %v5978_v59 = vunpack.c.h.bf16 %v6256_v58  ;;  %v724_v56 = vmul.f32 %v6006_v49, %v7602_v1  ;;  %v723_v57 = vmul.f32 %v6005_v50, %v7602_v1  ;;  %v6265_v58 = vld [vmem:[%s10680_s1 + $0xd8] sm:$0xff]   ;;  %v6017_v8 = vunpack.c.l.bf16 %v6266_v2  ;;  %v6275_v2 = vld [vmem:[%s10680_s1 + $0x128] sm:$0xff]  }
  0x30   : > { %885 = vadd.xlane.f32.xlu0 %v884_v61  ;;  %v941_v61 = vsel %vm841_vm0, %v706_v53, 0.0  ;;  %v6009_v53 = vunpack.c.l.bf16 %v6264_v51  ;;  %v6014_v60 = vunpack.c.h.bf16 %v6265_v58  ;;  %v730_v11 = vmul.f32 %v6018_v4, %v7602_v1 }
  0x31   : > { %v710_v3 = vmul.f32 %v5978_v59, %v7602_v1  ;;  %v6034_v32 = vunpack.c.h.bf16 %v6270_v30  ;;  %v6033_v36 = vunpack.c.l.bf16 %v6270_v30  ;;  %vm4486_vm1 = vcmask 523264  }
  0x32   : > { %vm5093_vm2 = vcmask 400384  }
  0x33   : > { %894 = vadd.xlane.f32.xlu1 %v893_v5  ;;  %v947_v5 = vsel %vm841_vm0, %v708_v63, 0.0  ;;  %v725_v63 = vmul.f32 %v6009_v53, %v7602_v1  ;;  %v738_v39 = vmul.f32 %v6034_v32, %v7602_v1 }
  0x34   : > { %891 = vadd.xlane.f32.xlu0 %v890_v6  ;;  %v944_v6 = vsel %vm841_vm0, %v707_v0, 0.0  ;;  %v6013_v0 = vunpack.c.l.bf16 %v6265_v58  ;;  %v6274_v58 = vld [vmem:[%s10680_s1 + $0x120] sm:$0xff]  }
  0x37   : > { %900 = vadd.xlane.f32.xlu1 %v899_v12  ;;  %v953_v12 = vsel %vm841_vm0, %v710_v3, 0.0  ;;  %v728_v3 = vmul.f32 %v6014_v60, %v7602_v1  ;;  %v6050_v60 = vunpack.c.h.bf16 %v6274_v58 }
  0x38   : > { %897 = vadd.xlane.f32.xlu0 %v896_v13  ;;  %v950_v13 = vsel %vm841_vm0, %v709_v7, 0.0  ;;  %v727_v7 = vmul.f32 %v6013_v0, %v7602_v1  ;;  %v6049_v0 = vunpack.c.l.bf16 %v6274_v58 }
  0x39   : > { %v1007_v10 = vsel %vm841_vm0, %v728_v3, 0.0  ;;  %v746_v4 = vmul.f32 %v6050_v60, %v7602_v1 }
  0x3b   : > { %906 = vadd.xlane.f32.xlu1 %v905_v19  ;;  %v956_v19 = vsel %vm841_vm0, %v711_v14, 0.0  ;;  %v6022_v14 = vunpack.c.h.bf16 %v6267_v9 }
  0x3c   : > { %903 = vadd.xlane.f32.xlu0 %v902_v20  ;;  %v713_v20 = vmul.f32 %v5985_v15, %v7602_v1  ;;  %v6021_v15 = vunpack.c.l.bf16 %v6267_v9  ;;  %v6276_v9 = vld [vmem:[%s10680_s1 + $0x130] sm:$0xff]  }
  0x3d   : > { %v732_v21 = vmul.f32 %v6022_v14, %v7602_v1 }
  0x3e   : > { %v962_v27 = vsel %vm841_vm0, %v713_v20, 0.0  ;;  %v731_v22 = vmul.f32 %v6021_v15, %v7602_v1 }
  0x3f   : > { %912 = vadd.xlane.f32.xlu1 %v911_v24  ;;  %v5994_v24 = vunpack.c.h.bf16 %v6260_v23  ;;  %v6269_v23 = vld [vmem:[%s10680_s1 + $0xf8] sm:$0xff]  }
  0x40   : > { %909 = vadd.xlane.f32.xlu0 %v908_v26  ;;  %v965_v26 = vsel %vm841_vm0, %v714_v18, 0.0  ;;  %v6025_v18 = vunpack.c.l.bf16 %v6268_v16  ;;  %v6030_v25 = vunpack.c.h.bf16 %v6269_v23 }
  0x41   : > { %v718_v31 = vmul.f32 %v5994_v24, %v7602_v1 }
  0x43   : > { %918 = vadd.xlane.f32.xlu1 %v917_v33  ;;  %v971_v33 = vsel %vm841_vm0, %v716_v28, 0.0  ;;  %v733_v28 = vmul.f32 %v6025_v18, %v7602_v1  ;;  %v6277_v18 = vld [vmem:[%s10680_s1 + $0x138] sm:$0xff]  }
  0x44   : > { %915 = vadd.xlane.f32.xlu0 %v914_v34  ;;  %v968_v34 = vsel %vm841_vm0, %v715_v29, 0.0  ;;  %v6029_v29 = vunpack.c.l.bf16 %v6269_v23 }
  0x47   : > { %924 = vadd.xlane.f32.xlu1 %v923_v40  ;;  %v977_v40 = vsel %vm841_vm0, %v718_v31, 0.0  ;;  %v736_v31 = vmul.f32 %v6030_v25, %v7602_v1 }
  0x48   : > { %921 = vadd.xlane.f32.xlu0 %v920_v41  ;;  %v974_v41 = vsel %vm841_vm0, %v717_v35, 0.0  ;;  %v735_v35 = vmul.f32 %v6029_v29, %v7602_v1 }
  0x49   : > { %v1031_v38 = vsel %vm841_vm0, %v736_v31, 0.0 }
  0x4b   : > { %930 = vadd.xlane.f32.xlu1 %v929_v47  ;;  %v980_v47 = vsel %vm841_vm0, %v719_v42, 0.0  ;;  %v6038_v42 = vunpack.c.h.bf16 %v6271_v37 }
  0x4c   : > { %927 = vadd.xlane.f32.xlu0 %v926_v48  ;;  %v721_v48 = vmul.f32 %v6001_v43, %v7602_v1  ;;  %v6037_v43 = vunpack.c.l.bf16 %v6271_v37 }
  0x4d   : > { %v740_v49 = vmul.f32 %v6038_v42, %v7602_v1 }
  0x4e   : > { %v986_v55 = vsel %vm841_vm0, %v721_v48, 0.0  ;;  %v739_v50 = vmul.f32 %v6037_v43, %v7602_v1 }
  0x4f   : > { %936 = vadd.xlane.f32.xlu1 %v935_v52  ;;  %v6010_v52 = vunpack.c.h.bf16 %v6264_v51  ;;  %v6273_v51 = vld [vmem:[%s10680_s1 + $0x118] sm:$0xff]  }
  0x50   : > { %933 = vadd.xlane.f32.xlu0 %v932_v54  ;;  %v989_v54 = vsel %vm841_vm0, %v722_v46, 0.0  ;;  %v6041_v46 = vunpack.c.l.bf16 %v6272_v44  ;;  %v6046_v53 = vunpack.c.h.bf16 %v6273_v51 }
  0x51   : > { %v726_v59 = vmul.f32 %v6010_v52, %v7602_v1 }
  0x53   : > { %942 = vadd.xlane.f32.xlu1 %v941_v61  ;;  %v995_v61 = vsel %vm841_vm0, %v724_v56, 0.0  ;;  %v741_v56 = vmul.f32 %v6041_v46, %v7602_v1 }
  0x54   : > { %939 = vadd.xlane.f32.xlu0 %v938_v62  ;;  %v992_v62 = vsel %vm841_vm0, %v723_v57, 0.0  ;;  %v6045_v57 = vunpack.c.l.bf16 %v6273_v51 }
  0x57   : > { %948 = vadd.xlane.f32.xlu1 %v947_v5  ;;  %v1001_v5 = vsel %vm841_vm0, %v726_v59, 0.0  ;;  %v744_v59 = vmul.f32 %v6046_v53, %v7602_v1 }
  0x58   : > { %945 = vadd.xlane.f32.xlu0 %v944_v6  ;;  %v998_v6 = vsel %vm841_vm0, %v725_v63, 0.0  ;;  %v743_v63 = vmul.f32 %v6045_v57, %v7602_v1 }
  0x59   : > { %v1055_v3 = vsel %vm841_vm0, %v744_v59, 0.0 }
  0x5b   : > { %954 = vadd.xlane.f32.xlu1 %v953_v12  ;;  %v1004_v12 = vsel %vm841_vm0, %v727_v7, 0.0  ;;  %v6054_v7 = vunpack.c.h.bf16 %v6275_v2 }
  0x5c   : > { %951 = vadd.xlane.f32.xlu0 %v950_v13  ;;  %v729_v13 = vmul.f32 %v6017_v8, %v7602_v1  ;;  %v6053_v8 = vunpack.c.l.bf16 %v6275_v2 }
  0x5e   : > { %v1010_v20 = vsel %vm841_vm0, %v729_v13, 0.0  ;;  %v1061_v13 = vsel %vm841_vm0, %v746_v4, 0.0 }
  0x5f   : > { %960 = vadd.xlane.f32.xlu1 %v959_v17  ;;  %v6026_v17 = vunpack.c.h.bf16 %v6268_v16  ;;  %v748_v16 = vmul.f32 %v6054_v7, %v7602_v1 }
  0x60   : > { %957 = vadd.xlane.f32.xlu0 %v956_v19  ;;  %v1013_v19 = vsel %vm841_vm0, %v730_v11, 0.0  ;;  %v6057_v11 = vunpack.c.l.bf16 %v6276_v9 }
  0x61   : > { %v734_v24 = vmul.f32 %v6026_v17, %v7602_v1  ;;  %v747_v17 = vmul.f32 %v6053_v8, %v7602_v1 }
  0x62   : > { %v749_v25 = vmul.f32 %v6057_v11, %v7602_v1 }
  0x63   : > { %966 = vadd.xlane.f32.xlu1 %v965_v26  ;;  %v1019_v26 = vsel %vm841_vm0, %v732_v21, 0.0  ;;  %v1064_v23 = vsel %vm841_vm0, %v747_v17, 0.0 }
  0x64   : > { %963 = vadd.xlane.f32.xlu0 %v962_v27  ;;  %v1016_v27 = vsel %vm841_vm0, %v731_v22, 0.0  ;;  %v1067_v22 = vsel %vm841_vm0, %v748_v16, 0.0  ;;  %v1070_v32 = vsel %vm841_vm0, %v749_v25, 0.0 }
  0x67   : > { %972 = vadd.xlane.f32.xlu1 %v971_v33  ;;  %v1025_v33 = vsel %vm841_vm0, %v734_v24, 0.0 }
  0x68   : > { %969 = vadd.xlane.f32.xlu0 %v968_v34  ;;  %v1022_v34 = vsel %vm841_vm0, %v733_v28, 0.0 }
  0x6b   : > { %978 = vadd.xlane.f32.xlu1 %v977_v40  ;;  %v1028_v40 = vsel %vm841_vm0, %v735_v35, 0.0 }
  0x6c   : > { %975 = vadd.xlane.f32.xlu0 %v974_v41  ;;  %v737_v41 = vmul.f32 %v6033_v36, %v7602_v1  ;;  %v6279_v36 = vld [vmem:[%s10680_s1 + $0x148] sm:$0xff]  }
  0x6d   : > { %v6070_v43 = vunpack.c.h.bf16 %v6279_v36 }
  0x6e   : > { %v1034_v48 = vsel %vm841_vm0, %v737_v41, 0.0 }
  0x6f   : > { %984 = vadd.xlane.f32.xlu1 %v983_v45  ;;  %v6042_v45 = vunpack.c.h.bf16 %v6272_v44  ;;  %v6069_v44 = vunpack.c.l.bf16 %v6279_v36 }
  0x70   : > { %981 = vadd.xlane.f32.xlu0 %v980_v47  ;;  %v1037_v47 = vsel %vm841_vm0, %v738_v39, 0.0 }
  0x71   : > { %v742_v52 = vmul.f32 %v6042_v45, %v7602_v1  ;;  %v6280_v45 = vld [vmem:[%s10680_s1 + $0x150] sm:$0xff]   ;;  %v755_v53 = vmul.f32 %v6069_v44, %v7602_v1  ;;  %v6286_v44 = vld [vmem:[%s10680_s1 + $0x180] sm:$0xff]  }
  0x72   : > { %v6074_v46 = vunpack.c.h.bf16 %v6280_v45 }
  0x73   : > { %990 = vadd.xlane.f32.xlu1 %v989_v54  ;;  %v1043_v54 = vsel %vm841_vm0, %v740_v49, 0.0  ;;  %v1088_v59 = vsel %vm841_vm0, %v755_v53, 0.0 }
  0x74   : > { %987 = vadd.xlane.f32.xlu0 %v986_v55  ;;  %v1040_v55 = vsel %vm841_vm0, %v739_v50, 0.0 }
  0x77   : > { %996 = vadd.xlane.f32.xlu1 %v995_v61  ;;  %v1049_v61 = vsel %vm841_vm0, %v742_v52, 0.0  ;;  %v756_v52 = vmul.f32 %v6070_v43, %v7602_v1 }
  0x78   : > { %993 = vadd.xlane.f32.xlu0 %v992_v62  ;;  %v1046_v62 = vsel %vm841_vm0, %v741_v56, 0.0 }
  0x79   : > { %v1091_v58 = vsel %vm841_vm0, %v756_v52, 0.0 }
  0x7b   : > { %1002 = vadd.xlane.f32.xlu1 %v1001_v5  ;;  %v1052_v5 = vsel %vm841_vm0, %v743_v63, 0.0  ;;  %v6282_v63 = vld [vmem:[%s10680_s1 + $0x160] sm:$0xff]  }
  0x7c   : > { %999 = vadd.xlane.f32.xlu0 %v998_v6  ;;  %v745_v6 = vmul.f32 %v6049_v0, %v7602_v1  ;;  %v6082_v2 = vunpack.c.h.bf16 %v6282_v63  ;;  %v6081_v8 = vunpack.c.l.bf16 %v6282_v63 }
  0x7e   : > { %v1058_v14 = vsel %vm841_vm0, %v745_v6, 0.0  ;;  %v762_v11 = vmul.f32 %v6082_v2, %v7602_v1  ;;  %v761_v17 = vmul.f32 %v6081_v8, %v7602_v1 }
  0x7f   : > { %1008 = vadd.xlane.f32.xlu1 %v1007_v10  ;;  %v6058_v10 = vunpack.c.h.bf16 %v6276_v9  ;;  %v6283_v9 = vld [vmem:[%s10680_s1 + $0x168] sm:$0xff]  }
  0x80   : > { %1005 = vadd.xlane.f32.xlu0 %v1004_v12 }
  0x83   : > { %1014 = vadd.xlane.f32.xlu1 %v1013_v19  ;;  %v750_v19 = vmul.f32 %v6058_v10, %v7602_v1 }
  0x84   : > { %1011 = vadd.xlane.f32.xlu0 %v1010_v20  ;;  %v6062_v20 = vunpack.c.h.bf16 %v6277_v18 }
  0x85   : > { %v1073_v31 = vsel %vm841_vm0, %v750_v19, 0.0  ;;  %v6085_v19 = vunpack.c.l.bf16 %v6283_v9 }
  0x86   : > { %v752_v28 = vmul.f32 %v6062_v20, %v7602_v1  ;;  %v6284_v20 = vld [vmem:[%s10680_s1 + $0x170] sm:$0xff]  }
  0x87   : > { %1020 = vadd.xlane.f32.xlu1 %v1019_v26  ;;  %v6061_v26 = vunpack.c.l.bf16 %v6277_v18  ;;  %v6086_v18 = vunpack.c.h.bf16 %v6283_v9 }
  0x88   : > { %1017 = vadd.xlane.f32.xlu0 %v1016_v27  ;;  %v6278_v27 = vld [vmem:[%s10680_s1 + $0x140] sm:$0xff]   ;;  %v1079_v37 = vsel %vm841_vm0, %v752_v28, 0.0 }
  0x89   : > { %v6066_v29 = vunpack.c.h.bf16 %v6278_v27  ;;  %v6065_v35 = vunpack.c.l.bf16 %v6278_v27  ;;  %v1106_v27 = vsel %vm841_vm0, %v761_v17, 0.0 }
  0x8b   : > { %1026 = vadd.xlane.f32.xlu1 %v1025_v33  ;;  %v753_v42 = vmul.f32 %v6065_v35, %v7602_v1 }
  0x8c   : > { %1023 = vadd.xlane.f32.xlu0 %v1022_v34  ;;  %v751_v34 = vmul.f32 %v6061_v26, %v7602_v1  ;;  %v1109_v26 = vsel %vm841_vm0, %v762_v11, 0.0 }
  0x8d   : > { %v1082_v50 = vsel %vm841_vm0, %v753_v42, 0.0 }
  0x8f   : > { %1032 = vadd.xlane.f32.xlu1 %v1031_v38  ;;  %v754_v38 = vmul.f32 %v6066_v29, %v7602_v1  ;;  %v764_v29 = vmul.f32 %v6086_v18, %v7602_v1  ;;  %v6289_v18 = vld [vmem:[%s10680_s1 + $0x198] sm:$0xff]  }
  0x90   : > { %1029 = vadd.xlane.f32.xlu0 %v1028_v40  ;;  %v1076_v40 = vsel %vm841_vm0, %v751_v34, 0.0 }
  0x91   : > { %v1085_v49 = vsel %vm841_vm0, %v754_v38, 0.0 }
  0x93   : > { %1038 = vadd.xlane.f32.xlu1 %v1037_v47  ;;  %v6073_v47 = vunpack.c.l.bf16 %v6280_v45 }
  0x94   : > { %1035 = vadd.xlane.f32.xlu0 %v1034_v48 }
  0x97   : > { %1044 = vadd.xlane.f32.xlu1 %v1043_v54  ;;  %v6281_v54 = vld [vmem:[%s10680_s1 + $0x158] sm:$0xff]  }
  0x98   : > { %1041 = vadd.xlane.f32.xlu0 %v1040_v55  ;;  %v758_v55 = vmul.f32 %v6074_v46, %v7602_v1  ;;  %v6078_v56 = vunpack.c.h.bf16 %v6281_v54  ;;  %v6098_v46 = vunpack.c.h.bf16 %v6286_v44 }
  0x9a   : > { %v760_v0 = vmul.f32 %v6078_v56, %v7602_v1  ;;  %v1097_v4 = vsel %vm841_vm0, %v758_v55, 0.0  ;;  %v6287_v55 = vld [vmem:[%s10680_s1 + $0x188] sm:$0xff]  }
  0x9b   : > { %1050 = vadd.xlane.f32.xlu1 %v1049_v61  ;;  %v757_v61 = vmul.f32 %v6073_v47, %v7602_v1  ;;  %v6101_v2 = vunpack.c.l.bf16 %v6287_v55 }
  0x9c   : > { %1047 = vadd.xlane.f32.xlu0 %v1046_v62  ;;  %v6077_v62 = vunpack.c.l.bf16 %v6281_v54  ;;  %v1103_v10 = vsel %vm841_vm0, %v760_v0, 0.0  ;;  %v6097_v54 = vunpack.c.l.bf16 %v6286_v44  ;;  %v6102_v0 = vunpack.c.h.bf16 %v6287_v55 }
  0x9e   : > { %v759_v7 = vmul.f32 %v6077_v62, %v7602_v1  ;;  %v769_v63 = vmul.f32 %v6097_v54, %v7602_v1  ;;  %v772_v11 = vmul.f32 %v6102_v0, %v7602_v1 }
  0x9f   : > { %1056 = vadd.xlane.f32.xlu1 %v1055_v3 }
  0xa0   : > { %1053 = vadd.xlane.f32.xlu0 %v1052_v5  ;;  %v7864_v12 = vpop.xlane.xlu1 %849  ;;  %v1094_v5 = vsel %vm841_vm0, %v757_v61, 0.0  ;;  %v1130_v9 = vsel %vm841_vm0, %v769_v63, 0.0  ;;  %v6292_v63 = vld [vmem:[%s10680_s1 + $0x1b0] sm:$0xff]  }
  0xa1   : > { %v7868_v15 = vpop.xlane.xlu0 %843 }
  0xa3   : > { %1062 = vadd.xlane.f32.xlu1 %v1061_v13 }
  0xa4   : > { %1059 = vadd.xlane.f32.xlu0 %v1058_v14  ;;  %v7876_v21 = vpop.xlane.xlu1 %852  ;;  %v1100_v14 = vsel %vm841_vm0, %v759_v7, 0.0 }
  0xa5   : > { %v7880_v24 = vpop.xlane.xlu0 %846 }
  0xa7   : > { %1068 = vadd.xlane.f32.xlu1 %v1067_v22  ;;  %v6090_v22 = vunpack.c.h.bf16 %v6284_v20 }
  0xa8   : > { %1065 = vadd.xlane.f32.xlu0 %v1064_v23  ;;  %v7887_v30 = vpop.xlane.xlu1 %858  ;;  %v6089_v23 = vunpack.c.l.bf16 %v6284_v20  ;;  %v6110_v20 = vunpack.c.h.bf16 %v6289_v18 }
  0xa9   : > { %v7891_v33 = vpop.xlane.xlu0 %855  ;;  %v766_v34 = vmul.f32 %v6090_v22, %v7602_v1 }
  0xaa   : > { %v765_v42 = vmul.f32 %v6089_v23, %v7602_v1  ;;  %v1139_v23 = vsel %vm841_vm0, %v772_v11, 0.0  ;;  %v8050_v11 = vld [vmem:[%s10679_s0] ss:$0 sm:$0xff] }
  0xab   : > { %1074 = vadd.xlane.f32.xlu1 %v1073_v31  ;;  %v763_v31 = vmul.f32 %v6085_v19, %v7602_v1 }
  0xac   : > { %1071 = vadd.xlane.f32.xlu0 %v1070_v32  ;;  %v7899_v39 = vpop.xlane.xlu1 %864  ;;  %v6285_v32 = vld [vmem:[%s10680_s1 + $0x178] sm:$0xff]  }
  0xad   : > { %v7902_v41 = vpop.xlane.xlu0 %861  ;;  %v6094_v35 = vunpack.c.h.bf16 %v6285_v32  ;;  %v1112_v38 = vsel %vm841_vm0, %v763_v31, 0.0  ;;  %v6093_v43 = vunpack.c.l.bf16 %v6285_v32  ;;  %v6109_v31 = vunpack.c.l.bf16 %v6289_v18  ;;  %v6290_v32 = vld [vmem:[%s10680_s1 + $0x1a0] sm:$0xff]  }
  0xae   : > { %v6114_v44 = vunpack.c.h.bf16 %v6290_v32 }
  0xaf   : > { %1080 = vadd.xlane.f32.xlu1 %v1079_v37  ;;  %v1115_v37 = vsel %vm841_vm0, %v764_v29, 0.0  ;;  %v768_v45 = vmul.f32 %v6094_v35, %v7602_v1  ;;  %v767_v53 = vmul.f32 %v6093_v43, %v7602_v1  ;;  %v776_v35 = vmul.f32 %v6110_v20, %v7602_v1 }
  0xb0   : > { %1077 = vadd.xlane.f32.xlu0 %v1076_v40  ;;  %v7908_v48 = vpop.xlane.xlu1 %870  ;;  %v775_v43 = vmul.f32 %v6109_v31, %v7602_v1 }
  0xb1   : > { %v7912_v51 = vpop.xlane.xlu0 %867  ;;  %v1127_v56 = vsel %vm841_vm0, %v768_v45, 0.0  ;;  %v1124_v61 = vsel %vm841_vm0, %v767_v53, 0.0  ;;  %v6113_v45 = vunpack.c.l.bf16 %v6290_v32 }
  0xb2   : > { %v1148_v54 = vsel %vm841_vm0, %v775_v43, 0.0 }
  0xb3   : > { %1086 = vadd.xlane.f32.xlu1 %v1085_v49  ;;  %v1121_v49 = vsel %vm841_vm0, %v766_v34, 0.0 }
  0xb4   : > { %1083 = vadd.xlane.f32.xlu0 %v1082_v50  ;;  %v7920_v57 = vpop.xlane.xlu1 %876  ;;  %v1118_v50 = vsel %vm841_vm0, %v765_v42, 0.0 }
  0xb5   : > { %v7924_v60 = vpop.xlane.xlu0 %873 }
  0xb7   : > { %1092 = vadd.xlane.f32.xlu1 %v1091_v58  ;;  %v770_v58 = vmul.f32 %v6098_v46, %v7602_v1  ;;  %v6291_v46 = vld [vmem:[%s10680_s1 + $0x1a8] sm:$0xff]  }
  0xb8   : > { %1089 = vadd.xlane.f32.xlu0 %v1088_v59  ;;  %v7931_v3 = vpop.xlane.xlu1 %882 }
  0xb9   : > { %v7935_v6 = vpop.xlane.xlu0 %879 }
  0xbb   : > { %1098 = vadd.xlane.f32.xlu1 %v1097_v4  ;;  %v6288_v4 = vld [vmem:[%s10680_s1 + $0x190] sm:$0xff]  }
  0xbc   : > { %1095 = vadd.xlane.f32.xlu0 %v1094_v5  ;;  %v7943_v13 = vpop.xlane.xlu1 %888  ;;  %v1133_v5 = vsel %vm841_vm0, %v770_v58, 0.0  ;;  %v6106_v7 = vunpack.c.h.bf16 %v6288_v4  ;;  %v6105_v17 = vunpack.c.l.bf16 %v6288_v4  ;;  %v777_v58 = vmul.f32 %v6113_v45, %v7602_v1 }
  0xbd   : > { %v7946_v16 = vpop.xlane.xlu0 %885 }
  0xbe   : > { %v774_v19 = vmul.f32 %v6106_v7, %v7602_v1  ;;  %v773_v29 = vmul.f32 %v6105_v17, %v7602_v1  ;;  %v1154_v7 = vsel %vm841_vm0, %v777_v58, 0.0  ;;  %v6121_v17 = vunpack.c.l.bf16 %v6292_v63 }
  0xbf   : > { %1104 = vadd.xlane.f32.xlu1 %v1103_v10 }
  0xc0   : > { %1101 = vadd.xlane.f32.xlu0 %v1100_v14  ;;  %v7952_v25 = vpop.xlane.xlu1 %894  ;;  %v771_v14 = vmul.f32 %v6101_v2, %v7602_v1  ;;  %v1145_v34 = vsel %vm841_vm0, %v774_v19, 0.0  ;;  %v6122_v2 = vunpack.c.h.bf16 %v6292_v63 }
  0xc1   : > { %v7956_v28 = vpop.xlane.xlu0 %891 }
  0xc2   : > { %v782_v19 = vmul.f32 %v8050_v11, %v6122_v2 }
  0xc3   : > { %1110 = vadd.xlane.f32.xlu1 %v1109_v26  ;;  %v1136_v26 = vsel %vm841_vm0, %v771_v14, 0.0 }
  0xc4   : > { %1107 = vadd.xlane.f32.xlu0 %v1106_v27  ;;  %v7964_v36 = vpop.xlane.xlu1 %900 }
  0xc5   : > { %v7968_v40 = vpop.xlane.xlu0 %897 }
  0xc7   : > { %1116 = vadd.xlane.f32.xlu1 %v1115_v37 }
  0xc8   : > { %1113 = vadd.xlane.f32.xlu0 %v1112_v38  ;;  %v7975_v47 = vpop.xlane.xlu1 %906  ;;  %v1142_v38 = vsel %vm841_vm0, %v773_v29, 0.0  ;;  %v781_v29 = vmul.f32 %v8050_v11, %v6121_v17 }
  0xc9   : > { %v7979_v52 = vpop.xlane.xlu0 %903 }
  0xcb   : > { %1122 = vadd.xlane.f32.xlu1 %v1121_v49  ;;  %v1151_v49 = vsel %vm841_vm0, %v776_v35, 0.0  ;;  %v1169_v35 = vsel %vm841_vm0, %v782_v19, 0.0 }
  0xcc   : > { %1119 = vadd.xlane.f32.xlu0 %v1118_v50  ;;  %v7987_v59 = vpop.xlane.xlu1 %912  ;;  %v6118_v50 = vunpack.c.h.bf16 %v6291_v46 }
  0xcd   : > { %v7990_v62 = vpop.xlane.xlu0 %909 }
  0xce   : > { %v780_v0 = vmul.f32 %v6118_v50, %v7602_v1 }
  0xcf   : > { %1128 = vadd.xlane.f32.xlu1 %v1127_v56  ;;  %v778_v56 = vmul.f32 %v6114_v44, %v7602_v1  ;;  %v6293_v1 = vld [vmem:[%s10680_s1 + $0x1b8] sm:$0xff]   ;;  %v1166_v44 = vsel %vm841_vm0, %v781_v29, 0.0 }
  0xd0   : > { %1125 = vadd.xlane.f32.xlu0 %v1124_v61  ;;  %v7997_v8 = vpop.xlane.xlu1 %918  ;;  %v6117_v61 = vunpack.c.l.bf16 %v6291_v46  ;;  %v1163_v18 = vsel %vm841_vm0, %v780_v0, 0.0  ;;  %v6126_v31 = vunpack.c.h.bf16 %v6293_v1  ;;  %v6125_v32 = vunpack.c.l.bf16 %v6293_v1 }
  0xd1   : > { %v8000_v10 = vpop.xlane.xlu0 %915 }
  0xd2   : > { %v779_v14 = vmul.f32 %v8050_v11, %v6117_v61  ;;  %v784_v46 = vmul.f32 %v8050_v11, %v6126_v31 }
  0xd3   : > { %1134 = vadd.xlane.f32.xlu1 %v1133_v5  ;;  %v1157_v5 = vsel %vm841_vm0, %v778_v56, 0.0 }
  0xd4   : > { %1131 = vadd.xlane.f32.xlu0 %v1130_v9  ;;  %v8008_v22 = vpop.xlane.xlu1 %924  ;;  %v1175_v63 = vsel %vm841_vm0, %v784_v46, 0.0 }
  0xd5   : > { %v8012_v27 = vpop.xlane.xlu0 %921 }
  0xd7   : > { %1140 = vadd.xlane.f32.xlu1 %v1139_v23  ;;  %v1160_v23 = vsel %vm841_vm0, %v779_v14, 0.0  ;;  %v6296_v14 = vld [vmem:[%s10680_s1 + $0x1d0] sm:$0xff]  }
  0xd8   : > { %1137 = vadd.xlane.f32.xlu0 %v1136_v26  ;;  %v8020_v37 = vpop.xlane.xlu1 %930 }
  0xd9   : > { %v8023_v42 = vpop.xlane.xlu0 %927 }
  0xdb   : > { %1146 = vadd.xlane.f32.xlu1 %v1145_v34  ;;  %v6294_v34 = vld [vmem:[%s10680_s1 + $0x1c0] sm:$0xff]  }
  0xdc   : > { %1143 = vadd.xlane.f32.xlu0 %v1142_v38  ;;  %v8030_v53 = vpop.xlane.xlu1 %936  ;;  %v6130_v38 = vunpack.c.h.bf16 %v6294_v34  ;;  %v6129_v50 = vunpack.c.l.bf16 %v6294_v34  ;;  %v6297_v34 = vld [vmem:[%s10680_s1 + $0x1d8] sm:$0xff]  }
  0xdd   : > { %v8033_v55 = vpop.xlane.xlu0 %933 }
  0xde   : > { %v786_v56 = vmul.f32 %v8050_v11, %v6130_v38 }
  0xdf   : > { %1152 = vadd.xlane.f32.xlu1 %v1151_v49  ;;  %v783_v49 = vmul.f32 %v8050_v11, %v6125_v32  ;;  %v6137_v32 = vunpack.c.l.bf16 %v6296_v14 }
  0xe0   : > { %1149 = vadd.xlane.f32.xlu0 %v1148_v54  ;;  %v8041_v4 = vpop.xlane.xlu1 %942  ;;  %v6295_v54 = vld [vmem:[%s10680_s1 + $0x1c8] sm:$0xff]   ;;  %v1181_v17 = vsel %vm841_vm0, %v786_v56, 0.0  ;;  %v6142_v56 = vunpack.c.h.bf16 %v6297_v34 }
  0xe1   : > { %v8045_v9 = vpop.xlane.xlu0 %939  ;;  %v6134_v58 = vunpack.c.h.bf16 %v6295_v54  ;;  %v1172_v0 = vsel %vm841_vm0, %v783_v49, 0.0 }
  0xe3   : > { %1158 = vadd.xlane.f32.xlu1 %v1157_v5  ;;  %v785_v5 = vmul.f32 %v8050_v11, %v6129_v50  ;;  %v788_v1 = vmul.f32 %v8050_v11, %v6134_v58  ;;  %v6141_v58 = vunpack.c.l.bf16 %v6297_v34 }
  0xe4   : > { %1155 = vadd.xlane.f32.xlu0 %v1154_v7  ;;  %v8058_v20 = vpop.xlane.xlu1 %948  ;;  %v6133_v7 = vunpack.c.l.bf16 %v6295_v54  ;;  %v789_v54 = vmul.f32 %v8050_v11, %v6137_v32 }
  0xe5   : > { %v8061_v26 = vpop.xlane.xlu0 %945  ;;  %v1187_v38 = vsel %vm841_vm0, %v788_v1, 0.0  ;;  %v792_v1 = vmul.f32 %v8050_v11, %v6142_v56 }
  0xe6   : > { %v787_v31 = vmul.f32 %v8050_v11, %v6133_v7 }
  0xe7   : > { %1164 = vadd.xlane.f32.xlu1 %v1163_v18  ;;  %v6138_v18 = vunpack.c.h.bf16 %v6296_v14  ;;  %v1190_v14 = vsel %vm841_vm0, %v789_v54, 0.0 }
  0xe8   : > { %1161 = vadd.xlane.f32.xlu0 %v1160_v23  ;;  %v8068_v43 = vpop.xlane.xlu1 %954  ;;  %v1178_v23 = vsel %vm841_vm0, %v785_v5, 0.0  ;;  %v1184_v49 = vsel %vm841_vm0, %v787_v31, 0.0  ;;  %v6299_v31 = vld [vmem:[%s10680_s1 + $0x1e8] sm:$0xff]  }
  0xe9   : > { %v8071_v45 = vpop.xlane.xlu0 %951  ;;  %v6150_v34 = vunpack.c.h.bf16 %v6299_v31  ;;  %v6149_v56 = vunpack.c.l.bf16 %v6299_v31 }
  0xeb   : > { %1170 = vadd.xlane.f32.xlu1 %v1169_v35  ;;  %v7547_v35 = vmov 0  }
  0xec   : > { %1167 = vadd.xlane.f32.xlu0 %v1166_v44  ;;  %v8079_v61 = vpop.xlane.xlu1 %960  ;;  %6705 = vset.pattern.permute.xlu1 %v7547_v35  ;;  %v790_v44 = vmul.f32 %v8050_v11, %v6138_v18  ;;  %v791_v18 = vmul.f32 %v8050_v11, %v6141_v58  ;;  %v6300_v58 = vld [vmem:[%s10680_s1 + $0x1f0] sm:$0xff]  }
  0xed   : > { %v8083_v2 = vpop.xlane.xlu0 %957  ;;  %6704 = vset.pattern.permute.xlu0 %v7547_v35  ;;  %v6153_v31 = vunpack.c.l.bf16 %v6300_v58 }
  0xef   : > { %1176 = vadd.xlane.f32.xlu1 %v1175_v63  ;;  %v6298_v63 = vld [vmem:[%s10680_s1 + $0x1e0] sm:$0xff]  }
  0xf0   : > { %1173 = vadd.xlane.f32.xlu0 %v1172_v0  ;;  %v8091_v19 = vpop.xlane.xlu1 %966  ;;  %v1193_v0 = vsel %vm841_vm0, %v790_v44, 0.0  ;;  %v6146_v5 = vunpack.c.h.bf16 %v6298_v63  ;;  %v1196_v44 = vsel %vm841_vm0, %v791_v18, 0.0  ;;  %v795_v18 = vmul.f32 %v8050_v11, %v6149_v56 }
  0xf1   : > { %v8094_v29 = vpop.xlane.xlu0 %963  ;;  %v797_v56 = vmul.f32 %v8050_v11, %v6153_v31  ;;  %v6303_v31 = vld [vmem:[%s10680_s1 + $0x208] sm:$0xff]  }
  0xf2   : > { %v794_v32 = vmul.f32 %v8050_v11, %v6146_v5 }
  0xf3   : > { %1182 = vadd.xlane.f32.xlu1 %v1181_v17 }
  0xf4   : > { %1179 = vadd.xlane.f32.xlu0 %v1178_v23  ;;  %v8102_v46 = vpop.xlane.xlu1 %972  ;;  %v6145_v23 = vunpack.c.l.bf16 %v6298_v63  ;;  %v1205_v63 = vsel %vm841_vm0, %v794_v32, 0.0 }
  0xf5   : > { %v8105_v50 = vpop.xlane.xlu0 %969 }
  0xf6   : > { %v793_v54 = vmul.f32 %v8050_v11, %v6145_v23  ;;  %v6154_v23 = vunpack.c.h.bf16 %v6300_v58 }
  0xf7   : > { %1188 = vadd.xlane.f32.xlu1 %v1187_v38  ;;  %v1199_v38 = vsel %vm841_vm0, %v792_v1, 0.0 }
  0xf8   : > { %1185 = vadd.xlane.f32.xlu0 %v1184_v49  ;;  %v8112_v7 = vpop.xlane.xlu1 %978 }
  0xf9   : > { %v8115_v17 = vpop.xlane.xlu0 %975 }
  0xfa   : > { %10687 = vst [vmem:[#allocation2_spill] sm:$0xff] %v8115_v17 }
  0xfb   : > { %1194 = vadd.xlane.f32.xlu1 %v1193_v0  ;;  %v796_v0 = vmul.f32 %v8050_v11, %v6150_v34 }
  0xfc   : > { %1191 = vadd.xlane.f32.xlu0 %v1190_v14  ;;  %v8123_v35 = vpop.xlane.xlu1 %984  ;;  %v1202_v14 = vsel %vm841_vm0, %v793_v54, 0.0 }
  0xfd   : > { %10688 = vst [vmem:[#allocation3_spill] sm:$0xff] %v8123_v35  ;;  %v8127_v49 = vpop.xlane.xlu0 %981  ;;  %v1211_v32 = vsel %vm841_vm0, %v796_v0, 0.0 }
  0xfe   : > { %10689 = vst [vmem:[#allocation4_spill] sm:$0xff] %v8127_v49  ;;  %v6301_v49 = vld [vmem:[%s10680_s1 + $0x1f8] sm:$0xff]  }
  0xff   : > { %1200 = vadd.xlane.f32.xlu1 %v1199_v38  ;;  %v6158_v38 = vunpack.c.h.bf16 %v6301_v49  ;;  %v6157_v58 = vunpack.c.l.bf16 %v6301_v49 }
 0x100   : > { %1197 = vadd.xlane.f32.xlu0 %v1196_v44  ;;  %v8135_v5 = vpop.xlane.xlu1 %990  ;;  %v1208_v44 = vsel %vm841_vm0, %v795_v18, 0.0 }
 0x101   : > { %10690 = vst [vmem:[#allocation5_spill] sm:$0xff] %v8135_v5  ;;  %v8138_v1 = vpop.xlane.xlu0 %987  ;;  %v6302_v5 = vld [vmem:[%s10680_s1 + $0x200] sm:$0xff]  }
 0x102   : > { %10691 = vst [vmem:[#allocation6_spill] sm:$0xff] %v8138_v1  ;;  %v798_v1 = vmul.f32 %v8050_v11, %v6154_v23  ;;  %v6162_v0 = vunpack.c.h.bf16 %v6302_v5  ;;  %v799_v23 = vmul.f32 %v8050_v11, %v6157_v58  ;;  %v6161_v49 = vunpack.c.l.bf16 %v6302_v5 }
 0x103   : > { %1206 = vadd.xlane.f32.xlu1 %v1205_v63  ;;  %v800_v63 = vmul.f32 %v8050_v11, %v6158_v38  ;;  %v6166_v58 = vunpack.c.h.bf16 %v6303_v31  ;;  %v6165_v5 = vunpack.c.l.bf16 %v6303_v31 }
 0x104   : > { %1203 = vadd.xlane.f32.xlu0 %v1202_v14  ;;  %v8145_v34 = vpop.xlane.xlu1 %996  ;;  %v1217_v18 = vsel %vm841_vm0, %v798_v1, 0.0  ;;  %v802_v38 = vmul.f32 %v8050_v11, %v6162_v0  ;;  %v1220_v1 = vsel %vm841_vm0, %v799_v23, 0.0 }
 0x105   : > { %10692 = vst [vmem:[#allocation7_spill] sm:$0xff] %v8145_v34  ;;  %v8148_v54 = vpop.xlane.xlu0 %993 }
 0x106   : > { %10693 = vst [vmem:[#allocation8_spill] sm:$0xff] %v8148_v54  ;;  %v1214_v54 = vsel %vm841_vm0, %v797_v56, 0.0 }
 0x107   : > { %1212 = vadd.xlane.f32.xlu1 %v1211_v32  ;;  %v1223_v32 = vsel %vm841_vm0, %v800_v63, 0.0 }
 0x108   : > { %1209 = vadd.xlane.f32.xlu0 %v1208_v44  ;;  %v8156_v14 = vpop.xlane.xlu1 %1002 }
 0x109   : > { %10694 = vst [vmem:[#allocation9_spill] sm:$0xff] %v8156_v14  ;;  %v8160_v34 = vpop.xlane.xlu0 %999  ;;  %v6304_v14 = vld [vmem:[%s10680_s1 + $0x210] sm:$0xff]  }
 0x10a   : > { %10695 = vst [vmem:[#allocation10_spill] sm:$0xff] %v8160_v34  ;;  %v801_v34 = vmul.f32 %v8050_v11, %v6161_v49  ;;  %v6170_v63 = vunpack.c.h.bf16 %v6304_v14  ;;  %v803_v49 = vmul.f32 %v8050_v11, %v6165_v5  ;;  %v6169_v31 = vunpack.c.l.bf16 %v6304_v14  ;;  %v6306_v5 = vld [vmem:[%s10680_s1 + $0x220] sm:$0xff]  }
 0x10b   : > { %1218 = vadd.xlane.f32.xlu1 %v1217_v18 }
 0x10c   : > { %1215 = vadd.xlane.f32.xlu0 %v1214_v54  ;;  %v8168_v44 = vpop.xlane.xlu1 %1008  ;;  %v1229_v54 = vsel %vm841_vm0, %v802_v38, 0.0  ;;  %v1226_v18 = vsel %vm841_vm0, %v801_v34, 0.0 }
 0x10d   : > { %10696 = vst [vmem:[#allocation11_spill] sm:$0xff] %v8168_v44  ;;  %v8171_v56 = vpop.xlane.xlu0 %1005  ;;  %v6305_v44 = vld [vmem:[%s10680_s1 + $0x218] sm:$0xff]  }
 0x10e   : > { %10697 = vst [vmem:[#allocation12_spill] sm:$0xff] %v8171_v56  ;;  %v804_v56 = vmul.f32 %v8050_v11, %v6166_v58  ;;  %v6174_v38 = vunpack.c.h.bf16 %v6305_v44  ;;  %v805_v58 = vmul.f32 %v8050_v11, %v6169_v31  ;;  %v6173_v14 = vunpack.c.l.bf16 %v6305_v44 }
 0x10f   : > { %1224 = vadd.xlane.f32.xlu1 %v1223_v32  ;;  %v806_v32 = vmul.f32 %v8050_v11, %v6170_v63  ;;  %v6178_v31 = vunpack.c.h.bf16 %v6306_v5  ;;  %v6177_v44 = vunpack.c.l.bf16 %v6306_v5 }
 0x110   : > { %1221 = vadd.xlane.f32.xlu0 %v1220_v1  ;;  %v8178_v0 = vpop.xlane.xlu1 %1014  ;;  %v1235_v34 = vsel %vm841_vm0, %v804_v56, 0.0  ;;  %v808_v63 = vmul.f32 %v8050_v11, %v6174_v38  ;;  %v1238_v56 = vsel %vm841_vm0, %v805_v58, 0.0 }
 0x111   : > { %10698 = vst [vmem:[#allocation13_spill] sm:$0xff] %v8178_v0  ;;  %v8181_v23 = vpop.xlane.xlu0 %1011 }
 0x112   : > { %10699 = vst [vmem:[#allocation14_spill] sm:$0xff] %v8181_v23  ;;  %v1232_v23 = vsel %vm841_vm0, %v803_v49, 0.0 }
 0x113   : > { %1230 = vadd.xlane.f32.xlu1 %v1229_v54  ;;  %v1241_v54 = vsel %vm841_vm0, %v806_v32, 0.0 }
 0x114   : > { %1227 = vadd.xlane.f32.xlu0 %v1226_v18  ;;  %v8189_v1 = vpop.xlane.xlu1 %1020 }
 0x115   : > { %10700 = vst [vmem:[#allocation15_spill] sm:$0xff] %v8189_v1  ;;  %v8193_v0 = vpop.xlane.xlu0 %1017  ;;  %v6307_v1 = vld [vmem:[%s10680_s1 + $0x228] sm:$0xff]  }
 0x116   : > { %10701 = vst [vmem:[#allocation16_spill] sm:$0xff] %v8193_v0  ;;  %v807_v0 = vmul.f32 %v8050_v11, %v6173_v14  ;;  %v6182_v32 = vunpack.c.h.bf16 %v6307_v1  ;;  %v809_v14 = vmul.f32 %v8050_v11, %v6177_v44  ;;  %v6181_v5 = vunpack.c.l.bf16 %v6307_v1  ;;  %v6309_v44 = vld [vmem:[%s10680_s1 + $0x238] sm:$0xff]  }
 0x117   : > { %1236 = vadd.xlane.f32.xlu1 %v1235_v34 }
 0x118   : > { %1233 = vadd.xlane.f32.xlu0 %v1232_v23  ;;  %v8201_v18 = vpop.xlane.xlu1 %1026  ;;  %v1247_v23 = vsel %vm841_vm0, %v808_v63, 0.0  ;;  %v1244_v34 = vsel %vm841_vm0, %v807_v0, 0.0 }
 0x119   : > { %10702 = vst [vmem:[#allocation17_spill] sm:$0xff] %v8201_v18  ;;  %v8204_v49 = vpop.xlane.xlu0 %1023  ;;  %v6308_v18 = vld [vmem:[%s10680_s1 + $0x230] sm:$0xff]  }
 0x11a   : > { %10703 = vst [vmem:[#allocation18_spill] sm:$0xff] %v8204_v49  ;;  %v810_v49 = vmul.f32 %v8050_v11, %v6178_v31  ;;  %v6186_v63 = vunpack.c.h.bf16 %v6308_v18  ;;  %v811_v31 = vmul.f32 %v8050_v11, %v6181_v5  ;;  %v6185_v1 = vunpack.c.l.bf16 %v6308_v18 }
 0x11b   : > { %1242 = vadd.xlane.f32.xlu1 %v1241_v54  ;;  %v812_v54 = vmul.f32 %v8050_v11, %v6182_v32  ;;  %v6190_v5 = vunpack.c.h.bf16 %v6309_v44  ;;  %v6189_v18 = vunpack.c.l.bf16 %v6309_v44 }
 0x11c   : > { %1239 = vadd.xlane.f32.xlu0 %v1238_v56  ;;  %v8211_v38 = vpop.xlane.xlu1 %1032  ;;  %v1253_v0 = vsel %vm841_vm0, %v810_v49, 0.0  ;;  %v814_v32 = vmul.f32 %v8050_v11, %v6186_v63  ;;  %v1256_v49 = vsel %vm841_vm0, %v811_v31, 0.0 }
 0x11d   : > { %10704 = vst [vmem:[#allocation19_spill] sm:$0xff] %v8211_v38  ;;  %v8214_v58 = vpop.xlane.xlu0 %1029 }
 0x11e   : > { %10705 = vst [vmem:[#allocation20_spill] sm:$0xff] %v8214_v58  ;;  %v1250_v58 = vsel %vm841_vm0, %v809_v14, 0.0 }
 0x11f   : > { %1248 = vadd.xlane.f32.xlu1 %v1247_v23  ;;  %v1259_v23 = vsel %vm841_vm0, %v812_v54, 0.0 }
 0x120   : > { %1245 = vadd.xlane.f32.xlu0 %v1244_v34  ;;  %v8222_v56 = vpop.xlane.xlu1 %1038 }
 0x121   : > { %10706 = vst [vmem:[#allocation21_spill] sm:$0xff] %v8222_v56  ;;  %v8226_v38 = vpop.xlane.xlu0 %1035  ;;  %v6310_v56 = vld [vmem:[%s10680_s1 + $0x240] sm:$0xff]  }
 0x122   : > { %10707 = vst [vmem:[#allocation22_spill] sm:$0xff] %v8226_v38  ;;  %v813_v38 = vmul.f32 %v8050_v11, %v6185_v1  ;;  %v6194_v54 = vunpack.c.h.bf16 %v6310_v56  ;;  %v815_v1 = vmul.f32 %v8050_v11, %v6189_v18  ;;  %v6193_v44 = vunpack.c.l.bf16 %v6310_v56  ;;  %v6312_v18 = vld [vmem:[%s10680_s1 + $0x250] sm:$0xff]  }
 0x123   : > { %1254 = vadd.xlane.f32.xlu1 %v1253_v0 }
 0x124   : > { %1251 = vadd.xlane.f32.xlu0 %v1250_v58  ;;  %v8234_v34 = vpop.xlane.xlu1 %1044  ;;  %v1265_v58 = vsel %vm841_vm0, %v814_v32, 0.0  ;;  %v1262_v0 = vsel %vm841_vm0, %v813_v38, 0.0 }
 0x125   : > { %10708 = vst [vmem:[#allocation23_spill] sm:$0xff] %v8234_v34  ;;  %v8237_v14 = vpop.xlane.xlu0 %1041  ;;  %v6311_v34 = vld [vmem:[%s10680_s1 + $0x248] sm:$0xff]  }
 0x126   : > { %10709 = vst [vmem:[#allocation24_spill] sm:$0xff] %v8237_v14  ;;  %v816_v14 = vmul.f32 %v8050_v11, %v6190_v5  ;;  %v6198_v32 = vunpack.c.h.bf16 %v6311_v34  ;;  %v817_v5 = vmul.f32 %v8050_v11, %v6193_v44  ;;  %v6197_v56 = vunpack.c.l.bf16 %v6311_v34 }
 0x127   : > { %1260 = vadd.xlane.f32.xlu1 %v1259_v23  ;;  %v818_v23 = vmul.f32 %v8050_v11, %v6194_v54  ;;  %v6202_v44 = vunpack.c.h.bf16 %v6312_v18  ;;  %v6201_v34 = vunpack.c.l.bf16 %v6312_v18 }
 0x128   : > { %1257 = vadd.xlane.f32.xlu0 %v1256_v49  ;;  %v8244_v63 = vpop.xlane.xlu1 %1050  ;;  %v1271_v38 = vsel %vm841_vm0, %v816_v14, 0.0  ;;  %v820_v54 = vmul.f32 %v8050_v11, %v6198_v32  ;;  %v1274_v14 = vsel %vm841_vm0, %v817_v5, 0.0 }
 0x129   : > { %10710 = vst [vmem:[#allocation25_spill] sm:$0xff] %v8244_v63  ;;  %v8247_v31 = vpop.xlane.xlu0 %1047 }
 0x12a   : > { %10711 = vst [vmem:[#allocation26_spill] sm:$0xff] %v8247_v31  ;;  %v1268_v31 = vsel %vm841_vm0, %v815_v1, 0.0 }
 0x12b   : > { %1266 = vadd.xlane.f32.xlu1 %v1265_v58  ;;  %v1277_v58 = vsel %vm841_vm0, %v818_v23, 0.0 }
 0x12c   : > { %1263 = vadd.xlane.f32.xlu0 %v1262_v0  ;;  %v8255_v49 = vpop.xlane.xlu1 %1056 }
 0x12d   : > { %10712 = vst [vmem:[#allocation27_spill] sm:$0xff] %v8255_v49  ;;  %v8259_v63 = vpop.xlane.xlu0 %1053  ;;  %v6313_v49 = vld [vmem:[%s10680_s1 + $0x258] sm:$0xff]  }
 0x12e   : > { %10713 = vst [vmem:[#allocation28_spill] sm:$0xff] %v8259_v63  ;;  %v819_v63 = vmul.f32 %v8050_v11, %v6197_v56  ;;  %v6206_v23 = vunpack.c.h.bf16 %v6313_v49  ;;  %v821_v56 = vmul.f32 %v8050_v11, %v6201_v34  ;;  %v6205_v18 = vunpack.c.l.bf16 %v6313_v49  ;;  %v6315_v34 = vld [vmem:[%s10680_s1 + $0x268] sm:$0xff]  }
 0x12f   : > { %1272 = vadd.xlane.f32.xlu1 %v1271_v38 }
 0x130   : > { %1269 = vadd.xlane.f32.xlu0 %v1268_v31  ;;  %v8267_v0 = vpop.xlane.xlu1 %1062  ;;  %v1283_v31 = vsel %vm841_vm0, %v820_v54, 0.0  ;;  %v1280_v38 = vsel %vm841_vm0, %v819_v63, 0.0 }
 0x131   : > { %10714 = vst [vmem:[#allocation29_spill] sm:$0xff] %v8267_v0  ;;  %v8270_v1 = vpop.xlane.xlu0 %1059  ;;  %v6314_v0 = vld [vmem:[%s10680_s1 + $0x260] sm:$0xff]  }
 0x132   : > { %10715 = vst [vmem:[#allocation30_spill] sm:$0xff] %v8270_v1  ;;  %v822_v1 = vmul.f32 %v8050_v11, %v6202_v44  ;;  %v6210_v54 = vunpack.c.h.bf16 %v6314_v0  ;;  %v823_v44 = vmul.f32 %v8050_v11, %v6205_v18  ;;  %v6209_v49 = vunpack.c.l.bf16 %v6314_v0 }
 0x133   : > { %1278 = vadd.xlane.f32.xlu1 %v1277_v58  ;;  %v824_v58 = vmul.f32 %v8050_v11, %v6206_v23  ;;  %v6214_v18 = vunpack.c.h.bf16 %v6315_v34  ;;  %v6213_v0 = vunpack.c.l.bf16 %v6315_v34 }
 0x134   : > { %1275 = vadd.xlane.f32.xlu0 %v1274_v14  ;;  %v8277_v32 = vpop.xlane.xlu1 %1068  ;;  %v1289_v63 = vsel %vm841_vm0, %v822_v1, 0.0  ;;  %v826_v23 = vmul.f32 %v8050_v11, %v6210_v54  ;;  %v1292_v1 = vsel %vm841_vm0, %v823_v44, 0.0 }
 0x135   : > { %10716 = vst [vmem:[#allocation31_spill] sm:$0xff] %v8277_v32  ;;  %v8280_v5 = vpop.xlane.xlu0 %1065 }
 0x136   : > { %10717 = vst [vmem:[#allocation32_spill] sm:$0xff] %v8280_v5  ;;  %v1286_v5 = vsel %vm841_vm0, %v821_v56, 0.0 }
 0x137   : > { %1284 = vadd.xlane.f32.xlu1 %v1283_v31  ;;  %v1295_v31 = vsel %vm841_vm0, %v824_v58, 0.0 }
 0x138   : > { %1281 = vadd.xlane.f32.xlu0 %v1280_v38  ;;  %v8288_v14 = vpop.xlane.xlu1 %1074 }
 0x139   : > { %10718 = vst [vmem:[#allocation33_spill] sm:$0xff] %v8288_v14  ;;  %v8292_v32 = vpop.xlane.xlu0 %1071  ;;  %v6316_v14 = vld [vmem:[%s10680_s1 + $0x270] sm:$0xff]  }
 0x13a   : > { %10719 = vst [vmem:[#allocation34_spill] sm:$0xff] %v8292_v32  ;;  %v825_v32 = vmul.f32 %v8050_v11, %v6209_v49  ;;  %v6218_v58 = vunpack.c.h.bf16 %v6316_v14  ;;  %v827_v49 = vmul.f32 %v8050_v11, %v6213_v0  ;;  %v6217_v34 = vunpack.c.l.bf16 %v6316_v14 }
 0x13b   : > { %1290 = vadd.xlane.f32.xlu1 %v1289_v63 }
 0x13c   : > { %1287 = vadd.xlane.f32.xlu0 %v1286_v5  ;;  %v8300_v38 = vpop.xlane.xlu1 %1080  ;;  %v1301_v5 = vsel %vm841_vm0, %v826_v23, 0.0  ;;  %v1298_v63 = vsel %vm841_vm0, %v825_v32, 0.0  ;;  %v830_v23 = vmul.f32 %v8050_v11, %v6218_v58  ;;  %v1304_v0 = vsel %vm841_vm0, %v827_v49, 0.0  ;;  %v6318_v58 = vld [vmem:[%s10680_s1 + $0x280] sm:$0xff]  }
 0x13d   : > { %10720 = vst [vmem:[#allocation35_spill] sm:$0xff] %v8300_v38  ;;  %v8303_v56 = vpop.xlane.xlu0 %1077  ;;  %v6317_v38 = vld [vmem:[%s10680_s1 + $0x278] sm:$0xff]   ;;  %v6225_v35 = vunpack.c.l.bf16 %v6318_v58 }
 0x13e   : > { %10721 = vst [vmem:[#allocation36_spill] sm:$0xff] %v8303_v56  ;;  %v828_v56 = vmul.f32 %v8050_v11, %v6214_v18  ;;  %v6222_v32 = vunpack.c.h.bf16 %v6317_v38  ;;  %v6221_v17 = vunpack.c.l.bf16 %v6317_v38 }
 0x13f   : > { %1296 = vadd.xlane.f32.xlu1 %v1295_v31  ;;  %v1348_v31 = vld [vmem:[%s10681_s2 + $0x10] sm:$0xff] }
 0x140   : > { %1293 = vadd.xlane.f32.xlu0 %v1292_v1  ;;  %v8310_v54 = vpop.xlane.xlu1 %1086  ;;  %v1346_v1 = vld [vmem:[%s10681_s2] sm:$0xff]  ;;  %v1307_v14 = vsel %vm841_vm0, %v828_v56, 0.0  ;;  %v1313_v56 = vsel %vm841_vm0, %v830_v23, 0.0  ;;  %v832_v49 = vmul.f32 %v8050_v11, %v6222_v32  ;;  %v1349_v23 = vld [vmem:[%s10681_s2 + $0x18] sm:$0xff] }
 0x141   : > { %10722 = vst [vmem:[#allocation37_spill] sm:$0xff] %v8310_v54  ;;  %v8313_v44 = vpop.xlane.xlu0 %1083 }
 0x142   : > { %10723 = vst [vmem:[#allocation38_spill] sm:$0xff] %v8313_v44  ;;  %v829_v44 = vmul.f32 %v8050_v11, %v6217_v34 }
 0x143   : > { %1302 = vadd.xlane.f32.xlu1 %v1301_v5  ;;  %v1516_v5 = vadd.f32 %v1348_v31, %v7864_v12  ;;  %v831_v31 = vmul.f32 %v8050_v11, %v6221_v17 }
 0x144   : > { %1299 = vadd.xlane.f32.xlu0 %v1298_v63  ;;  %v8327_v18 = vpop.xlane.xlu1 %1092  ;;  %v1347_v63 = vld [vmem:[%s10681_s2 + $0x8] sm:$0xff]  ;;  %v1310_v12 = vsel %vm841_vm0, %v829_v44, 0.0 }
 0x145   : > { %10724 = vst [vmem:[#allocation39_spill] sm:$0xff] %v8327_v18  ;;  %v8331_v54 = vpop.xlane.xlu0 %1089  ;;  %v1514_v18 = vadd.f32 %v1346_v1, %v7868_v15  ;;  %v6319_v15 = vld [vmem:[%s10680_s1 + $0x288] sm:$0xff]   ;;  %v5639_v1 = vmul.f32 -1.442695, %v1516_v5 }
 0x146   : > { %10725 = vst [vmem:[#allocation40_spill] sm:$0xff] %v8331_v54  ;;  %v6226_v54 = vunpack.c.h.bf16 %v6318_v58  ;;  %v1351_v44 = vld [vmem:[%s10681_s2 + $0x28] sm:$0xff]  ;;  %v6230_v17 = vunpack.c.h.bf16 %v6319_v15  ;;  %v1350_v58 = vld [vmem:[%s10681_s2 + $0x20] sm:$0xff] }
 0x147   : > { %1308 = vadd.xlane.f32.xlu1 %v1307_v14  ;;  %v1515_v14 = vadd.f32 %v1347_v63, %v7880_v24  ;;  %v5637_v32 = vmul.f32 -1.442695, %v1514_v18  ;;  %v1319_v24 = vsel %vm841_vm0, %v832_v49, 0.0  ;;  %v1316_v63 = vsel %vm841_vm0, %v831_v31, 0.0  ;;  %v1353_v49 = vld [vmem:[%s10681_s2 + $0x38] sm:$0xff] }
 0x148   : > { %1305 = vadd.xlane.f32.xlu0 %v1304_v0  ;;  %v8344_v34 = vpop.xlane.xlu1 %1098  ;;  %v6229_v0 = vunpack.c.l.bf16 %v6319_v15  ;;  %v834_v18 = vmul.f32 %v8050_v11, %v6226_v54  ;;  %6834 = vpow2.f32 %v5639_v1  ;;  %v6320_v15 = vld [vmem:[%s10680_s1 + $0x290] sm:$0xff]   ;;  %v1518_v31 = vadd.f32 %v1350_v58, %v7891_v33 }
 0x149   : > { %10726 = vst [vmem:[#allocation41_spill] sm:$0xff] %v8344_v34  ;;  %v8347_v38 = vpop.xlane.xlu0 %1095  ;;  %6836 = vpow2.f32 %v5637_v32  ;;  %v1352_v54 = vld [vmem:[%s10681_s2 + $0x30] sm:$0xff]  ;;  %v6234_v32 = vunpack.c.h.bf16 %v6320_v15  ;;  %v6233_v33 = vunpack.c.l.bf16 %v6320_v15 }
 0x14a   : > { %10727 = vst [vmem:[#allocation42_spill] sm:$0xff] %v8347_v38  ;;  %v833_v38 = vmul.f32 %v8050_v11, %v6225_v35  ;;  %v836_v35 = vmul.f32 %v8050_v11, %v6230_v17  ;;  %v1521_v17 = vadd.f32 %v1353_v49, %v7899_v39  ;;  %v1354_v39 = vld [vmem:[%s10681_s2 + $0x40] sm:$0xff] }
 0x14b   : > { %1314 = vadd.xlane.f32.xlu1 %v1313_v56  ;;  %v1517_v56 = vadd.f32 %v1349_v23, %v7876_v21  ;;  %v835_v21 = vmul.f32 %v8050_v11, %v6229_v0  ;;  %v6321_v0 = vld [vmem:[%s10680_s1 + $0x298] sm:$0xff]   ;;  %v838_v15 = vmul.f32 %v8050_v11, %v6234_v32  ;;  %v837_v49 = vmul.f32 %v8050_v11, %v6233_v33  ;;  %v1356_v32 = vld [vmem:[%s10681_s2 + $0x50] sm:$0xff] }
 0x14c   : > { %1311 = vadd.xlane.f32.xlu0 %v1310_v12  ;;  %v8363_v5 = vpop.xlane.xlu1 %1104  ;;  %v5638_v12 = vmul.f32 -1.442695, %v1515_v14  ;;  %v1322_v14 = vsel %vm841_vm0, %v833_v38, 0.0  ;;  %v1520_v38 = vadd.f32 %v1352_v54, %v7902_v41  ;;  %v6237_v41 = vunpack.c.l.bf16 %v6321_v0 }
 0x14d   : > { %10728 = vst [vmem:[#allocation43_spill] sm:$0xff] %v8363_v5  ;;  %v8367_v34 = vpop.xlane.xlu0 %1101  ;;  %v1519_v5 = vadd.f32 %v1351_v44, %v7887_v30  ;;  %v1325_v30 = vsel %vm841_vm0, %v834_v18, 0.0  ;;  %v5640_v44 = vmul.f32 -1.442695, %v1517_v56  ;;  %v1331_v18 = vsel %vm841_vm0, %v836_v35, 0.0 }
 0x14e   : > { %6838 = vpow2.f32 %v5638_v12  ;;  %v1328_v56 = vsel %vm841_vm0, %v835_v21, 0.0  ;;  %v5644_v54 = vmul.f32 -1.442695, %v1521_v17  ;;  %v1357_v21 = vld [vmem:[%s10681_s2 + $0x58] sm:$0xff] }
 0x14f   : > { %1320 = vadd.xlane.f32.xlu1 %v1319_v24  ;;  %v5642_v58 = vmul.f32 -1.442695, %v1519_v5  ;;  %v1355_v24 = vld [vmem:[%s10681_s2 + $0x48] sm:$0xff]  ;;  %6840 = vpow2.f32 %v5640_v44  ;;  %v1334_v44 = vsel %vm841_vm0, %v837_v49, 0.0  ;;  %v1524_v49 = vadd.f32 %v1356_v32, %v7924_v60  ;;  %v1361_v60 = vld [vmem:[%s10681_s2 + $0x78] sm:$0xff] }
 0x150   : > { %1317 = vadd.xlane.f32.xlu0 %v1316_v63  ;;  %v8385_v1 = vpop.xlane.xlu1 %1110  ;;  %v5641_v63 = vmul.f32 -1.442695, %v1518_v31  ;;  %v6238_v31 = vunpack.c.h.bf16 %v6321_v0  ;;  %v1523_v35 = vadd.f32 %v1355_v24, %v7908_v48  ;;  %v1337_v48 = vsel %vm841_vm0, %v838_v15, 0.0 }
 0x151   : > { %v8389_v23 = vpop.xlane.xlu0 %1107  ;;  %6842 = vpow2.f32 %v5642_v58  ;;  %v839_v58 = vmul.f32 %v8050_v11, %v6237_v41 }
 0x152   : > { %6844 = vpow2.f32 %v5641_v63  ;;  %v840_v0 = vmul.f32 %v8050_v11, %v6238_v31  ;;  %v1525_v63 = vadd.f32 %v1357_v21, %v7920_v57 }
 0x153   : > { %1326 = vadd.xlane.f32.xlu1 %v1325_v30  ;;  %v6835_v30 = vpop.eup %6834  ;;  %6846 = vpow2.f32 %v5644_v54  ;;  %v1340_v54 = vsel %vm841_vm0, %v839_v58, 0.0 }
 0x154   : > { %1323 = vadd.xlane.f32.xlu0 %v1322_v14  ;;  %v8404_v12 = vpop.xlane.xlu1 %1116  ;;  %v5643_v14 = vmul.f32 -1.442695, %v1520_v38  ;;  %v6837_v24 = vpop.eup %6836  ;;  %v1359_v38 = vld [vmem:[%s10681_s2 + $0x68] sm:$0xff]  ;;  %v1343_v41 = vsel %vm841_vm0, %v840_v0, 0.0  ;;  %v5648_v21 = vmul.f32 -1.442695, %v1525_v63 }
 0x155   : > { %10729 = vst [vmem:[#allocation44_spill] sm:$0xff] %v8404_v12  ;;  %v8406_v5 = vpop.xlane.xlu0 %1113  ;;  %v1522_v12 = vadd.f32 %v1354_v39, %v7912_v51  ;;  %v5646_v51 = vmul.f32 -1.442695, %v1523_v35  ;;  %v2186_v11 = vadd.f32 1.0, %v6837_v24  ;;  %v1527_v31 = vadd.f32 %v1359_v38, %v7931_v3  ;;  %v1363_v38 = vld [vmem:[%s10681_s2 + $0x88] sm:$0xff] }
 0x156   : > { %6848 = vpow2.f32 %v5643_v14  ;;  %v5647_v3 = vmul.f32 -1.442695, %v1524_v49  ;;  %v1529_v24 = vadd.f32 %v1361_v60, %v7943_v13  ;;  %v1362_v49 = vld [vmem:[%s10681_s2 + $0x80] sm:$0xff] }
 0x157   : > { %1332 = vadd.xlane.f32.xlu1 %v1331_v18  ;;  %v2188_v18 = vadd.f32 1.0, %v6835_v30  ;;  %v5645_v15 = vmul.f32 -1.442695, %v1522_v12  ;;  %6850 = vpow2.f32 %v5646_v51  ;;  %v1530_v60 = vadd.f32 %v1362_v49, %v7956_v28 }
 0x158   : > { %1329 = vadd.xlane.f32.xlu0 %v1328_v56  ;;  %v8418_v33 = vpop.xlane.xlu1 %1122  ;;  %v1358_v56 = vld [vmem:[%s10681_s2 + $0x60] sm:$0xff]  ;;  %v6839_v39 = vpop.eup %6838 }
 0x159   : > { %v8422_v17 = vpop.xlane.xlu0 %1119  ;;  %v1526_v30 = vadd.f32 %v1358_v56, %v7935_v6  ;;  %6852 = vrcp.f32 %v2188_v18  ;;  %v2187_v12 = vadd.f32 1.0, %v6839_v39  ;;  %v6841_v14 = vpop.eup %6840 }
 0x15a   : > { %6854 = vpow2.f32 %v5645_v15  ;;  %v2189_v63 = vadd.f32 1.0, %v6841_v14 }
 0x15b   : > { %1338 = vadd.xlane.f32.xlu1 %v1337_v48  ;;  %v6843_v32 = vpop.eup %6842  ;;  %6856 = vrcp.f32 %v2186_v11  ;;  %v5650_v48 = vmul.f32 -1.442695, %v1527_v31  ;;  %v5649_v51 = vmul.f32 -1.442695, %v1526_v30 }
 0x15c   : > { %1335 = vadd.xlane.f32.xlu0 %v1334_v44  ;;  %v8435_v57 = vpop.xlane.xlu1 %1128  ;;  %v1360_v44 = vld [vmem:[%s10681_s2 + $0x70] sm:$0xff]  ;;  %v6845_v58 = vpop.eup %6844  ;;  %6858 = vpow2.f32 %v5648_v21  ;;  %v2191_v56 = vadd.f32 1.0, %v6843_v32  ;;  %v1367_v32 = vld [vmem:[%s10681_s2 + $0xa8] sm:$0xff] }
 0x15d   : > { %v8439_v35 = vpop.xlane.xlu0 %1125  ;;  %6860 = vrcp.f32 %v2187_v12  ;;  %v6847_v18 = vpop.eup %6846  ;;  %v1528_v39 = vadd.f32 %v1360_v44, %v7946_v16  ;;  %v2190_v15 = vadd.f32 1.0, %v6845_v58  ;;  %v1365_v16 = vld [vmem:[%s10681_s2 + $0x98] sm:$0xff] }
 0x15e   : > { %10730 = vst [vmem:[#allocation45_spill] sm:$0xff] %v8439_v35  ;;  %6862 = vpow2.f32 %v5647_v3  ;;  %v2193_v21 = vadd.f32 1.0, %v6847_v18  ;;  %v1535_v18 = vadd.f32 %v1367_v32, %v7975_v47 }
 0x15f   : > { %1344 = vadd.xlane.f32.xlu1 %v1343_v41  ;;  %6864 = vpow2.f32 %v5650_v48  ;;  %v5652_v41 = vmul.f32 -1.442695, %v1529_v24  ;;  %v5651_v12 = vmul.f32 -1.442695, %v1528_v39  ;;  %v1533_v24 = vadd.f32 %v1365_v16, %v7964_v36  ;;  %v1366_v16 = vld [vmem:[%s10681_s2 + $0xa0] sm:$0xff] }
 0x160   : > { %1341 = vadd.xlane.f32.xlu0 %v1340_v54  ;;  %v8448_v0 = vpop.xlane.xlu1 %1134  ;;  %v6849_v31 = vpop.eup %6848  ;;  %6866 = vpow2.f32 %v5649_v51  ;;  %v1531_v54 = vadd.f32 %v1363_v38, %v7952_v25  ;;  %v5653_v38 = vmul.f32 -1.442695, %v1530_v60 }
 0x161   : > { %v8450_v6 = vpop.xlane.xlu0 %1131  ;;  %6868 = vrcp.f32 %v2189_v63  ;;  %v6851_v30 = vpop.eup %6850  ;;  %v2192_v3 = vadd.f32 1.0, %v6849_v31 }
 0x162   : > { %6870 = vrcp.f32 %v2191_v56  ;;  %v5654_v58 = vmul.f32 -1.442695, %v1531_v54  ;;  %v2195_v63 = vadd.f32 1.0, %v6851_v30  ;;  %v1369_v54 = vld [vmem:[%s10681_s2 + $0xb8] sm:$0xff] }
 0x163   : > { %v6853_v14 = vpop.eup %6852  ;;  %6872 = vrcp.f32 %v2190_v15  ;;  %v1364_v15 = vld [vmem:[%s10681_s2 + $0x90] sm:$0xff] }
 0x164   : > { %v8460_v11 = vpop.xlane.xlu1 %1140  ;;  %v6855_v44 = vpop.eup %6854  ;;  %6874 = vpow2.f32 %v5652_v41  ;;  %v5656_v41 = vmul.f32 -1.442695, %v1533_v24  ;;  %v1532_v60 = vadd.f32 %v1364_v15, %v7968_v40  ;;  %v1534_v40 = vadd.f32 %v1366_v16, %v7979_v52  ;;  %v1370_v52 = vld [vmem:[%s10681_s2 + $0xc0] sm:$0xff] }
 0x165   : > { %v8462_v13 = vpop.xlane.xlu0 %1137  ;;  %v6857_v51 = vpop.eup %6856  ;;  %6876 = vrcp.f32 %v2193_v21  ;;  %v2194_v39 = vadd.f32 1.0, %v6855_v44  ;;  %v1537_v44 = vadd.f32 %v1369_v54, %v7987_v59  ;;  %v1368_v59 = vld [vmem:[%s10681_s2 + $0xb0] sm:$0xff] }
 0x166   : > { %v6859_v28 = vpop.eup %6858  ;;  %6878 = vpow2.f32 %v5651_v12  ;;  %v5658_v12 = vmul.f32 -1.442695, %v1535_v18  ;;  %v5657_v16 = vmul.f32 -1.442695, %v1534_v40 }
 0x167   : > { %v6861_v56 = vpop.eup %6860  ;;  %6880 = vrcp.f32 %v2192_v3  ;;  %v2197_v47 = vadd.f32 1.0, %v6859_v28  ;;  %v5660_v35 = vmul.f32 -1.442695, %v1537_v44 }
 0x168   : > { %v8472_v48 = vpop.xlane.xlu1 %1146  ;;  %v6863_v36 = vpop.eup %6862  ;;  %6882 = vpow2.f32 %v5654_v58  ;;  %v1371_v58 = vld [vmem:[%s10681_s2 + $0xc8] sm:$0xff] }
 0x169   : > { %v8474_v25 = vpop.xlane.xlu0 %1143  ;;  %v6865_v21 = vpop.eup %6864  ;;  %6884 = vrcp.f32 %v2195_v63  ;;  %v2196_v32 = vadd.f32 1.0, %v6863_v36  ;;  %v5655_v36 = vmul.f32 -1.442695, %v1532_v60  ;;  %v1373_v60 = vld [vmem:[%s10681_s2 + $0xd8] sm:$0xff] }
 0x16a   : > { %v6867_v30 = vpop.eup %6866  ;;  %6886 = vpow2.f32 %v5653_v38  ;;  %v2199_v38 = vadd.f32 1.0, %v6865_v21 }
 0x16b   : > { %v6869_v3 = vpop.eup %6868  ;;  %6888 = vrcp.f32 %v2194_v39  ;;  %v2198_v39 = vadd.f32 1.0, %v6867_v30  ;;  %v1536_v30 = vadd.f32 %v1368_v59, %v7990_v62  ;;  %v1375_v62 = vld [vmem:[%s10681_s2 + $0xe8] sm:$0xff]  ;;  %v1541_v59 = vadd.f32 %v1373_v60, %v8008_v22 }
 0x16c   : > { %v8481_v49 = vpop.xlane.xlu1 %1152  ;;  %v8500_v28 = vpop.eup %6870  ;;  %6890 = vpow2.f32 %v5656_v41 }
 0x16d   : > { %v8483_v31 = vpop.xlane.xlu0 %1149  ;;  %v6873_v18 = vpop.eup %6872  ;;  %6892 = vrcp.f32 %v2197_v47 }
 0x16e   : > { %v6875_v15 = vpop.eup %6874  ;;  %6894 = vpow2.f32 %v5658_v12 }
 0x16f   : > { %v8507_v54 = vpop.eup %6876  ;;  %6896 = vrcp.f32 %v2196_v32  ;;  %v2201_v12 = vadd.f32 1.0, %v6875_v15 }
 0x170   : > { %v8496_v24 = vpop.xlane.xlu1 %1158  ;;  %2865 = vperm.xlu1 %6705, %v6861_v56   ;;  %v1539_v56 = vadd.f32 %v1371_v58, %v7997_v8  ;;  %v6879_v47 = vpop.eup %6878  ;;  %6898 = vrcp.f32 %v2199_v38 }
 0x171   : > { %v8498_v63 = vpop.xlane.xlu0 %1155  ;;  %v8517_v8 = vpop.eup %6880  ;;  %6900 = vrcp.f32 %v2198_v39  ;;  %v5659_v39 = vmul.f32 -1.442695, %v1536_v30 }
 0x172   : > { %v6883_v32 = vpop.eup %6882  ;;  %6902 = vpow2.f32 %v5655_v36  ;;  %v5662_v44 = vmul.f32 -1.442695, %v1539_v56 }
 0x173   : > { %v6885_v58 = vpop.eup %6884  ;;  %6904 = vpow2.f32 %v5660_v35  ;;  %v1372_v35 = vld [vmem:[%s10681_s2 + $0xd0] sm:$0xff] }
 0x174   : > { %v8512_v41 = vpop.xlane.xlu1 %1164  ;;  %2870 = vperm.xlu1 %6705, %v6853_v14   ;;  %v1538_v14 = vadd.f32 %v1370_v52, %v8000_v10  ;;  %v6887_v40 = vpop.eup %6886  ;;  %6906 = vpow2.f32 %v5657_v16  ;;  %v2203_v10 = vadd.f32 1.0, %v6883_v32  ;;  %v1377_v52 = vld [vmem:[%s10681_s2 + $0xf8] sm:$0xff]  ;;  %v1374_v16 = vld [vmem:[%s10681_s2 + $0xe0] sm:$0xff]  ;;  %v5664_v32 = vmul.f32 -1.442695, %v1541_v59 }
 0x175   : > { %v8514_v21 = vpop.xlane.xlu0 %1161  ;;  %v8531_v15 = vpop.eup %6888  ;;  %6908 = vrcp.f32 %v2201_v12  ;;  %v2202_v22 = vadd.f32 1.0, %v6887_v40  ;;  %v1542_v40 = vadd.f32 %v1374_v16, %v8023_v42 }
 0x176   : > { %10731 = vst [vmem:[#allocation46_spill] sm:$0xff] %v8514_v21  ;;  %2860 = vperm.xlu0 %6704, %v6857_v51   ;;  %v2200_v21 = vadd.f32 1.0, %v6879_v47  ;;  %v6891_v36 = vpop.eup %6890  ;;  %6910 = vpow2.f32 %v5662_v44  ;;  %v5661_v56 = vmul.f32 -1.442695, %v1538_v14  ;;  %v1545_v14 = vadd.f32 %v1377_v52, %v8030_v53 }
 0x177   : > { %v6893_v47 = vpop.eup %6892 }
 0x178   : > { %v8526_v51 = vpop.xlane.xlu1 %1170  ;;  %2875 = vperm.xlu1 %6705, %v6869_v3   ;;  %v1543_v3 = vadd.f32 %v1375_v62, %v8020_v37  ;;  %6912 = vrcp.f32 %v2200_v21  ;;  %v6895_v60 = vpop.eup %6894  ;;  %v1540_v37 = vadd.f32 %v1372_v35, %v8012_v27  ;;  %v2205_v21 = vadd.f32 1.0, %v6891_v36 }
 0x179   : > { %v8528_v38 = vpop.xlane.xlu0 %1167  ;;  %6914 = vpow2.f32 %v5659_v39  ;;  %v8548_v44 = vpop.eup %6896  ;;  %v2207_v27 = vadd.f32 1.0, %v6895_v60  ;;  %v5668_v42 = vmul.f32 -1.442695, %v1545_v14 }
 0x17a   : > { %10732 = vst [vmem:[#allocation47_spill] sm:$0xff] %v8528_v38  ;;  %2905 = vperm.xlu0 %6704, %v6885_v58   ;;  %6916 = vrcp.f32 %v2203_v10  ;;  %v6899_v58 = vpop.eup %6898  ;;  %v5666_v62 = vmul.f32 -1.442695, %v1543_v3  ;;  %v5663_v35 = vmul.f32 -1.442695, %v1540_v37  ;;  %v1376_v3 = vld [vmem:[%s10681_s2 + $0xf0] sm:$0xff] }
 0x17b   : > { %6918 = vpow2.f32 %v5661_v56  ;;  %v8555_v39 = vpop.eup %6900 }
 0x17c   : > { %v8543_v30 = vpop.xlane.xlu1 %1176  ;;  %2880 = vperm.xlu1 %6705, %v6873_v18   ;;  %v1379_v18 = vld [vmem:[%s10681_s2 + $0x108] sm:$0xff]  ;;  %6920 = vrcp.f32 %v2202_v22  ;;  %v6903_v53 = vpop.eup %6902 }
 0x17d   : > { %v8545_v12 = vpop.xlane.xlu0 %1173  ;;  %6922 = vpow2.f32 %v5664_v32  ;;  %v6905_v36 = vpop.eup %6904  ;;  %v1547_v56 = vadd.f32 %v1379_v18, %v8041_v4  ;;  %v2204_v16 = vadd.f32 1.0, %v6903_v53 }
 0x17e   : > { %10733 = vst [vmem:[#allocation48_spill] sm:$0xff] %v8545_v12  ;;  %2915 = vperm.xlu0 %6704, %v6893_v47   ;;  %6924 = vrcp.f32 %v2205_v21  ;;  %v6907_v52 = vpop.eup %6906  ;;  %v5665_v47 = vmul.f32 -1.442695, %v1542_v40  ;;  %v2209_v37 = vadd.f32 1.0, %v6905_v36  ;;  %v1544_v21 = vadd.f32 %v1376_v3, %v8033_v55  ;;  %v1380_v55 = vld [vmem:[%s10681_s2 + $0x110] sm:$0xff] }
 0x17f   : > { %6926 = vpow2.f32 %v5666_v62  ;;  %v6909_v22 = vpop.eup %6908  ;;  %v1381_v62 = vld [vmem:[%s10681_s2 + $0x118] sm:$0xff] }
 0x180   : > { %v8557_v59 = vpop.xlane.xlu1 %1182  ;;  %2885 = vperm.xlu1 %6705, %v8500_v28   ;;  %v1378_v28 = vld [vmem:[%s10681_s2 + $0x100] sm:$0xff]  ;;  %6928 = vrcp.f32 %v2207_v27  ;;  %v6911_v4 = vpop.eup %6910 }
 0x181   : > { %v8560_v10 = vpop.xlane.xlu0 %1179  ;;  %6930 = vpow2.f32 %v5663_v35  ;;  %v1546_v40 = vadd.f32 %v1378_v28, %v8045_v9  ;;  %v2211_v53 = vadd.f32 1.0, %v6911_v4  ;;  %v1549_v9 = vadd.f32 %v1381_v62, %v8058_v20 }
 0x182   : > { %2925 = vperm.xlu0 %6704, %v6899_v58   ;;  %v8575_v14 = vpop.eup %6912  ;;  %6932 = vpow2.f32 %v5668_v42  ;;  %v5670_v58 = vmul.f32 -1.442695, %v1547_v56  ;;  %v5667_v56 = vmul.f32 -1.442695, %v1544_v21 }
 0x183   : > { %v6915_v18 = vpop.eup %6914  ;;  %6934 = vpow2.f32 %v5665_v47  ;;  %v1383_v47 = vld [vmem:[%s10681_s2 + $0x128] sm:$0xff] }
 0x184   : > { %v8569_v60 = vpop.xlane.xlu1 %1188  ;;  %2890 = vperm.xlu1 %6705, %v8517_v8   ;;  %v2206_v8 = vadd.f32 1.0, %v6907_v52  ;;  %v6917_v27 = vpop.eup %6916  ;;  %6936 = vrcp.f32 %v2204_v16  ;;  %v5669_v52 = vmul.f32 -1.442695, %v1546_v40  ;;  %v1551_v62 = vadd.f32 %v1383_v47, %v8068_v43  ;;  %v1384_v47 = vld [vmem:[%s10681_s2 + $0x130] sm:$0xff] }
 0x185   : > { %v8572_v32 = vpop.xlane.xlu0 %1185  ;;  %v6919_v42 = vpop.eup %6918  ;;  %6938 = vrcp.f32 %v2209_v37 }
 0x186   : > { %2935 = vperm.xlu0 %6704, %v6909_v22   ;;  %v8590_v3 = vpop.eup %6920  ;;  %6940 = vpow2.f32 %v5670_v58  ;;  %v2208_v22 = vadd.f32 1.0, %v6915_v18  ;;  %v2210_v4 = vadd.f32 1.0, %v6919_v42  ;;  %v5672_v58 = vmul.f32 -1.442695, %v1549_v9 }
 0x187   : > { %v6923_v28 = vpop.eup %6922  ;;  %6942 = vrcp.f32 %v2206_v8  ;;  %v5674_v9 = vmul.f32 -1.442695, %v1551_v62 }
 0x188   : > { %v8584_v35 = vpop.xlane.xlu1 %1194  ;;  %2895 = vperm.xlu1 %6705, %v8507_v54   ;;  %v1548_v54 = vadd.f32 %v1380_v55, %v8061_v26  ;;  %v6925_v16 = vpop.eup %6924  ;;  %6944 = vrcp.f32 %v2211_v53  ;;  %v2213_v8 = vadd.f32 1.0, %v6923_v28  ;;  %v1385_v26 = vld [vmem:[%s10681_s2 + $0x138] sm:$0xff] }
 0x189   : > { %v8587_v36 = vpop.xlane.xlu0 %1191  ;;  %v6927_v21 = vpop.eup %6926  ;;  %6946 = vpow2.f32 %v5667_v56 }
 0x18a   : > { %2945 = vperm.xlu0 %6704, %v6917_v27   ;;  %v6929_v40 = vpop.eup %6928  ;;  %6948 = vpow2.f32 %v5669_v52  ;;  %v5671_v27 = vmul.f32 -1.442695, %v1548_v54  ;;  %v2215_v55 = vadd.f32 1.0, %v6927_v21  ;;  %v1553_v52 = vadd.f32 %v1385_v26, %v8079_v61 }
 0x18b   : > { %v6931_v18 = vpop.eup %6930  ;;  %6950 = vrcp.f32 %v2208_v22 }
 0x18c   : > { %v8596_v37 = vpop.xlane.xlu1 %1200  ;;  %2900 = vperm.xlu1 %6705, %v8531_v15   ;;  %v1382_v15 = vld [vmem:[%s10681_s2 + $0x120] sm:$0xff]  ;;  %v6933_v53 = vpop.eup %6932  ;;  %6952 = vrcp.f32 %v2210_v4  ;;  %v2212_v22 = vadd.f32 1.0, %v6931_v18 }
 0x18d   : > { %v8599_v20 = vpop.xlane.xlu0 %1197  ;;  %v6935_v56 = vpop.eup %6934  ;;  %6954 = vpow2.f32 %v5672_v58  ;;  %v1550_v54 = vadd.f32 %v1382_v15, %v8071_v45  ;;  %v2217_v4 = vadd.f32 1.0, %v6933_v53  ;;  %v1552_v58 = vadd.f32 %v1384_v47, %v8083_v2  ;;  %v1386_v18 = vld [vmem:[%s10681_s2 + $0x140] sm:$0xff] }
 0x18e   : > { %2955 = vperm.xlu0 %6704, %v6925_v16   ;;  %v8617_v28 = vpop.eup %6936  ;;  %6956 = vrcp.f32 %v2213_v8  ;;  %v2214_v61 = vadd.f32 1.0, %v6935_v56  ;;  %v5676_v45 = vmul.f32 -1.442695, %v1553_v52 }
 0x18f   : > { %v6939_v16 = vpop.eup %6938  ;;  %6958 = vpow2.f32 %v5671_v27  ;;  %v5673_v2 = vmul.f32 -1.442695, %v1550_v54  ;;  %v5675_v56 = vmul.f32 -1.442695, %v1552_v58 }
 0x190   : > { %v8608_v42 = vpop.xlane.xlu1 %1206  ;;  %2910 = vperm.xlu1 %6705, %v8548_v44   ;;  %v1387_v44 = vld [vmem:[%s10681_s2 + $0x148] sm:$0xff]  ;;  %v6941_v21 = vpop.eup %6940  ;;  %6960 = vrcp.f32 %v2215_v55 }
 0x191   : > { %v8611_v43 = vpop.xlane.xlu0 %1203  ;;  %v8629_v8 = vpop.eup %6942  ;;  %6962 = vpow2.f32 %v5674_v9  ;;  %v1555_v26 = vadd.f32 %v1387_v44, %v8091_v19  ;;  %v2219_v53 = vadd.f32 1.0, %v6941_v21  ;;  %v1554_v19 = vadd.f32 %v1386_v18, %v8094_v29  ;;  %v1388_v9 = vld [vmem:[%s10681_s2 + $0x150] sm:$0xff] }
 0x192   : > { %2965 = vperm.xlu0 %6704, %v6929_v40   ;;  %v6945_v27 = vpop.eup %6944  ;;  %6964 = vrcp.f32 %v2212_v22 }
 0x193   : > { %v6947_v15 = vpop.eup %6946  ;;  %6966 = vrcp.f32 %v2217_v4  ;;  %v5678_v54 = vmul.f32 -1.442695, %v1555_v26  ;;  %v1391_v4 = vld [vmem:[%s10681_s2 + $0x168] sm:$0xff] }
 0x194   : > { %v8624_v62 = vpop.xlane.xlu1 %1212  ;;  %2920 = vperm.xlu1 %6705, %v8555_v39   ;;  %v1389_v39 = vld [vmem:[%s10681_s2 + $0x158] sm:$0xff]  ;;  %v6949_v55 = vpop.eup %6948  ;;  %6968 = vrcp.f32 %v2214_v61  ;;  %v2216_v29 = vadd.f32 1.0, %v6947_v15  ;;  %v1556_v61 = vadd.f32 %v1388_v9, %v8105_v50  ;;  %v1390_v50 = vld [vmem:[%s10681_s2 + $0x160] sm:$0xff] }
 0x195   : > { %v8627_v40 = vpop.xlane.xlu0 %1209  ;;  %v8647_v22 = vpop.eup %6950  ;;  %6970 = vpow2.f32 %v5676_v45  ;;  %v1557_v44 = vadd.f32 %v1389_v39, %v8102_v46  ;;  %v5677_v45 = vmul.f32 -1.442695, %v1554_v19  ;;  %v1393_v46 = vld [vmem:[%s10681_s2 + $0x178] sm:$0xff]  ;;  %v1559_v39 = vadd.f32 %v1391_v4, %v8112_v7  ;;  %v10736_v19 = vld [vmem:[#allocation3_spill] sm:$0xff] }
 0x196   : > { %2975 = vperm.xlu0 %6704, %v6939_v16   ;;  %v8650_v16 = vpop.eup %6952  ;;  %6972 = vpow2.f32 %v5673_v2  ;;  %v1561_v9 = vadd.f32 %v1393_v46, %v10736_v19  ;;  %v10740_v46 = vld [vmem:[#allocation4_spill] sm:$0xff] }
 0x197   : > { %v6955_v21 = vpop.eup %6954  ;;  %6974 = vrcp.f32 %v2219_v53  ;;  %v5680_v2 = vmul.f32 -1.442695, %v1557_v44  ;;  %v10737_v44 = vld [vmem:[#allocation2_spill] sm:$0xff] }
 0x198   : > { %v8642_v52 = vpop.xlane.xlu1 %1218  ;;  %2930 = vperm.xlu1 %6705, %v8575_v14   ;;  %v2218_v14 = vadd.f32 1.0, %v6949_v55  ;;  %v6957_v58 = vpop.eup %6956  ;;  %6976 = vpow2.f32 %v5675_v56  ;;  %v2221_v53 = vadd.f32 1.0, %v6955_v21  ;;  %v1392_v55 = vld [vmem:[%s10681_s2 + $0x170] sm:$0xff]  ;;  %v5679_v56 = vmul.f32 -1.442695, %v1556_v61 }
 0x199   : > { %v8645_v47 = vpop.xlane.xlu0 %1215  ;;  %6978 = vpow2.f32 %v5678_v54  ;;  %v1558_v4 = vadd.f32 %v1390_v50, %v10737_v44  ;;  %v5682_v61 = vmul.f32 -1.442695, %v1559_v39  ;;  %v1560_v19 = vadd.f32 %v1392_v55, %v10740_v46 }
 0x19a   : > { %10734 = vst [vmem:[#allocation49_spill] sm:$0xff] %v8645_v47  ;;  %2985 = vperm.xlu0 %6704, %v6945_v27   ;;  %v6959_v27 = vpop.eup %6958  ;;  %6980 = vrcp.f32 %v2216_v29  ;;  %v1395_v29 = vld [vmem:[%s10681_s2 + $0x188] sm:$0xff]  ;;  %v5684_v44 = vmul.f32 -1.442695, %v1561_v9 }
 0x19b   : > { %v6961_v15 = vpop.eup %6960  ;;  %6982 = vrcp.f32 %v2218_v14  ;;  %v2220_v7 = vadd.f32 1.0, %v6959_v27  ;;  %v5683_v55 = vmul.f32 -1.442695, %v1560_v19  ;;  %v1396_v19 = vld [vmem:[%s10681_s2 + $0x190] sm:$0xff] }
 0x19c   : > { %v8659_v26 = vpop.xlane.xlu1 %1224  ;;  %2940 = vperm.xlu1 %6705, %v8590_v3   ;;  %v6963_v3 = vpop.eup %6962  ;;  %6984 = vpow2.f32 %v5677_v45 }
 0x19d   : > { %v8662_v18 = vpop.xlane.xlu0 %1221  ;;  %v8672_v54 = vpop.eup %6964  ;;  %6986 = vpow2.f32 %v5680_v2  ;;  %v2223_v45 = vadd.f32 1.0, %v6963_v3  ;;  %v1394_v2 = vld [vmem:[%s10681_s2 + $0x180] sm:$0xff] }
 0x19e   : > { %10735 = vst [vmem:[#allocation50_spill] sm:$0xff] %v8662_v18  ;;  %2995 = vperm.xlu0 %6704, %v6957_v58   ;;  %v6967_v14 = vpop.eup %6966  ;;  %6988 = vrcp.f32 %v2221_v53  ;;  %v10741_v18 = vld [vmem:[#allocation5_spill] sm:$0xff] }
 0x19f   : > { %v8684_v27 = vpop.eup %6968  ;;  %6990 = vpow2.f32 %v5679_v56  ;;  %v1563_v47 = vadd.f32 %v1395_v29, %v10741_v18  ;;  %v1397_v18 = vld [vmem:[%s10681_s2 + $0x198] sm:$0xff] }
 0x1a0   : > { %v8678_v21 = vpop.xlane.xlu1 %1230  ;;  %2950 = vperm.xlu1 %6705, %v8617_v28   ;;  %v6971_v50 = vpop.eup %6970  ;;  %6992 = vrcp.f32 %v2220_v7  ;;  %v5681_v28 = vmul.f32 -1.442695, %v1558_v4  ;;  %v10744_v4 = vld [vmem:[#allocation6_spill] sm:$0xff] }
 0x1a1   : > { %10738 = vst [vmem:[#allocation3_spill] sm:$0xff] %v8678_v21  ;;  %v8681_v58 = vpop.xlane.xlu0 %1227  ;;  %v6973_v21 = vpop.eup %6972  ;;  %6994 = vpow2.f32 %v5682_v61  ;;  %v2225_v56 = vadd.f32 1.0, %v6971_v50  ;;  %v5686_v7 = vmul.f32 -1.442695, %v1563_v47  ;;  %v1562_v29 = vadd.f32 %v1394_v2, %v10744_v4 }
 0x1a2   : > { %10739 = vst [vmem:[#allocation2_spill] sm:$0xff] %v8681_v58  ;;  %3005 = vperm.xlu0 %6704, %v6961_v15   ;;  %v6975_v53 = vpop.eup %6974  ;;  %6996 = vrcp.f32 %v2223_v45 }
 0x1a3   : > { %v6977_v3 = vpop.eup %6976  ;;  %6998 = vpow2.f32 %v5684_v44  ;;  %v1399_v44 = vld [vmem:[%s10681_s2 + $0x1a8] sm:$0xff]  ;;  %v5685_v2 = vmul.f32 -1.442695, %v1562_v29 }
 0x1a4   : > { %v8690_v39 = vpop.xlane.xlu1 %1236  ;;  %2960 = vperm.xlu1 %6705, %v8629_v8   ;;  %v6979_v9 = vpop.eup %6978  ;;  %v2222_v8 = vadd.f32 1.0, %v6973_v21  ;;  %7000 = vpow2.f32 %v5681_v28  ;;  %v2224_v47 = vadd.f32 1.0, %v6977_v3 }
 0x1a5   : > { %10742 = vst [vmem:[#allocation4_spill] sm:$0xff] %v8690_v39  ;;  %v8693_v15 = vpop.xlane.xlu0 %1233  ;;  %v8699_v46 = vpop.eup %6980  ;;  %7002 = vpow2.f32 %v5683_v55  ;;  %v2227_v21 = vadd.f32 1.0, %v6979_v9  ;;  %v1401_v55 = vld [vmem:[%s10681_s2 + $0x1b8] sm:$0xff] }
 0x1a6   : > { %10743 = vst [vmem:[#allocation5_spill] sm:$0xff] %v8693_v15  ;;  %3015 = vperm.xlu0 %6704, %v6967_v14   ;;  %v10745_v15 = vld [vmem:[#allocation7_spill] sm:$0xff]  ;;  %v8710_v45 = vpop.eup %6982  ;;  %7004 = vrcp.f32 %v2225_v56 }
 0x1a7   : > { %v1565_v61 = vadd.f32 %v1397_v18, %v10745_v15  ;;  %v6985_v50 = vpop.eup %6984  ;;  %7006 = vpow2.f32 %v5686_v7  ;;  %v10748_v15 = vld [vmem:[#allocation8_spill] sm:$0xff]  ;;  %v10751_v7 = vld [vmem:[#allocation9_spill] sm:$0xff] }
 0x1a8   : > { %v8705_v58 = vpop.xlane.xlu1 %1242  ;;  %2970 = vperm.xlu1 %6705, %v8647_v22   ;;  %v6987_v28 = vpop.eup %6986  ;;  %v1564_v18 = vadd.f32 %v1396_v19, %v10748_v15  ;;  %7008 = vrcp.f32 %v2222_v8  ;;  %v2226_v9 = vadd.f32 1.0, %v6985_v50  ;;  %v1567_v29 = vadd.f32 %v1399_v44, %v10751_v7 }
 0x1a9   : > { %10746 = vst [vmem:[#allocation6_spill] sm:$0xff] %v8705_v58  ;;  %v8708_v14 = vpop.xlane.xlu0 %1239  ;;  %v6989_v22 = vpop.eup %6988  ;;  %v5688_v4 = vmul.f32 -1.442695, %v1565_v61  ;;  %7010 = vrcp.f32 %v2224_v47  ;;  %v2229_v8 = vadd.f32 1.0, %v6987_v28 }
 0x1aa   : > { %10747 = vst [vmem:[#allocation7_spill] sm:$0xff] %v8708_v14  ;;  %3025 = vperm.xlu0 %6704, %v6975_v53   ;;  %v6991_v56 = vpop.eup %6990  ;;  %7012 = vrcp.f32 %v2227_v21  ;;  %v5687_v15 = vmul.f32 -1.442695, %v1564_v18  ;;  %v10752_v14 = vld [vmem:[#allocation11_spill] sm:$0xff]  ;;  %v5690_v44 = vmul.f32 -1.442695, %v1567_v29 }
 0x1ab   : > { %v8725_v19 = vpop.eup %6992  ;;  %7014 = vpow2.f32 %v5685_v2  ;;  %v1569_v58 = vadd.f32 %v1401_v55, %v10752_v14  ;;  %v2228_v39 = vadd.f32 1.0, %v6991_v56  ;;  %v1403_v2 = vld [vmem:[%s10681_s2 + $0x1c8] sm:$0xff] }
 0x1ac   : > { %v8719_v53 = vpop.xlane.xlu1 %1248  ;;  %2980 = vperm.xlu1 %6705, %v8650_v16   ;;  %v6995_v61 = vpop.eup %6994  ;;  %7016 = vpow2.f32 %v5688_v4  ;;  %v1398_v16 = vld [vmem:[%s10681_s2 + $0x1a0] sm:$0xff] }
 0x1ad   : > { %10749 = vst [vmem:[#allocation8_spill] sm:$0xff] %v8719_v53  ;;  %v8722_v3 = vpop.xlane.xlu0 %1245  ;;  %v6997_v53 = vpop.eup %6996  ;;  %7018 = vrcp.f32 %v2226_v9  ;;  %v2231_v14 = vadd.f32 1.0, %v6995_v61  ;;  %v10755_v4 = vld [vmem:[#allocation10_spill] sm:$0xff]  ;;  %v10758_v61 = vld [vmem:[#allocation13_spill] sm:$0xff] }
 0x1ae   : > { %10750 = vst [vmem:[#allocation51_spill] sm:$0xff] %v8722_v3  ;;  %3035 = vperm.xlu0 %6704, %v6989_v22   ;;  %v6999_v21 = vpop.eup %6998  ;;  %7020 = vrcp.f32 %v2229_v8  ;;  %v5692_v22 = vmul.f32 -1.442695, %v1569_v58  ;;  %v1566_v55 = vadd.f32 %v1398_v16, %v10755_v4  ;;  %v10760_v3 = vld [vmem:[#allocation15_spill] sm:$0xff] }
 0x1af   : > { %v7001_v28 = vpop.eup %7000  ;;  %7022 = vpow2.f32 %v5687_v15  ;;  %v2233_v9 = vadd.f32 1.0, %v6999_v21  ;;  %v1571_v15 = vadd.f32 %v1403_v2, %v10758_v61  ;;  %v10759_v21 = vld [vmem:[#allocation12_spill] sm:$0xff] }
 0x1b0   : > { %v8731_v47 = vpop.xlane.xlu1 %1254  ;;  %2990 = vperm.xlu1 %6705, %v8672_v54   ;;  %v7003_v18 = vpop.eup %7002  ;;  %v1400_v54 = vld [vmem:[%s10681_s2 + $0x1b0] sm:$0xff]  ;;  %7024 = vrcp.f32 %v2228_v39  ;;  %v2230_v8 = vadd.f32 1.0, %v7001_v28  ;;  %v1402_v28 = vld [vmem:[%s10681_s2 + $0x1c0] sm:$0xff] }
 0x1b1   : > { %10753 = vst [vmem:[#allocation9_spill] sm:$0xff] %v8731_v47  ;;  %v8734_v50 = vpop.xlane.xlu0 %1251  ;;  %v7005_v56 = vpop.eup %7004  ;;  %7026 = vpow2.f32 %v5690_v44  ;;  %v2232_v39 = vadd.f32 1.0, %v7003_v18  ;;  %v1568_v4 = vadd.f32 %v1400_v54, %v10759_v21 }
 0x1b2   : > { %10754 = vst [vmem:[#allocation11_spill] sm:$0xff] %v8734_v50  ;;  %3045 = vperm.xlu0 %6704, %v6997_v53   ;;  %v1405_v53 = vld [vmem:[%s10681_s2 + $0x1d8] sm:$0xff]  ;;  %v7007_v58 = vpop.eup %7006  ;;  %7028 = vrcp.f32 %v2231_v14  ;;  %v1404_v14 = vld [vmem:[%s10681_s2 + $0x1d0] sm:$0xff] }
 0x1b3   : > { %v8752_v16 = vpop.eup %7008  ;;  %7030 = vpow2.f32 %v5692_v22  ;;  %v2235_v2 = vadd.f32 1.0, %v7007_v58  ;;  %v1407_v58 = vld [vmem:[%s10681_s2 + $0x1e8] sm:$0xff] }
 0x1b4   : > { %v8746_v7 = vpop.xlane.xlu1 %1260  ;;  %3000 = vperm.xlu1 %6705, %v8684_v27   ;;  %v8755_v50 = vpop.eup %7010  ;;  %v1573_v27 = vadd.f32 %v1405_v53, %v10760_v3  ;;  %7032 = vrcp.f32 %v2233_v9  ;;  %v5694_v3 = vmul.f32 -1.442695, %v1571_v15  ;;  %v10763_v53 = vld [vmem:[#allocation14_spill] sm:$0xff] }
 0x1b5   : > { %10756 = vst [vmem:[#allocation10_spill] sm:$0xff] %v8746_v7  ;;  %v8749_v29 = vpop.xlane.xlu0 %1257  ;;  %v5689_v7 = vmul.f32 -1.442695, %v1566_v55  ;;  %v7013_v44 = vpop.eup %7012  ;;  %7034 = vrcp.f32 %v2230_v8  ;;  %v1570_v9 = vadd.f32 %v1402_v28, %v10763_v53  ;;  %v1406_v15 = vld [vmem:[%s10681_s2 + $0x1e0] sm:$0xff] }
 0x1b6   : > { %10757 = vst [vmem:[#allocation52_spill] sm:$0xff] %v8749_v29  ;;  %3055 = vperm.xlu0 %6704, %v7005_v56   ;;  %v7015_v22 = vpop.eup %7014  ;;  %7036 = vrcp.f32 %v2232_v39  ;;  %v5691_v56 = vmul.f32 -1.442695, %v1568_v4  ;;  %v5696_v21 = vmul.f32 -1.442695, %v1573_v27 }
 0x1b7   : > { %v7017_v55 = vpop.eup %7016  ;;  %7038 = vpow2.f32 %v5689_v7  ;;  %v2234_v8 = vadd.f32 1.0, %v7015_v22  ;;  %v10767_v7 = vld [vmem:[#allocation17_spill] sm:$0xff] }
 0x1b8   : > { %v8764_v18 = vpop.xlane.xlu1 %1266  ;;  %3010 = vperm.xlu1 %6705, %v8699_v46   ;;  %v8773_v61 = vpop.eup %7018  ;;  %v10764_v46 = vld [vmem:[#allocation16_spill] sm:$0xff]  ;;  %7040 = vrcp.f32 %v2235_v2  ;;  %v1575_v27 = vadd.f32 %v1407_v58, %v10767_v7  ;;  %v5693_v2 = vmul.f32 -1.442695, %v1570_v9  ;;  %v1409_v22 = vld [vmem:[%s10681_s2 + $0x1f8] sm:$0xff] }
 0x1b9   : > { %10761 = vst [vmem:[#allocation13_spill] sm:$0xff] %v8764_v18  ;;  %v8767_v54 = vpop.xlane.xlu0 %1263  ;;  %v1572_v29 = vadd.f32 %v1404_v14, %v10764_v46  ;;  %7042 = vpow2.f32 %v5694_v3  ;;  %v1408_v3 = vld [vmem:[%s10681_s2 + $0x1f0] sm:$0xff]  ;;  %v1410_v18 = vld [vmem:[%s10681_s2 + $0x200] sm:$0xff] }
 0x1ba   : > { %10762 = vst [vmem:[#allocation12_spill] sm:$0xff] %v8767_v54  ;;  %3065 = vperm.xlu0 %6704, %v7013_v44   ;;  %v7021_v54 = vpop.eup %7020  ;;  %v2237_v44 = vadd.f32 1.0, %v7017_v55  ;;  %7044 = vpow2.f32 %v5691_v56  ;;  %v1411_v56 = vld [vmem:[%s10681_s2 + $0x208] sm:$0xff] }
 0x1bb   : > { %v7023_v28 = vpop.eup %7022  ;;  %7046 = vpow2.f32 %v5696_v21  ;;  %v5695_v46 = vmul.f32 -1.442695, %v1572_v29  ;;  %v5698_v21 = vmul.f32 -1.442695, %v1575_v27 }
 0x1bc   : > { %v8779_v39 = vpop.xlane.xlu1 %1272  ;;  %3020 = vperm.xlu1 %6705, %v8710_v45   ;;  %v8785_v14 = vpop.eup %7024  ;;  %v10768_v45 = vld [vmem:[#allocation18_spill] sm:$0xff]  ;;  %7048 = vrcp.f32 %v2234_v8  ;;  %v10772_v8 = vld [vmem:[#allocation20_spill] sm:$0xff] }
 0x1bd   : > { %10765 = vst [vmem:[#allocation15_spill] sm:$0xff] %v8779_v39  ;;  %v8782_v4 = vpop.xlane.xlu0 %1269  ;;  %v7027_v53 = vpop.eup %7026  ;;  %v1574_v39 = vadd.f32 %v1406_v15, %v10768_v45  ;;  %7050 = vrcp.f32 %v2237_v44  ;;  %v10771_v15 = vld [vmem:[#allocation19_spill] sm:$0xff] }
 0x1be   : > { %10766 = vst [vmem:[#allocation14_spill] sm:$0xff] %v8782_v4  ;;  %3075 = vperm.xlu0 %6704, %v7021_v54   ;;  %v7029_v55 = vpop.eup %7028  ;;  %v2236_v54 = vadd.f32 1.0, %v7023_v28  ;;  %v1577_v7 = vadd.f32 %v1409_v22, %v10771_v15  ;;  %v2239_v4 = vadd.f32 1.0, %v7027_v53  ;;  %7052 = vpow2.f32 %v5693_v2 }
 0x1bf   : > { %v7031_v29 = vpop.eup %7030  ;;  %v1576_v28 = vadd.f32 %v1408_v3, %v10772_v8  ;;  %7054 = vpow2.f32 %v5695_v46 }
 0x1c0   : > { %v8797_v9 = vpop.xlane.xlu1 %1278  ;;  %3030 = vperm.xlu1 %6705, %v8725_v19   ;;  %v7033_v45 = vpop.eup %7032  ;;  %v5697_v19 = vmul.f32 -1.442695, %v1574_v39  ;;  %7056 = vrcp.f32 %v2236_v54  ;;  %v2241_v27 = vadd.f32 1.0, %v7031_v29  ;;  %v5700_v3 = vmul.f32 -1.442695, %v1577_v7  ;;  %v1413_v54 = vld [vmem:[%s10681_s2 + $0x218] sm:$0xff] }
 0x1c1   : > { %10769 = vst [vmem:[#allocation16_spill] sm:$0xff] %v8797_v9  ;;  %v8800_v58 = vpop.xlane.xlu0 %1275  ;;  %v8807_v47 = vpop.eup %7034  ;;  %7058 = vpow2.f32 %v5698_v21  ;;  %v5699_v39 = vmul.f32 -1.442695, %v1576_v28 }
 0x1c2   : > { %10770 = vst [vmem:[#allocation17_spill] sm:$0xff] %v8800_v58  ;;  %3085 = vperm.xlu0 %6704, %v7029_v55   ;;  %v10773_v58 = vld [vmem:[#allocation21_spill] sm:$0xff]  ;;  %v8810_v44 = vpop.eup %7036  ;;  %v10776_v55 = vld [vmem:[#allocation22_spill] sm:$0xff]  ;;  %7060 = vrcp.f32 %v2239_v4 }
 0x1c3   : > { %v1579_v9 = vadd.f32 %v1411_v56, %v10773_v58  ;;  %v7039_v53 = vpop.eup %7038  ;;  %v1578_v15 = vadd.f32 %v1410_v18, %v10776_v55  ;;  %7062 = vpow2.f32 %v5697_v19 }
 0x1c4   : > { %v8812_v22 = vpop.xlane.xlu1 %1284  ;;  %3040 = vperm.xlu1 %6705, %v8752_v16   ;;  %v7041_v46 = vpop.eup %7040  ;;  %v1412_v16 = vld [vmem:[%s10681_s2 + $0x210] sm:$0xff]  ;;  %7064 = vrcp.f32 %v2241_v27  ;;  %v2238_v21 = vadd.f32 1.0, %v7039_v53  ;;  %v1415_v27 = vld [vmem:[%s10681_s2 + $0x228] sm:$0xff] }
 0x1c5   : > { %10774 = vst [vmem:[#allocation18_spill] sm:$0xff] %v8812_v22  ;;  %v8815_v2 = vpop.xlane.xlu0 %1281  ;;  %v7043_v56 = vpop.eup %7042  ;;  %v5702_v58 = vmul.f32 -1.442695, %v1579_v9  ;;  %7066 = vpow2.f32 %v5700_v3  ;;  %v5701_v28 = vmul.f32 -1.442695, %v1578_v15  ;;  %v10780_v53 = vld [vmem:[#allocation24_spill] sm:$0xff] }
 0x1c6   : > { %10775 = vst [vmem:[#allocation19_spill] sm:$0xff] %v8815_v2  ;;  %3095 = vperm.xlu0 %6704, %v7033_v45   ;;  %v7045_v29 = vpop.eup %7044  ;;  %v10779_v45 = vld [vmem:[#allocation23_spill] sm:$0xff]  ;;  %v2243_v19 = vadd.f32 1.0, %v7043_v56  ;;  %7068 = vpow2.f32 %v5699_v39  ;;  %v1580_v55 = vadd.f32 %v1412_v16, %v10780_v53  ;;  %v1414_v15 = vld [vmem:[%s10681_s2 + $0x220] sm:$0xff]  ;;  %v10783_v16 = vld [vmem:[#allocation25_spill] sm:$0xff] }
 0x1c7   : > { %v7047_v4 = vpop.eup %7046  ;;  %v1581_v8 = vadd.f32 %v1413_v54, %v10779_v45  ;;  %7070 = vpow2.f32 %v5702_v58  ;;  %v1583_v45 = vadd.f32 %v1415_v27, %v10783_v16 }
 0x1c8   : > { %v8824_v7 = vpop.xlane.xlu1 %1290  ;;  %3050 = vperm.xlu1 %6705, %v8755_v50   ;;  %v8830_v9 = vpop.eup %7048  ;;  %v2240_v50 = vadd.f32 1.0, %v7045_v29  ;;  %7072 = vrcp.f32 %v2238_v21  ;;  %v2245_v3 = vadd.f32 1.0, %v7047_v4  ;;  %v5703_v29 = vmul.f32 -1.442695, %v1580_v55  ;;  %v1417_v21 = vld [vmem:[%s10681_s2 + $0x238] sm:$0xff]  ;;  %v10787_v55 = vld [vmem:[#allocation27_spill] sm:$0xff] }
 0x1c9   : > { %10777 = vst [vmem:[#allocation20_spill] sm:$0xff] %v8824_v7  ;;  %v8827_v18 = vpop.xlane.xlu0 %1287  ;;  %v7051_v2 = vpop.eup %7050  ;;  %v5704_v56 = vmul.f32 -1.442695, %v1581_v8  ;;  %7074 = vpow2.f32 %v5701_v28  ;;  %v5706_v27 = vmul.f32 -1.442695, %v1583_v45  ;;  %v1585_v16 = vadd.f32 %v1417_v21, %v10787_v55 }
 0x1ca   : > { %10778 = vst [vmem:[#allocation21_spill] sm:$0xff] %v8827_v18  ;;  %3105 = vperm.xlu0 %6704, %v7041_v46   ;;  %v7053_v18 = vpop.eup %7052  ;;  %7076 = vrcp.f32 %v2243_v19 }
 0x1cb   : > { %v7055_v54 = vpop.eup %7054  ;;  %7078 = vrcp.f32 %v2240_v50  ;;  %v2242_v53 = vadd.f32 1.0, %v7053_v18  ;;  %v1419_v18 = vld [vmem:[%s10681_s2 + $0x248] sm:$0xff]  ;;  %v5708_v21 = vmul.f32 -1.442695, %v1585_v16 }
 0x1cc   : > { %v8839_v46 = vpop.xlane.xlu1 %1296  ;;  %3060 = vperm.xlu1 %6705, %v8773_v61   ;;  %v8845_v58 = vpop.eup %7056  ;;  %v10784_v61 = vld [vmem:[#allocation26_spill] sm:$0xff]  ;;  %7080 = vrcp.f32 %v2245_v3  ;;  %v2244_v8 = vadd.f32 1.0, %v7055_v54 }
 0x1cd   : > { %10781 = vst [vmem:[#allocation22_spill] sm:$0xff] %v8839_v46  ;;  %v8842_v39 = vpop.xlane.xlu0 %1293  ;;  %v7059_v4 = vpop.eup %7058  ;;  %v1582_v46 = vadd.f32 %v1414_v15, %v10784_v61  ;;  %7082 = vpow2.f32 %v5704_v56  ;;  %v1416_v56 = vld [vmem:[%s10681_s2 + $0x230] sm:$0xff] }
 0x1ce   : > { %10782 = vst [vmem:[#allocation23_spill] sm:$0xff] %v8842_v39  ;;  %3115 = vperm.xlu0 %6704, %v7051_v2   ;;  %v7061_v39 = vpop.eup %7060  ;;  %v2247_v50 = vadd.f32 1.0, %v7059_v4  ;;  %7084 = vpow2.f32 %v5703_v29  ;;  %v10790_v4 = vld [vmem:[#allocation29_spill] sm:$0xff] }
 0x1cf   : > { %v7063_v19 = vpop.eup %7062  ;;  %7086 = vrcp.f32 %v2242_v53  ;;  %v5705_v15 = vmul.f32 -1.442695, %v1582_v46  ;;  %v1587_v61 = vadd.f32 %v1419_v18, %v10790_v4  ;;  %v1418_v46 = vld [vmem:[%s10681_s2 + $0x240] sm:$0xff] }
 0x1d0   : > { %v8851_v28 = vpop.xlane.xlu1 %1302  ;;  %3070 = vperm.xlu1 %6705, %v8785_v14   ;;  %v7065_v7 = vpop.eup %7064  ;;  %7088 = vrcp.f32 %v2244_v8  ;;  %v2246_v14 = vadd.f32 1.0, %v7063_v19  ;;  %v10792_v4 = vld [vmem:[#allocation30_spill] sm:$0xff] }
 0x1d1   : > { %10785 = vst [vmem:[#allocation24_spill] sm:$0xff] %v8851_v28  ;;  %v8854_v2 = vpop.xlane.xlu0 %1299  ;;  %v7067_v3 = vpop.eup %7066  ;;  %7090 = vpow2.f32 %v5706_v27  ;;  %v10791_v27 = vld [vmem:[#allocation28_spill] sm:$0xff] }
 0x1d2   : > { %10786 = vst [vmem:[#allocation25_spill] sm:$0xff] %v8854_v2  ;;  %3125 = vperm.xlu0 %6704, %v7061_v39   ;;  %v7069_v54 = vpop.eup %7068  ;;  %7092 = vrcp.f32 %v2247_v50  ;;  %v2249_v8 = vadd.f32 1.0, %v7067_v3  ;;  %v1584_v16 = vadd.f32 %v1416_v56, %v10791_v27  ;;  %v1586_v2 = vadd.f32 %v1418_v46, %v10792_v4 }
 0x1d3   : > { %v7071_v29 = vpop.eup %7070  ;;  %v2248_v55 = vadd.f32 1.0, %v7069_v54  ;;  %7094 = vpow2.f32 %v5705_v15  ;;  %v5710_v3 = vmul.f32 -1.442695, %v1587_v61  ;;  %v1421_v15 = vld [vmem:[%s10681_s2 + $0x258] sm:$0xff]  ;;  %v10795_v54 = vld [vmem:[#allocation38_spill] sm:$0xff] }
 0x1d4   : > { %v8863_v45 = vpop.xlane.xlu1 %1308  ;;  %3080 = vperm.xlu1 %6705, %v8807_v47   ;;  %v8872_v53 = vpop.eup %7072  ;;  %v1426_v47 = vld [vmem:[%s10681_s2 + $0x280] sm:$0xff]  ;;  %7096 = vrcp.f32 %v2246_v14  ;;  %v2251_v18 = vadd.f32 1.0, %v7071_v29  ;;  %v5707_v27 = vmul.f32 -1.442695, %v1584_v16  ;;  %v10799_v16 = vld [vmem:[#allocation40_spill] sm:$0xff] }
 0x1d5   : > { %10788 = vst [vmem:[#allocation26_spill] sm:$0xff] %v8863_v45  ;;  %v8866_v39 = vpop.xlane.xlu0 %1305  ;;  %v7075_v19 = vpop.eup %7074  ;;  %7098 = vpow2.f32 %v5708_v21  ;;  %v1594_v56 = vadd.f32 %v1426_v47, %v10795_v54  ;;  %v10796_v21 = vld [vmem:[#allocation31_spill] sm:$0xff]  ;;  %v1420_v47 = vld [vmem:[%s10681_s2 + $0x250] sm:$0xff] }
 0x1d6   : > { %10789 = vst [vmem:[#allocation27_spill] sm:$0xff] %v8866_v39  ;;  %3135 = vperm.xlu0 %6704, %v7065_v7   ;;  %v7077_v39 = vpop.eup %7076  ;;  %7100 = vrcp.f32 %v2249_v8  ;;  %v2250_v29 = vadd.f32 1.0, %v7075_v19  ;;  %v1589_v61 = vadd.f32 %v1421_v15, %v10796_v21  ;;  %v1458_v15 = vld [vmem:[%s10681_s2 + $0x380] sm:$0xff] }
 0x1d7   : > { %v8884_v50 = vpop.eup %7078  ;;  %7102 = vrcp.f32 %v2248_v55  ;;  %v5717_v55 = vmul.f32 -1.442695, %v1594_v56 }
 0x1d8   : > { %v8879_v45 = vpop.xlane.xlu1 %1314  ;;  %3090 = vperm.xlu1 %6705, %v8810_v44   ;;  %v7081_v14 = vpop.eup %7080  ;;  %v1428_v44 = vld [vmem:[%s10681_s2 + $0x290] sm:$0xff]  ;;  %7104 = vrcp.f32 %v2251_v18  ;;  %v5712_v28 = vmul.f32 -1.442695, %v1589_v61 }
 0x1d9   : > { %10793 = vst [vmem:[#allocation29_spill] sm:$0xff] %v8879_v45  ;;  %v8882_v7 = vpop.xlane.xlu0 %1311  ;;  %v7083_v46 = vpop.eup %7082  ;;  %7106 = vpow2.f32 %v5710_v3  ;;  %v1596_v54 = vadd.f32 %v1428_v44, %v10799_v16  ;;  %v1423_v3 = vld [vmem:[%s10681_s2 + $0x268] sm:$0xff]  ;;  %v1422_v44 = vld [vmem:[%s10681_s2 + $0x260] sm:$0xff] }
 0x1da   : > { %10794 = vst [vmem:[#allocation28_spill] sm:$0xff] %v8882_v7  ;;  %3145 = vperm.xlu0 %6704, %v7077_v39   ;;  %v7085_v4 = vpop.eup %7084  ;;  %v5709_v7 = vmul.f32 -1.442695, %v1586_v2  ;;  %v2253_v2 = vadd.f32 1.0, %v7083_v46  ;;  %7108 = vrcp.f32 %v2250_v29 }
 0x1db   : > { %v8902_v19 = vpop.eup %7086  ;;  %7110 = vpow2.f32 %v5707_v27  ;;  %v5719_v46 = vmul.f32 -1.442695, %v1596_v54  ;;  %v1626_v27 = vadd.f32 %v1458_v15, %v8560_v10  ;;  %v1425_v10 = vld [vmem:[%s10681_s2 + $0x278] sm:$0xff] }
 0x1dc   : > { %v8897_v39 = vpop.xlane.xlu1 %1320  ;;  %3100 = vperm.xlu1 %6705, %v8830_v9   ;;  %v8905_v18 = vpop.eup %7088  ;;  %v10800_v9 = vld [vmem:[#allocation32_spill] sm:$0xff]  ;;  %7112 = vpow2.f32 %v5709_v7 }
 0x1dd   : > { %10797 = vst [vmem:[#allocation30_spill] sm:$0xff] %v8897_v39  ;;  %v8900_v8 = vpop.xlane.xlu0 %1317  ;;  %v7091_v21 = vpop.eup %7090  ;;  %v2252_v39 = vadd.f32 1.0, %v7085_v4  ;;  %7114 = vpow2.f32 %v5717_v55 }
 0x1de   : > { %10798 = vst [vmem:[#allocation38_spill] sm:$0xff] %v8900_v8  ;;  %3155 = vperm.xlu0 %6704, %v7081_v14   ;;  %v1588_v8 = vadd.f32 %v1420_v47, %v10800_v9  ;;  %v7093_v45 = vpop.eup %7092  ;;  %7116 = vrcp.f32 %v2253_v2  ;;  %v2255_v4 = vadd.f32 1.0, %v7091_v21  ;;  %v10803_v47 = vld [vmem:[#allocation33_spill] sm:$0xff] }
 0x1df   : > { %v7095_v29 = vpop.eup %7094  ;;  %7118 = vrcp.f32 %v2252_v39  ;;  %v1591_v16 = vadd.f32 %v1423_v3, %v10803_v47  ;;  %v1430_v3 = vld [vmem:[%s10681_s2 + $0x2a0] sm:$0xff] }
 0x1e0   : > { %v8914_v56 = vpop.xlane.xlu1 %1326  ;;  %3110 = vperm.xlu1 %6705, %v8845_v58   ;;  %v8923_v7 = vpop.eup %7096  ;;  %v1442_v58 = vld [vmem:[%s10681_s2 + $0x300] sm:$0xff]  ;;  %v5711_v9 = vmul.f32 -1.442695, %v1588_v8  ;;  %7120 = vpow2.f32 %v5712_v28  ;;  %v5749_v8 = vmul.f32 -1.442695, %v1626_v27  ;;  %v1427_v27 = vld [vmem:[%s10681_s2 + $0x288] sm:$0xff] }
 0x1e1   : > { %10801 = vst [vmem:[#allocation31_spill] sm:$0xff] %v8914_v56  ;;  %v8917_v14 = vpop.xlane.xlu0 %1323  ;;  %v7099_v61 = vpop.eup %7098  ;;  %v2254_v56 = vadd.f32 1.0, %v7095_v29  ;;  %7122 = vpow2.f32 %v5719_v46  ;;  %v1610_v39 = vadd.f32 %v1442_v58, %v8450_v6 }
 0x1e2   : > { %10802 = vst [vmem:[#allocation40_spill] sm:$0xff] %v8917_v14  ;;  %3165 = vperm.xlu0 %6704, %v7093_v45   ;;  %v7101_v14 = vpop.eup %7100  ;;  %v10804_v45 = vld [vmem:[#allocation34_spill] sm:$0xff]  ;;  %7124 = vrcp.f32 %v2255_v4  ;;  %v2257_v21 = vadd.f32 1.0, %v7099_v61 }
 0x1e3   : > { %v1590_v55 = vadd.f32 %v1422_v44, %v10804_v45  ;;  %v8938_v15 = vpop.eup %7102  ;;  %v5714_v44 = vmul.f32 -1.442695, %v1591_v16  ;;  %7126 = vpow2.f32 %v5711_v9  ;;  %v10810_v4 = vld [vmem:[#allocation42_spill] sm:$0xff]  ;;  %v5733_v61 = vmul.f32 -1.442695, %v1610_v39  ;;  %v1460_v9 = vld [vmem:[%s10681_s2 + $0x390] sm:$0xff] }
 0x1e4   : > { %v8933_v54 = vpop.xlane.xlu1 %1332  ;;  %3120 = vperm.xlu1 %6705, %v8872_v53   ;;  %v7105_v28 = vpop.eup %7104  ;;  %v10807_v53 = vld [vmem:[#allocation35_spill] sm:$0xff]  ;;  %7128 = vrcp.f32 %v2254_v56  ;;  %v1598_v58 = vadd.f32 %v1430_v3, %v10810_v4  ;;  %v1424_v39 = vld [vmem:[%s10681_s2 + $0x270] sm:$0xff] }
 0x1e5   : > { %10805 = vst [vmem:[#allocation32_spill] sm:$0xff] %v8933_v54  ;;  %v8936_v2 = vpop.xlane.xlu0 %1329  ;;  %v7107_v29 = vpop.eup %7106  ;;  %v1593_v47 = vadd.f32 %v1425_v10, %v10807_v53  ;;  %v5713_v46 = vmul.f32 -1.442695, %v1590_v55  ;;  %7130 = vpow2.f32 %v5749_v8 }
 0x1e6   : > { %10806 = vst [vmem:[#allocation33_spill] sm:$0xff] %v8936_v2  ;;  %3175 = vperm.xlu0 %6704, %v7101_v14   ;;  %v8945_v45 = vpop.eup %7108  ;;  %7132 = vrcp.f32 %v2257_v21  ;;  %v2259_v56 = vadd.f32 1.0, %v7107_v29  ;;  %v1429_v21 = vld [vmem:[%s10681_s2 + $0x298] sm:$0xff]  ;;  %v5721_v3 = vmul.f32 -1.442695, %v1598_v58  ;;  %v1628_v29 = vadd.f32 %v1460_v9, %v8572_v32 }
 0x1e7   : > { %v7111_v14 = vpop.eup %7110  ;;  %7134 = vpow2.f32 %v5714_v44  ;;  %v5716_v10 = vmul.f32 -1.442695, %v1593_v47 }
 0x1e8   : > { %v8947_v2 = vpop.xlane.xlu1 %1338  ;;  %3130 = vperm.xlu1 %6705, %v8884_v50   ;;  %v7113_v16 = vpop.eup %7112  ;;  %v2256_v53 = vadd.f32 1.0, %v7111_v14  ;;  %7136 = vpow2.f32 %v5713_v46  ;;  %v1444_v46 = vld [vmem:[%s10681_s2 + $0x310] sm:$0xff] }
 0x1e9   : > { %10808 = vst [vmem:[#allocation34_spill] sm:$0xff] %v8947_v2  ;;  %v8950_v6 = vpop.xlane.xlu0 %1335  ;;  %v7115_v50 = vpop.eup %7114  ;;  %7138 = vpow2.f32 %v5733_v61  ;;  %v2258_v14 = vadd.f32 1.0, %v7113_v16  ;;  %v10815_v61 = vld [vmem:[#allocation39_spill] sm:$0xff] }
 0x1ea   : > { %10809 = vst [vmem:[#allocation35_spill] sm:$0xff] %v8950_v6  ;;  %3185 = vperm.xlu0 %6704, %v7105_v28   ;;  %v7117_v55 = vpop.eup %7116  ;;  %v10811_v6 = vld [vmem:[#allocation37_spill] sm:$0xff]  ;;  %7140 = vrcp.f32 %v2259_v56  ;;  %v2266_v47 = vadd.f32 1.0, %v7115_v50  ;;  %v1597_v32 = vadd.f32 %v1429_v21, %v10815_v61  ;;  %v1612_v50 = vadd.f32 %v1444_v46, %v8462_v13 }
 0x1eb   : > { %v1595_v2 = vadd.f32 %v1427_v27, %v10811_v6  ;;  %v8966_v28 = vpop.eup %7118  ;;  %7142 = vpow2.f32 %v5716_v10  ;;  %v10814_v27 = vld [vmem:[#allocation36_spill] sm:$0xff] }
 0x1ec   : > { %v8963_v8 = vpop.xlane.xlu1 %1344  ;;  %3140 = vperm.xlu1 %6705, %v8902_v19   ;;  %v7121_v44 = vpop.eup %7120  ;;  %v1592_v4 = vadd.f32 %v1424_v39, %v10814_v27  ;;  %7144 = vrcp.f32 %v2256_v53 }
 0x1ed   : > { %10812 = vst [vmem:[#allocation42_spill] sm:$0xff] %v8963_v8  ;;  %v8975_v6 = vpop.xlane.xlu0 %1341  ;;  %v7123_v19 = vpop.eup %7122  ;;  %v5718_v58 = vmul.f32 -1.442695, %v1595_v2  ;;  %7146 = vpow2.f32 %v5721_v3  ;;  %v1432_v2 = vld [vmem:[%s10681_s2 + $0x2b0] sm:$0xff]  ;;  %v2261_v27 = vadd.f32 1.0, %v7121_v44  ;;  %v1443_v44 = vld [vmem:[%s10681_s2 + $0x308] sm:$0xff] }
 0x1ee   : > { %3195 = vperm.xlu0 %6704, %v7117_v55   ;;  %10813 = vst [vmem:[#allocation37_spill] sm:$0xff] %v8975_v6  ;;  %v7125_v8 = vpop.eup %7124  ;;  %v5751_v55 = vmul.f32 -1.442695, %v1628_v29  ;;  %7148 = vrcp.f32 %v2266_v47  ;;  %v2268_v16 = vadd.f32 1.0, %v7123_v19  ;;  %v5715_v53 = vmul.f32 -1.442695, %v1592_v4 }
 0x1ef   : > { %v7127_v56 = vpop.eup %7126  ;;  %7150 = vrcp.f32 %v2258_v14  ;;  %v1600_v3 = vadd.f32 %v1432_v2, %v8367_v34  ;;  %v5735_v29 = vmul.f32 -1.442695, %v1612_v50  ;;  %v1459_v47 = vld [vmem:[%s10681_s2 + $0x388] sm:$0xff] }
 0x1f0   : > { %v8979_v9 = vpop.permute.xlu1 %2865  ;;  %3150 = vperm.xlu1 %6705, %v8905_v18   ;;  %v8983_v6 = vpop.eup %7128  ;;  %7152 = vpow2.f32 %v5718_v58  ;;  %v5720_v18 = vmul.f32 -1.442695, %v1597_v32  ;;  %v2260_v34 = vadd.f32 1.0, %v7127_v56  ;;  %v1431_v58 = vld [vmem:[%s10681_s2 + $0x2a8] sm:$0xff]  ;;  %v1627_v61 = vadd.f32 %v1459_v47, %v8557_v59 }
 0x1f1   : > { %v7131_v10 = vpop.eup %7130  ;;  %7154 = vpow2.f32 %v5751_v55 }
 0x1f2   : > { %3205 = vperm.xlu0 %6704, %v7125_v8   ;;  %v7133_v39 = vpop.eup %7132  ;;  %7156 = vrcp.f32 %v2268_v16  ;;  %v2298_v19 = vadd.f32 1.0, %v7131_v10  ;;  %v5723_v16 = vmul.f32 -1.442695, %v1600_v3  ;;  %v5750_v47 = vmul.f32 -1.442695, %v1627_v61 }
 0x1f3   : > { %v7135_v8 = vpop.eup %7134  ;;  %7158 = vpow2.f32 %v5715_v53 }
 0x1f4   : > { %v8988_v21 = vpop.permute.xlu1 %2870  ;;  %3160 = vperm.xlu1 %6705, %v8923_v7   ;;  %v8997_v46 = vpop.eup %7136  ;;  %v1462_v7 = vld [vmem:[%s10681_s2 + $0x3a0] sm:$0xff]  ;;  %7160 = vpow2.f32 %v5720_v18  ;;  %v2263_v53 = vadd.f32 1.0, %v7135_v8 }
 0x1f5   : > { %v8991_v13 = vpop.permute.xlu0 %2860  ;;  %v7139_v14 = vpop.eup %7138  ;;  %7162 = vpow2.f32 %v5735_v29  ;;  %v1630_v56 = vadd.f32 %v1462_v7, %v8587_v36  ;;  %v1433_v36 = vld [vmem:[%s10681_s2 + $0x2b8] sm:$0xff]  ;;  %v1611_v29 = vadd.f32 %v1443_v44, %v8448_v0  ;;  %v1434_v0 = vld [vmem:[%s10681_s2 + $0x2c0] sm:$0xff] }
 0x1f6   : > { %3215 = vperm.xlu0 %6704, %v7133_v39   ;;  %v7141_v4 = vpop.eup %7140  ;;  %v2282_v59 = vadd.f32 1.0, %v7139_v14  ;;  %7164 = vrcp.f32 %v2298_v19  ;;  %v10817_v39 = vld [vmem:[#allocation41_spill] sm:$0xff] }
 0x1f7   : > { %v9011_v55 = vpop.eup %7142  ;;  %7166 = vrcp.f32 %v2261_v27  ;;  %v1599_v18 = vadd.f32 %v1431_v58, %v10817_v39  ;;  %v5753_v27 = vmul.f32 -1.442695, %v1630_v56  ;;  %v5734_v54 = vmul.f32 -1.442695, %v1611_v29 }
 0x1f8   : > { %v9006_v32 = vpop.permute.xlu1 %2875  ;;  %3170 = vperm.xlu1 %6705, %v8938_v15   ;;  %10816 = vst [vmem:[#allocation36_spill] sm:$0xff] %v9011_v55  ;;  %v9017_v2 = vpop.eup %7144  ;;  %v1446_v15 = vld [vmem:[%s10681_s2 + $0x320] sm:$0xff]  ;;  %7168 = vrcp.f32 %v2260_v34 }
 0x1f9   : > { %v9009_v50 = vpop.permute.xlu0 %2905  ;;  %v7147_v10 = vpop.eup %7146  ;;  %7170 = vpow2.f32 %v5723_v16  ;;  %v1614_v8 = vadd.f32 %v1446_v15, %v8474_v25  ;;  %v5722_v61 = vmul.f32 -1.442695, %v1599_v18  ;;  %v1602_v15 = vadd.f32 %v1434_v0, %v8389_v23  ;;  %v1445_v23 = vld [vmem:[%s10681_s2 + $0x318] sm:$0xff] }
 0x1fa   : > { %3225 = vperm.xlu0 %6704, %v7141_v4   ;;  %v7149_v3 = vpop.eup %7148  ;;  %v2270_v34 = vadd.f32 1.0, %v7147_v10  ;;  %7172 = vrcp.f32 %v2282_v59  ;;  %v1461_v59 = vld [vmem:[%s10681_s2 + $0x398] sm:$0xff] }
 0x1fb   : > { %v9032_v19 = vpop.eup %7150  ;;  %7174 = vrcp.f32 %v2263_v53  ;;  %v5737_v10 = vmul.f32 -1.442695, %v1614_v8  ;;  %v1629_v8 = vadd.f32 %v1461_v59, %v8569_v60 }
 0x1fc   : > { %v9027_v7 = vpop.permute.xlu1 %2880  ;;  %3180 = vperm.xlu1 %6705, %v8945_v45   ;;  %v7153_v4 = vpop.eup %7152  ;;  %v10818_v45 = vld [vmem:[#allocation43_spill] sm:$0xff]  ;;  %7176 = vpow2.f32 %v5750_v47 }
 0x1fd   : > { %v9030_v14 = vpop.permute.xlu0 %2915  ;;  %v7155_v58 = vpop.eup %7154  ;;  %v1601_v44 = vadd.f32 %v1433_v36, %v10818_v45  ;;  %7178 = vpow2.f32 %v5753_v27  ;;  %v2267_v47 = vadd.f32 1.0, %v7153_v4  ;;  %v5752_v59 = vmul.f32 -1.442695, %v1629_v8  ;;  %v1463_v8 = vld [vmem:[%s10681_s2 + $0x3a8] sm:$0xff] }
 0x1fe   : > { %3260 = vperm.xlu0 %6704, %v7149_v3   ;;  %v7157_v39 = vpop.eup %7156  ;;  %7180 = vrcp.f32 %v2270_v34  ;;  %v2300_v18 = vadd.f32 1.0, %v7155_v58  ;;  %v5725_v58 = vmul.f32 -1.442695, %v1602_v15  ;;  %v1435_v15 = vld [vmem:[%s10681_s2 + $0x2c8] sm:$0xff] }
 0x1ff   : > { %v9044_v56 = vpop.eup %7158  ;;  %7182 = vpow2.f32 %v5722_v61  ;;  %v5724_v36 = vmul.f32 -1.442695, %v1601_v44 }
 0x200   : > { %v9039_v16 = vpop.permute.xlu1 %2885  ;;  %3190 = vperm.xlu1 %6705, %v8966_v28   ;;  %10819 = vst [vmem:[#allocation39_spill] sm:$0xff] %v9044_v56  ;;  %v7161_v53 = vpop.eup %7160  ;;  %v1464_v28 = vld [vmem:[%s10681_s2 + $0x3b0] sm:$0xff]  ;;  %7184 = vpow2.f32 %v5734_v54  ;;  %v1469_v56 = vld [vmem:[%s10681_s2 + $0x3d8] sm:$0xff] }
 0x201   : > { %v9042_v25 = vpop.permute.xlu0 %2925  ;;  %v7163_v3 = vpop.eup %7162  ;;  %7186 = vpow2.f32 %v5737_v10  ;;  %v1448_v54 = vld [vmem:[%s10681_s2 + $0x330] sm:$0xff]  ;;  %v1632_v4 = vadd.f32 %v1464_v28, %v8599_v20  ;;  %v2269_v44 = vadd.f32 1.0, %v7161_v53 }
 0x202   : > { %3270 = vperm.xlu0 %6704, %v7157_v39   ;;  %v7165_v29 = vpop.eup %7164  ;;  %v2284_v45 = vadd.f32 1.0, %v7163_v3  ;;  %7188 = vrcp.f32 %v2300_v18  ;;  %v1616_v10 = vadd.f32 %v1448_v54, %v8483_v31 }
 0x203   : > { %v9062_v0 = vpop.eup %7166  ;;  %7190 = vpow2.f32 %v5724_v36  ;;  %v5755_v53 = vmul.f32 -1.442695, %v1632_v4  ;;  %v1603_v36 = vadd.f32 %v1435_v15, %v8385_v1  ;;  %v1437_v15 = vld [vmem:[%s10681_s2 + $0x2d8] sm:$0xff] }
 0x204   : > { %v9057_v27 = vpop.permute.xlu1 %2890  ;;  %3200 = vperm.xlu1 %6705, %v8983_v6   ;;  %v7169_v61 = vpop.eup %7168  ;;  %v1613_v6 = vadd.f32 %v1445_v23, %v8460_v11  ;;  %7192 = vrcp.f32 %v2267_v47  ;;  %v1436_v11 = vld [vmem:[%s10681_s2 + $0x2d0] sm:$0xff]  ;;  %v5739_v23 = vmul.f32 -1.442695, %v1616_v10 }
 0x205   : > { %v9060_v34 = vpop.permute.xlu0 %2935  ;;  %v7171_v60 = vpop.eup %7170  ;;  %7194 = vpow2.f32 %v5725_v58  ;;  %v1604_v47 = vadd.f32 %v1436_v11, %v8406_v5  ;;  %v1466_v5 = vld [vmem:[%s10681_s2 + $0x3c0] sm:$0xff] }
 0x206   : > { %3420 = vperm.xlu0 %6704, %v7165_v29   ;;  %v7173_v39 = vpop.eup %7172  ;;  %v2272_v3 = vadd.f32 1.0, %v7171_v60  ;;  %7196 = vrcp.f32 %v2284_v45  ;;  %v5736_v29 = vmul.f32 -1.442695, %v1613_v6  ;;  %v5726_v6 = vmul.f32 -1.442695, %v1603_v36 }
 0x207   : > { %v9078_v18 = vpop.eup %7174  ;;  %7198 = vrcp.f32 %v2269_v44  ;;  %v5727_v10 = vmul.f32 -1.442695, %v1604_v47 }
 0x208   : > { %v9073_v22 = vpop.permute.xlu1 %2895  ;;  %3210 = vperm.xlu1 %6705, %v9017_v2   ;;  %10820 = vst [vmem:[#allocation41_spill] sm:$0xff] %v9078_v18  ;;  %v7177_v28 = vpop.eup %7176  ;;  %7200 = vpow2.f32 %v5752_v59 }
 0x209   : > { %v9076_v20 = vpop.permute.xlu0 %2945  ;;  %v7179_v31 = vpop.eup %7178  ;;  %v2299_v45 = vadd.f32 1.0, %v7177_v28  ;;  %7202 = vpow2.f32 %v5755_v53 }
 0x20a   : > { %3340 = vperm.xlu0 %6704, %v7173_v39   ;;  %v7181_v2 = vpop.eup %7180  ;;  %7204 = vrcp.f32 %v2272_v3  ;;  %v2302_v60 = vadd.f32 1.0, %v7179_v31  ;;  %v1631_v39 = vadd.f32 %v1463_v8, %v8584_v35  ;;  %v1447_v3 = vld [vmem:[%s10681_s2 + $0x328] sm:$0xff]  ;;  %v1634_v35 = vadd.f32 %v1466_v5, %v8611_v43 }
 0x20b   : > { %v7183_v4 = vpop.eup %7182  ;;  %7206 = vpow2.f32 %v5736_v29  ;;  %v10821_v29 = vld [vmem:[#allocation44_spill] sm:$0xff]  ;;  %v1451_v5 = vld [vmem:[%s10681_s2 + $0x348] sm:$0xff] }
 0x20c   : > { %v9088_v58 = vpop.permute.xlu1 %2900  ;;  %3220 = vperm.xlu1 %6705, %v9032_v19   ;;  %v7185_v1 = vpop.eup %7184  ;;  %7208 = vpow2.f32 %v5739_v23  ;;  %v5754_v47 = vmul.f32 -1.442695, %v1631_v39  ;;  %v2271_v8 = vadd.f32 1.0, %v7183_v4 }
 0x20d   : > { %v9091_v54 = vpop.permute.xlu0 %2955  ;;  %v7187_v44 = vpop.eup %7186  ;;  %v2283_v28 = vadd.f32 1.0, %v7185_v1  ;;  %7210 = vrcp.f32 %v2299_v45  ;;  %v1615_v1 = vadd.f32 %v1447_v3, %v8472_v48  ;;  %v1465_v3 = vld [vmem:[%s10681_s2 + $0x3b8] sm:$0xff] }
 0x20e   : > { %3280 = vperm.xlu0 %6704, %v7181_v2   ;;  %v7189_v19 = vpop.eup %7188  ;;  %v2286_v36 = vadd.f32 1.0, %v7187_v44  ;;  %7212 = vrcp.f32 %v2302_v60  ;;  %v1605_v2 = vadd.f32 %v1437_v15, %v10821_v29  ;;  %v5757_v44 = vmul.f32 -1.442695, %v1634_v35  ;;  %v1439_v15 = vld [vmem:[%s10681_s2 + $0x2e8] sm:$0xff]  ;;  %v2690_v35 = vld [vmem:[%s10682_s3] sm:$0xff] }
 0x20f   : > { %v9104_v53 = vpop.eup %7190  ;;  %7214 = vpow2.f32 %v5726_v6  ;;  %v2691_v29 = vld [vmem:[%s10682_s3 + $0x8] sm:$0xff]  ;;  %v3698_v55 = vmul.f32 %v8991_v13, %v2690_v35 }
 0x210   : > { %v9100_v59 = vpop.permute.xlu1 %2910  ;;  %3230 = vperm.xlu1 %6705, %v7169_v61   ;;  %v7193_v31 = vpop.eup %7192  ;;  %7216 = vpow2.f32 %v5727_v10  ;;  %v5728_v39 = vmul.f32 -1.442695, %v1605_v2  ;;  %v5738_v10 = vmul.f32 -1.442695, %v1615_v1  ;;  %v6708_v2 = vld [vmem:[%s9141_s22 + $0x4] ss:$44 sps:$4 sm:$0xff]   ;;  %v3699_v18 = vmul.f32 %v8979_v9, %v2691_v29 }
 0x211   : > { %v9102_v11 = vpop.permute.xlu0 %2965  ;;  %v7195_v61 = vpop.eup %7194  ;;  %7218 = vrcp.f32 %v2283_v28  ;;  %v1619_v28 = vadd.f32 %v1451_v5, %v8496_v24  ;;  %v2707_v1 = vld [vmem:[%s10682_s3 + $0x88] sm:$0xff]  ;;  %4543 = vmatprep.mubr.bf16.mxu0 %v6708_v2 }
 0x212   : > { %3430 = vperm.xlu0 %6704, %v7189_v19   ;;  %v7197_v23 = vpop.eup %7196  ;;  %v2274_v6 = vadd.f32 1.0, %v7195_v61  ;;  %7220 = vrcp.f32 %v2286_v36  ;;  %v2711_v29 = vld [vmem:[%s10682_s3 + $0xa8] sm:$0xff] }
 0x213   : > { %v7199_v60 = vpop.eup %7198  ;;  %7222 = vpow2.f32 %v5754_v47 }
 0x214   : > { %v9114_v45 = vpop.permute.xlu1 %2920  ;;  %3265 = vperm.xlu1 %6705, %v7193_v31   ;;  %v7201_v4 = vpop.eup %7200  ;;  %7224 = vrcp.f32 %v2271_v8 }
 0x215   : > { %v9116_v43 = vpop.permute.xlu0 %2975  ;;  %v7203_v48 = vpop.eup %7202  ;;  %v2301_v61 = vadd.f32 1.0, %v7201_v4  ;;  %7226 = vpow2.f32 %v5757_v44  ;;  %v1607_v44 = vadd.f32 %v1439_v15, %v8418_v33  ;;  %v2693_v4 = vld [vmem:[%s10682_s3 + $0x18] sm:$0xff] }
 0x216   : > { %3350 = vperm.xlu0 %6704, %v7197_v23   ;;  %v7205_v19 = vpop.eup %7204  ;;  %7228 = vrcp.f32 %v2274_v6  ;;  %v1449_v23 = vld [vmem:[%s10681_s2 + $0x338] sm:$0xff]  ;;  %v2304_v8 = vadd.f32 1.0, %v7203_v48  ;;  %v5742_v48 = vmul.f32 -1.442695, %v1619_v28  ;;  %v3715_v28 = vmul.f32 %v9076_v20, %v2707_v1  ;;  %v2695_v20 = vld [vmem:[%s10682_s3 + $0x28] sm:$0xff] }
 0x217   : > { %v7207_v24 = vpop.eup %7206  ;;  %7230 = vpow2.f32 %v5728_v39  ;;  %v2709_v33 = vld [vmem:[%s10682_s3 + $0x98] sm:$0xff]  ;;  %v1617_v38 = vadd.f32 %v1449_v23, %v8481_v49  ;;  %v3701_v9 = vmul.f32 %v9006_v32, %v2693_v4  ;;  %v2694_v32 = vld [vmem:[%s10682_s3 + $0x20] sm:$0xff] }
 0x218   : > { %v9134_v31 = vpop.permute.xlu1 %2930  ;;  %3275 = vperm.xlu1 %6705, %v7199_v60   ;;  %v7209_v47 = vpop.eup %7208  ;;  %v2706_v60 = vld [vmem:[%s10682_s3 + $0x80] sm:$0xff]  ;;  %7232 = vpow2.f32 %v5738_v10  ;;  %v2285_v10 = vadd.f32 1.0, %v7207_v24  ;;  %v2273_v24 = vadd.f32 1.0, %v9104_v53  ;;  %v1441_v23 = vld [vmem:[%s10681_s2 + $0x2f8] sm:$0xff]  ;;  %v3717_v4 = vmul.f32 %v9091_v54, %v2709_v33  ;;  %v1467_v33 = vld [vmem:[%s10681_s2 + $0x3c8] sm:$0xff] }
 0x219   : > { %v9136_v36 = vpop.permute.xlu0 %2985  ;;  %v7211_v5 = vpop.eup %7210  ;;  %7234 = vrcp.f32 %v2301_v61  ;;  %v2288_v35 = vadd.f32 1.0, %v7209_v47  ;;  %v5730_v61 = vmul.f32 -1.442695, %v1607_v44  ;;  %v3866_v44 = vpack.c.bf16 %v3699_v18, %v3698_v55  ;;  %v1453_v55 = vld [vmem:[%s10681_s2 + $0x358] sm:$0xff] }
 0x21a   : > { %3290 = vperm.xlu0 %6704, %v7205_v19   ;;  %v7213_v6 = vpop.eup %7212  ;;  %v1633_v19 = vadd.f32 %v1465_v3, %v8596_v37  ;;  %v2692_v37 = vld [vmem:[%s10682_s3 + $0x10] sm:$0xff]  ;;  %7236 = vrcp.f32 %v2304_v8  ;;  %v5740_v54 = vmul.f32 -1.442695, %v1617_v38  ;;  %v6711_v38 = vld [vmem:[%s9141_s22 + $0xc] ss:$44 sps:$4 sm:$0xff]  }
 0x21b   : > { %v9170_v2 = vpop.eup %7214  ;;  %7238 = vpow2.f32 %v5742_v48  ;;  %v3700_v18 = vmul.f32 %v8988_v21, %v2692_v37  ;;  %4640 = vmatprep.mubr.bf16.mxu1 %v6711_v38 }
 0x21c   : > { %v2941_v39 = vpop.permute.xlu1 %2940  ;;  %3425 = vperm.xlu1 %6705, %v7211_v5   ;;  %v7217_v13 = vpop.eup %7216  ;;  %v2708_v5 = vld [vmem:[%s10682_s3 + $0x90] sm:$0xff]  ;;  %v5756_v47 = vmul.f32 -1.442695, %v1633_v19  ;;  %7240 = vrcp.f32 %v2285_v10 }
 0x21d   : > { %v9168_v15 = vpop.permute.xlu0 %2995  ;;  %v3714_v3 = vmul.f32 %v2941_v39, %v2706_v60  ;;  %v7219_v12 = vpop.eup %7218  ;;  %v2276_v19 = vadd.f32 1.0, %v7217_v13  ;;  %7242 = vrcp.f32 %v2288_v35  ;;  %v2697_v39 = vld [vmem:[%s10682_s3 + $0x38] sm:$0xff]  ;;  %v3867_v37 = vpack.c.bf16 %v3701_v9, %v3700_v18 }
 0x21e   : > { %3440 = vperm.xlu0 %6704, %v7213_v6   ;;  %v7221_v60 = vpop.eup %7220  ;;  %v1637_v6 = vadd.f32 %v1469_v56, %v8624_v62  ;;  %v2710_v62 = vld [vmem:[%s10682_s3 + $0xa0] sm:$0xff]  ;;  %7244 = vrcp.f32 %v2273_v24  ;;  %v1609_v9 = vadd.f32 %v1441_v23, %v8435_v57  ;;  %v2275_v57 = vadd.f32 1.0, %v9170_v2 }
 0x21f   : > { %v3874_v1 = vpack.c.bf16 %v3715_v28, %v3714_v3  ;;  %v7223_v49 = vpop.eup %7222  ;;  %7246 = vpow2.f32 %v5756_v47  ;;  %v3703_v3 = vmul.f32 %v9039_v16, %v2695_v20  ;;  %v2713_v47 = vld [vmem:[%s10682_s3 + $0xb8] sm:$0xff]  ;;  %v1621_v23 = vadd.f32 %v1453_v55, %v8512_v41  ;;  %v2699_v55 = vld [vmem:[%s10682_s3 + $0x48] sm:$0xff] }
 0x220   : > { %v2951_v8 = vpop.permute.xlu1 %2950  ;;  %3345 = vperm.xlu1 %6705, %v7219_v12   ;;  %v7225_v12 = vpop.eup %7224  ;;  %v2303_v21 = vadd.f32 1.0, %v7223_v49  ;;  %7248 = vpow2.f32 %v5730_v61  ;;  %v5760_v24 = vmul.f32 -1.442695, %v1637_v6  ;;  %v1438_v61 = vld [vmem:[%s10681_s2 + $0x2e0] sm:$0xff] }
 0x221   : > { %v9189_v53 = vpop.permute.xlu0 %3005  ;;  %v3716_v48 = vmul.f32 %v2951_v8, %v2708_v5  ;;  %6322 = vmatprep.subr.bf16.mxu0 %v3874_v1  ;;  %v7227_v56 = vpop.eup %7226  ;;  %v2696_v1 = vld [vmem:[%s10682_s3 + $0x30] sm:$0xff]  ;;  %7250 = vrcp.f32 %v2276_v19  ;;  %v1450_v8 = vld [vmem:[%s10681_s2 + $0x340] sm:$0xff]  ;;  %v2715_v19 = vld [vmem:[%s10682_s3 + $0xc8] sm:$0xff] }
 0x222   : > { %3360 = vperm.xlu0 %6704, %v7221_v60   ;;  %6323 = vmatpush3.bf16.msra.mxu0 %v3866_v44  ;;  %v7229_v28 = vpop.eup %7228  ;;  %v3719_v60 = vmul.f32 %v9102_v11, %v2711_v29  ;;  %v2306_v11 = vadd.f32 1.0, %v7227_v56  ;;  %v3702_v29 = vmul.f32 %v9027_v7, %v2694_v32  ;;  %v2712_v44 = vld [vmem:[%s10682_s3 + $0xb0] sm:$0xff]  ;;  %7252 = vpow2.f32 %v5740_v54  ;;  %v2698_v6 = vld [vmem:[%s10682_s3 + $0x40] sm:$0xff] }
 0x223   : > { %v3875_v10 = vpack.c.bf16 %v3717_v4, %v3716_v48  ;;  %v9216_v5 = vpop.eup %7230  ;;  %7254 = vrcp.f32 %v2303_v21  ;;  %v1635_v7 = vadd.f32 %v1467_v33, %v8608_v42  ;;  %v5732_v56 = vmul.f32 -1.442695, %v1609_v9  ;;  %v2714_v33 = vld [vmem:[%s10682_s3 + $0xc0] sm:$0xff] }
 0x224   : > { %v2961_v13 = vpop.permute.xlu1 %2960  ;;  %3285 = vperm.xlu1 %6705, %v7225_v12   ;;  %v7233_v20 = vpop.eup %7232  ;;  %v3868_v32 = vpack.c.bf16 %v3703_v3, %v3702_v29  ;;  %v3705_v12 = vmul.f32 %v9073_v22, %v2697_v39  ;;  %7256 = vpow2.f32 %v5760_v24  ;;  %v3704_v54 = vmul.f32 %v9057_v27, %v2696_v1  ;;  %v1471_v27 = vld [vmem:[%s10681_s2 + $0x3e8] sm:$0xff] }
 0x225   : > { %v9213_v35 = vpop.permute.xlu0 %3015  ;;  %v3718_v16 = vmul.f32 %v2961_v13, %v2710_v62  ;;  %6324 = vmatprep.subr.bf16.mxu0 %v3875_v10  ;;  %v7235_v49 = vpop.eup %7234  ;;  %v2287_v41 = vadd.f32 1.0, %v7233_v20  ;;  %v3721_v62 = vmul.f32 %v9116_v43, %v2713_v47  ;;  %7258 = vrcp.f32 %v2306_v11  ;;  %v2700_v43 = vld [vmem:[%s10682_s3 + $0x50] sm:$0xff]  ;;  %v2701_v47 = vld [vmem:[%s10682_s3 + $0x58] sm:$0xff] }
 0x226   : > { %3300 = vperm.xlu0 %6704, %v7229_v28   ;;  %6325 = vmatpush3.bf16.msra.mxu0 %v3867_v37  ;;  %v7237_v48 = vpop.eup %7236  ;;  %v1606_v10 = vadd.f32 %v1438_v61, %v8422_v17  ;;  %v5744_v28 = vmul.f32 -1.442695, %v1621_v23  ;;  %v1618_v21 = vadd.f32 %v1450_v8, %v8498_v63  ;;  %7260 = vrcp.f32 %v2275_v57  ;;  %v2717_v17 = vld [vmem:[%s10682_s3 + $0xd8] sm:$0xff]  ;;  %v1468_v61 = vld [vmem:[%s10681_s2 + $0x3d0] sm:$0xff] }
 0x227   : > { %v3876_v4 = vpack.c.bf16 %v3719_v60, %v3718_v16  ;;  %v7239_v22 = vpop.eup %7238  ;;  %v5758_v13 = vmul.f32 -1.442695, %v1635_v7  ;;  %v3869_v38 = vpack.c.bf16 %v3705_v12, %v3704_v54  ;;  %v3706_v24 = vmul.f32 %v9088_v58, %v2698_v6  ;;  %v2716_v11 = vld [vmem:[%s10682_s3 + $0xd0] sm:$0xff] }
 0x228   : > { %v2971_v2 = vpop.permute.xlu1 %2970  ;;  %3435 = vperm.xlu1 %6705, %v7235_v49   ;;  %v7241_v39 = vpop.eup %7240  ;;  %7262 = vrcp.f32 %v2287_v41  ;;  %v3723_v16 = vmul.f32 %v9136_v36, %v2715_v19  ;;  %v2291_v9 = vadd.f32 1.0, %v7239_v22  ;;  %v3707_v8 = vmul.f32 %v9009_v50, %v2699_v55  ;;  %v2719_v50 = vld [vmem:[%s10682_s3 + $0xe8] sm:$0xff]  ;;  %v1440_v12 = vld [vmem:[%s10681_s2 + $0x2f0] sm:$0xff] }
 0x229   : > { %v9246_v18 = vpop.permute.xlu0 %3025  ;;  %v3720_v42 = vmul.f32 %v2971_v2, %v2712_v44  ;;  %6326 = vmatprep.subr.bf16.mxu0 %v3876_v4  ;;  %v7243_v3 = vpop.eup %7242  ;;  %7264 = vpow2.f32 %v5732_v56  ;;  %v5741_v36 = vmul.f32 -1.442695, %v1618_v21  ;;  %v2702_v44 = vld [vmem:[%s10682_s3 + $0x60] sm:$0xff]  ;;  %v5729_v23 = vmul.f32 -1.442695, %v1606_v10  ;;  %v1455_v22 = vld [vmem:[%s10681_s2 + $0x368] sm:$0xff] }
 0x22a   : > { %3450 = vperm.xlu0 %6704, %v7237_v48   ;;  %6327 = vmatpush3.bf16.msra.mxu0 %v3868_v32  ;;  %v7245_v60 = vpop.eup %7244  ;;  %7266 = vpow2.f32 %v5744_v28  ;;  %v3870_v6 = vpack.c.bf16 %v3707_v8, %v3706_v24  ;;  %v3708_v4 = vmul.f32 %v9100_v59, %v2700_v43  ;;  %v1639_v2 = vadd.f32 %v1471_v27, %v8642_v52  ;;  %v2703_v59 = vld [vmem:[%s10682_s3 + $0x68] sm:$0xff]  ;;  %v1452_v52 = vld [vmem:[%s10681_s2 + $0x350] sm:$0xff] }
 0x22b   : > { %v3877_v37 = vpack.c.bf16 %v3721_v62, %v3720_v42  ;;  %v7247_v58 = vpop.eup %7246  ;;  %7268 = vpow2.f32 %v5758_v13  ;;  %v3725_v41 = vmul.f32 %v9168_v15, %v2717_v17  ;;  %v3709_v56 = vmul.f32 %v9030_v14, %v2701_v47  ;;  %v2718_v15 = vld [vmem:[%s10682_s3 + $0xe0] sm:$0xff]  ;;  %v10822_v17 = vld [vmem:[#allocation45_spill] sm:$0xff]  ;;  %v2720_v47 = vld [vmem:[%s10682_s3 + $0xf0] sm:$0xff] }
 0x22c   : > { %v2981_v63 = vpop.permute.xlu1 %2980  ;;  %3355 = vperm.xlu1 %6705, %v7241_v39   ;;  %v7249_v29 = vpop.eup %7248  ;;  %v2305_v19 = vadd.f32 1.0, %v7247_v58  ;;  %7270 = vrcp.f32 %v2291_v9  ;;  %v2704_v39 = vld [vmem:[%s10682_s3 + $0x70] sm:$0xff]  ;;  %v3710_v14 = vmul.f32 %v9114_v45, %v2702_v44  ;;  %v3727_v27 = vmul.f32 %v9189_v53, %v2719_v50  ;;  %v10823_v58 = vld [vmem:[#allocation46_spill] sm:$0xff] }
 0x22d   : > { %v9268_v1 = vpop.permute.xlu0 %3035  ;;  %v3722_v20 = vmul.f32 %v2981_v63, %v2714_v33  ;;  %6328 = vmatprep.subr.bf16.mxu0 %v3877_v37  ;;  %v7251_v57 = vpop.eup %7250  ;;  %v2279_v42 = vadd.f32 1.0, %v7249_v29  ;;  %7272 = vpow2.f32 %v5741_v36  ;;  %v1636_v33 = vadd.f32 %v1468_v61, %v8627_v40  ;;  %v2721_v37 = vld [vmem:[%s10682_s3 + $0xf8] sm:$0xff]  ;;  %v1454_v50 = vld [vmem:[%s10681_s2 + $0x360] sm:$0xff] }
 0x22e   : > { %3370 = vperm.xlu0 %6704, %v7243_v3   ;;  %6329 = vmatpush3.bf16.msra.mxu0 %v3869_v38  ;;  %v7253_v32 = vpop.eup %7252  ;;  %7274 = vpow2.f32 %v5729_v23  ;;  %v3871_v43 = vpack.c.bf16 %v3709_v56, %v3708_v4  ;;  %v5762_v40 = vmul.f32 -1.442695, %v1639_v2  ;;  %v1608_v63 = vadd.f32 %v1440_v12, %v10822_v17  ;;  %v2705_v61 = vld [vmem:[%s10682_s3 + $0x78] sm:$0xff] }
 0x22f   : > { %v3878_v49 = vpack.c.bf16 %v3723_v16, %v3722_v20  ;;  %v7255_v62 = vpop.eup %7254  ;;  %v2289_v21 = vadd.f32 1.0, %v7253_v32  ;;  %7276 = vrcp.f32 %v2305_v19  ;;  %v1623_v20 = vadd.f32 %v1455_v22, %v8526_v51  ;;  %v1457_v23 = vld [vmem:[%s10681_s2 + $0x378] sm:$0xff]  ;;  %v1456_v19 = vld [vmem:[%s10681_s2 + $0x370] sm:$0xff] }
 0x230   : > { %v2991_v48 = vpop.permute.xlu1 %2990  ;;  %3295 = vperm.xlu1 %6705, %v7245_v60   ;;  %v7257_v54 = vpop.eup %7256  ;;  %7278 = vrcp.f32 %v2279_v42  ;;  %v3711_v60 = vmul.f32 %v9042_v25, %v2703_v59  ;;  %v1620_v53 = vadd.f32 %v1452_v52, %v10823_v58  ;;  %v5759_v9 = vmul.f32 -1.442695, %v1636_v33 }
 0x231   : > { %v9288_v7 = vpop.permute.xlu0 %3045  ;;  %v3724_v55 = vmul.f32 %v2991_v48, %v2716_v11  ;;  %6330 = vmatprep.subr.bf16.mxu0 %v3878_v49  ;;  %v7259_v28 = vpop.eup %7258  ;;  %v2309_v45 = vadd.f32 1.0, %v7257_v54  ;;  %v2262_v29 = vadd.f32 1.0, %v8997_v46  ;;  %7280 = vrcp.f32 %v2289_v21 }
 0x232   : > { %3310 = vperm.xlu0 %6704, %v7251_v57   ;;  %6331 = vmatpush3.bf16.msra.mxu0 %v3870_v6  ;;  %v7261_v24 = vpop.eup %7260  ;;  %v3872_v25 = vpack.c.bf16 %v3711_v60, %v3710_v14  ;;  %v3712_v36 = vmul.f32 %v9134_v31, %v2704_v39  ;;  %v2277_v57 = vadd.f32 1.0, %v9216_v5  ;;  %7282 = vpow2.f32 %v5762_v40  ;;  %v1473_v5 = vld [vmem:[%s10681_s2 + $0x3f8] sm:$0xff]  ;;  %v10824_v39 = vld [vmem:[#allocation47_spill] sm:$0xff] }
 0x233   : > { %v3879_v10 = vpack.c.bf16 %v3725_v41, %v3724_v55  ;;  %v7263_v16 = vpop.eup %7262  ;;  %v3729_v6 = vmul.f32 %v9213_v35, %v2721_v37  ;;  %v5731_v31 = vmul.f32 -1.442695, %v1608_v63  ;;  %7284 = vrcp.f32 %v2309_v45  ;;  %v6706_v55 = vld [vmem:[%s9141_s22] ss:$44 sps:$4 sm:$0xff]   ;;  %v10826_v63 = vld [vmem:[#allocation49_spill] sm:$0xff] }
 0x234   : > { %v3001_v3 = vpop.permute.xlu1 %3000  ;;  %3445 = vperm.xlu1 %6705, %v7255_v62   ;;  %v7265_v11 = vpop.eup %7264  ;;  %v3713_v48 = vmul.f32 %v9060_v34, %v2705_v61  ;;  %v5746_v35 = vmul.f32 -1.442695, %v1623_v20  ;;  %v5743_v32 = vmul.f32 -1.442695, %v1620_v53  ;;  %7286 = vpow2.f32 %v5759_v9  ;;  %v10827_v9 = vld [vmem:[#allocation16_spill] sm:$0xff] }
 0x235   : > { %v9316_v13 = vpop.permute.xlu0 %3055  ;;  %v3726_v38 = vmul.f32 %v3001_v3, %v2718_v15  ;;  %6332 = vmatprep.subr.bf16.mxu0 %v3879_v10  ;;  %v7267_v51 = vpop.eup %7266  ;;  %7288 = vrcp.f32 %v2262_v29  ;;  %v1641_v22 = vadd.f32 %v1473_v5, %v8659_v26  ;;  %v1625_v56 = vadd.f32 %v1457_v23, %v8543_v30  ;;  %v6712_v15 = vld [vmem:[%s9141_s22 + $0x5c] ss:$44 sps:$4 sm:$0xff]   ;;  %v10825_v30 = vld [vmem:[#allocation48_spill] sm:$0xff] }
 0x236   : > { %3460 = vperm.xlu0 %6704, %v7259_v28   ;;  %6333 = vmatpush3.bf16.msra.mxu0 %v3871_v43  ;;  %v7269_v46 = vpop.eup %7268  ;;  %v3873_v2 = vpack.c.bf16 %v3713_v48, %v3712_v36  ;;  %7290 = vrcp.f32 %v2277_v57  ;;  %v2293_v62 = vadd.f32 1.0, %v7267_v51  ;;  %v2281_v33 = vadd.f32 1.0, %v7265_v11  ;;  %v1470_v28 = vld [vmem:[%s10681_s2 + $0x3e0] sm:$0xff]  ;;  %v1472_v5 = vld [vmem:[%s10681_s2 + $0x3f0] sm:$0xff] }
 0x237   : > { %v3880_v8 = vpack.c.bf16 %v3727_v27, %v3726_v38  ;;  %v7271_v12 = vpop.eup %7270  ;;  %v2307_v42 = vadd.f32 1.0, %v7269_v46  ;;  %7292 = vpow2.f32 %v5731_v31  ;;  %v1622_v10 = vadd.f32 %v1454_v50, %v10824_v39  ;;  %v1491_v38 = vld [vmem:[%s10681_s2 + $0x488] sm:$0xff]  ;;  %v6715_v36 = vld [vmem:[%s9141_s22 + $0xb4] ss:$44 sps:$4 sm:$0xff]  }
 0x238   : > { %v3011_v44 = vpop.permute.xlu1 %3010  ;;  %3365 = vperm.xlu1 %6705, %v7263_v16   ;;  %v7273_v34 = vpop.eup %7272  ;;  %7294 = vpow2.f32 %v5746_v35  ;;  %v1624_v37 = vadd.f32 %v1456_v19, %v10825_v30  ;;  %v5764_v3 = vmul.f32 -1.442695, %v1641_v22  ;;  %v5748_v27 = vmul.f32 -1.442695, %v1625_v56  ;;  %v10828_v31 = vld [vmem:[#allocation3_spill] sm:$0xff]  ;;  %v10829_v35 = vld [vmem:[#allocation41_spill] sm:$0xff] }
 0x239   : > { %v9331_v49 = vpop.permute.xlu0 %3065  ;;  %v3728_v4 = vmul.f32 %v3011_v44, %v2720_v47  ;;  %6334 = vmatprep.subr.bf16.mxu0 %v3880_v8  ;;  %v7275_v52 = vpop.eup %7274  ;;  %v2290_v43 = vadd.f32 1.0, %v7273_v34  ;;  %7296 = vpow2.f32 %v5743_v32  ;;  %v5745_v17 = vmul.f32 -1.442695, %v1622_v10  ;;  %v6714_v8 = vld [vmem:[%s9141_s22 + $0x58] ss:$44 sps:$4 sm:$0xff]  }
 0x23a   : > { %3235 = vperm.xlu0 %6704, %v9062_v0   ;;  %6335 = vmatpush3.bf16.msra.mxu0 %v3872_v25  ;;  %v7277_v54 = vpop.eup %7276  ;;  %7298 = vrcp.f32 %v2307_v42  ;;  %v1638_v45 = vadd.f32 %v1470_v28, %v10826_v63  ;;  %v2278_v47 = vadd.f32 1.0, %v7275_v52  ;;  %v5747_v53 = vmul.f32 -1.442695, %v1624_v37  ;;  %v1475_v25 = vld [vmem:[%s10681_s2 + $0x408] sm:$0xff]  ;;  %v1493_v19 = vld [vmem:[%s10681_s2 + $0x498] sm:$0xff]  ;;  %v10832_v22 = vld [vmem:[#allocation50_spill] sm:$0xff] }
 0x23b   : > { %v3881_v0 = vpack.c.bf16 %v3729_v6, %v3728_v4  ;;  %v7279_v21 = vpop.eup %7278  ;;  %7300 = vrcp.f32 %v2293_v62  ;;  %v1659_v61 = vadd.f32 %v1491_v38, %v10827_v9  ;;  %v1643_v50 = vadd.f32 %v1475_v25, %v10828_v31  ;;  %v10833_v39 = vld [vmem:[#allocation18_spill] sm:$0xff]  ;;  %v6717_v28 = vld [vmem:[%s9141_s22 + $0xb0] ss:$44 sps:$4 sm:$0xff]   ;;  %v6721_v37 = vld [vmem:[%s9141_s22 + $0x10c] ss:$44 sps:$4 sm:$0xff]  }
 0x23c   : > { %v9349_v59 = vpop.permute.xlu1 %3020  ;;  %3305 = vperm.xlu1 %6705, %v7261_v24   ;;  %v7281_v40 = vpop.eup %7280  ;;  %7302 = vrcp.f32 %v2281_v33  ;;  %v5761_v51 = vmul.f32 -1.442695, %v1638_v45  ;;  %v1640_v52 = vadd.f32 %v1472_v5, %v10832_v22  ;;  %v1661_v10 = vadd.f32 %v1493_v19, %v10833_v39  ;;  %v1477_v30 = vld [vmem:[%s10681_s2 + $0x418] sm:$0xff]  ;;  %v10835_v25 = vld [vmem:[#allocation2_spill] sm:$0xff]  ;;  %v1479_v5 = vld [vmem:[%s10681_s2 + $0x428] sm:$0xff] }
 0x23d   : > { %v9351_v41 = vpop.permute.xlu0 %3075  ;;  %6336 = vmatprep.subr.bf16.mxu0 %v3881_v0  ;;  %v7283_v24 = vpop.eup %7282  ;;  %7304 = vrcp.f32 %v2290_v43  ;;  %v5782_v48 = vmul.f32 -1.442695, %v1659_v61  ;;  %v10830_v0 = vld [vmem:[#allocation36_spill] sm:$0xff]  ;;  %v5766_v33 = vmul.f32 -1.442695, %v1643_v50  ;;  %v1495_v61 = vld [vmem:[%s10681_s2 + $0x4a8] sm:$0xff] }
 0x23e   : > { %3385 = vperm.xlu0 %6704, %v7271_v12   ;;  %6337 = vmatpush3.bf16.msra.mxu0 %v3873_v2  ;;  %v7285_v60 = vpop.eup %7284  ;;  %7306 = vpow2.f32 %v5764_v3  ;;  %v2311_v29 = vadd.f32 1.0, %v7283_v24  ;;  %v2265_v12 = vadd.f32 1.0, %v10830_v0  ;;  %v5763_v38 = vmul.f32 -1.442695, %v1640_v52  ;;  %v1474_v24 = vld [vmem:[%s10681_s2 + $0x400] sm:$0xff] }
 0x23f   : > { %v7287_v58 = vpop.eup %7286  ;;  %7308 = vpow2.f32 %v5748_v27  ;;  %v6727_v19 = vld [vmem:[%s9141_s22 + $0x164] ss:$44 sps:$4 sm:$0xff]  }
 0x240   : > { %v9361_v26 = vpop.permute.xlu1 %3030  ;;  %3455 = vperm.xlu1 %6705, %v7277_v54   ;;  %v9376_v11 = vpop.eup %7288  ;;  %7310 = vpow2.f32 %v5745_v17  ;;  %v2308_v23 = vadd.f32 1.0, %v7287_v58  ;;  %v5784_v58 = vmul.f32 -1.442695, %v1661_v10  ;;  %v10838_v52 = vld [vmem:[#allocation6_spill] sm:$0xff] }
 0x241   : > { %v9363_v14 = vpop.permute.xlu0 %3085  ;;  %4544 = vmatmul.mubr.bf16.vlgmr.msra.gmra.mrb[0].mxu0 %v6706_v55  ;;  %v7291_v44 = vpop.eup %7290  ;;  %7312 = vrcp.f32 %v2278_v47  ;;  %v10831_v55 = vld [vmem:[#allocation39_spill] sm:$0xff] }
 0x242   : > { %3325 = vperm.xlu0 %6704, %v7279_v21   ;;  %4551 = vmatprep.mubr.bf16.mxu0 %v6712_v15  ;;  %v7293_v57 = vpop.eup %7292  ;;  %7314 = vpow2.f32 %v5747_v53  ;;  %v2264_v34 = vadd.f32 1.0, %v10831_v55 }
 0x243   : > { %v7295_v46 = vpop.eup %7294  ;;  %7316 = vrcp.f32 %v2311_v29  ;;  %v2280_v42 = vadd.f32 1.0, %v7293_v57  ;;  %v1490_v57 = vld [vmem:[%s10681_s2 + $0x480] sm:$0xff] }
 0x244   : > { %v9370_v16 = vpop.permute.xlu1 %3040  ;;  %3375 = vperm.xlu1 %6705, %v7281_v40   ;;  %v7297_v32 = vpop.eup %7296  ;;  %7318 = vpow2.f32 %v5761_v51  ;;  %v2295_v43 = vadd.f32 1.0, %v7295_v46 }
 0x245   : > { %v9372_v20 = vpop.permute.xlu0 %3095  ;;  %v7299_v2 = vpop.eup %7298  ;;  %7320 = vrcp.f32 %v2308_v23  ;;  %v2292_v40 = vadd.f32 1.0, %v7297_v32  ;;  %v6723_v32 = vld [vmem:[%s9141_s22 + $0x108] ss:$44 sps:$4 sm:$0xff]  }
 0x246   : > { %3475 = vperm.xlu0 %6704, %v7285_v60   ;;  %v7301_v62 = vpop.eup %7300  ;;  %7322 = vpow2.f32 %v5782_v48  ;;  %v10834_v60 = vld [vmem:[#allocation4_spill] sm:$0xff] }
 0x247   : > { %v7303_v54 = vpop.eup %7302  ;;  %7324 = vrcp.f32 %v2265_v12  ;;  %v1645_v47 = vadd.f32 %v1477_v30, %v10834_v60  ;;  %v10836_v48 = vld [vmem:[#allocation20_spill] sm:$0xff] }
 0x248   : > { %v9382_v6 = vpop.permute.xlu1 %3050  ;;  %3315 = vperm.xlu1 %6705, %v7291_v44   ;;  %v7305_v21 = vpop.eup %7304  ;;  %7326 = vrcp.f32 %v2264_v34  ;;  %v10837_v34 = vld [vmem:[#allocation17_spill] sm:$0xff] }
 0x249   : > { %v9384_v4 = vpop.permute.xlu0 %3105  ;;  %4552 = vmatmul.mubr.bf16.gmra.mrb[4].mxu0 %v6714_v8  ;;  %v7307_v3 = vpop.eup %7306  ;;  %7328 = vrcp.f32 %v2280_v42  ;;  %v5768_v50 = vmul.f32 -1.442695, %v1645_v47 }
 0x24a   : > { %3245 = vperm.xlu0 %6704, %v10829_v35   ;;  %4559 = vmatprep.mubr.bf16.mxu0 %v6715_v36  ;;  %v7309_v27 = vpop.eup %7308  ;;  %7330 = vpow2.f32 %v5766_v33  ;;  %v2313_v9 = vadd.f32 1.0, %v7307_v3  ;;  %v1642_v36 = vadd.f32 %v1474_v24, %v10835_v25  ;;  %v1663_v35 = vadd.f32 %v1495_v61, %v10836_v48  ;;  %v1497_v3 = vld [vmem:[%s10681_s2 + $0x4b8] sm:$0xff] }
 0x24b   : > { %v7311_v45 = vpop.eup %7310  ;;  %7332 = vrcp.f32 %v2295_v43  ;;  %v2297_v29 = vadd.f32 1.0, %v7309_v27  ;;  %v2722_v43 = vld [vmem:[%s10682_s3 + $0x100] sm:$0xff]  ;;  %v2741_v48 = vld [vmem:[%s10682_s3 + $0x198] sm:$0xff] }
 0x24c   : > { %v9397_v56 = vpop.permute.xlu1 %3060  ;;  %3465 = vperm.xlu1 %6705, %v7299_v2   ;;  %v7313_v53 = vpop.eup %7312  ;;  %7334 = vrcp.f32 %v2292_v40  ;;  %v2294_v51 = vadd.f32 1.0, %v7311_v45  ;;  %v5765_v55 = vmul.f32 -1.442695, %v1642_v36  ;;  %v2739_v40 = vld [vmem:[%s10682_s3 + $0x188] sm:$0xff]  ;;  %v2738_v27 = vld [vmem:[%s10682_s3 + $0x180] sm:$0xff]  ;;  %v3730_v61 = vmul.f32 %v9349_v59, %v2722_v43  ;;  %v1481_v36 = vld [vmem:[%s10681_s2 + $0x438] sm:$0xff] }
 0x24d   : > { %v9399_v15 = vpop.permute.xlu0 %3115  ;;  %v7315_v8 = vpop.eup %7314  ;;  %7336 = vpow2.f32 %v5763_v38  ;;  %v2723_v45 = vld [vmem:[%s10682_s3 + $0x108] sm:$0xff]  ;;  %v3747_v59 = vmul.f32 %v9384_v4, %v2739_v40 }
 0x24e   : > { %3395 = vperm.xlu0 %6704, %v7301_v62   ;;  %v7317_v44 = vpop.eup %7316  ;;  %7338 = vpow2.f32 %v5784_v58  ;;  %v2296_v12 = vadd.f32 1.0, %v7315_v8  ;;  %v1658_v62 = vadd.f32 %v1490_v57, %v10837_v34  ;;  %v10839_v58 = vld [vmem:[#allocation5_spill] sm:$0xff]  ;;  %v2724_v57 = vld [vmem:[%s10682_s3 + $0x110] sm:$0xff]  ;;  %v3749_v40 = vmul.f32 %v9399_v15, %v2741_v48  ;;  %v2742_v15 = vld [vmem:[%s10682_s3 + $0x1a0] sm:$0xff] }
 0x24f   : > { %v7319_v31 = vpop.eup %7318  ;;  %7340 = vrcp.f32 %v2313_v9  ;;  %v1492_v9 = vld [vmem:[%s10681_s2 + $0x490] sm:$0xff] }
 0x250   : > { %v9410_v17 = vpop.permute.xlu1 %3070  ;;  %3380 = vperm.xlu1 %6705, %v7305_v21   ;;  %v7321_v0 = vpop.eup %7320  ;;  %7342 = vrcp.f32 %v2297_v29  ;;  %v2310_v22 = vadd.f32 1.0, %v7319_v31  ;;  %v5786_v21 = vmul.f32 -1.442695, %v1663_v35  ;;  %v5781_v24 = vmul.f32 -1.442695, %v1658_v62  ;;  %v2740_v35 = vld [vmem:[%s10682_s3 + $0x190] sm:$0xff] }
 0x251   : > { %v9412_v63 = vpop.permute.xlu0 %3125  ;;  %4560 = vmatmul.mubr.bf16.gmra.mrb[8].mxu0 %v6717_v28  ;;  %v7323_v2 = vpop.eup %7322  ;;  %7344 = vrcp.f32 %v2294_v51  ;;  %v1476_v28 = vld [vmem:[%s10681_s2 + $0x410] sm:$0xff] }
 0x252   : > { %3335 = vperm.xlu0 %6704, %v7303_v54   ;;  %4567 = vmatprep.mubr.bf16.mxu0 %v6721_v37  ;;  %v7325_v42 = vpop.eup %7324  ;;  %v1647_v54 = vadd.f32 %v1479_v5, %v10838_v52  ;;  %7346 = vpow2.f32 %v5768_v50  ;;  %v2331_v37 = vadd.f32 1.0, %v7323_v2  ;;  %v3731_v5 = vmul.f32 %v9246_v18, %v2723_v45  ;;  %v10842_v62 = vld [vmem:[#allocation8_spill] sm:$0xff] }
 0x253   : > { %v9438_v10 = vpop.eup %7326  ;;  %7348 = vrcp.f32 %v2296_v12  ;;  %v10841_v12 = vld [vmem:[#allocation19_spill] sm:$0xff]  ;;  %v3732_v52 = vmul.f32 %v9361_v26, %v2724_v57 }
 0x254   : > { %v9422_v23 = vpop.permute.xlu1 %3080  ;;  %3320 = vperm.xlu1 %6705, %v7313_v53   ;;  %v9446_v30 = vpop.eup %7328  ;;  %7350 = vpow2.f32 %v5765_v55  ;;  %v5770_v47 = vmul.f32 -1.442695, %v1647_v54  ;;  %v1644_v53 = vadd.f32 %v1476_v28, %v10839_v58  ;;  %v1660_v4 = vadd.f32 %v1492_v9, %v10841_v12  ;;  %v6733_v55 = vld [vmem:[%s9141_s22 + $0x1bc] ss:$44 sps:$4 sm:$0xff]  }
 0x255   : > { %v9424_v46 = vpop.permute.xlu0 %3135  ;;  %v7331_v38 = vpop.eup %7330  ;;  %7352 = vrcp.f32 %v2310_v22  ;;  %v1478_v22 = vld [vmem:[%s10681_s2 + $0x420] sm:$0xff] }
 0x256   : > { %3485 = vperm.xlu0 %6704, %v7317_v44   ;;  %v7333_v60 = vpop.eup %7332  ;;  %7354 = vpow2.f32 %v5786_v21  ;;  %v10840_v44 = vld [vmem:[#allocation22_spill] sm:$0xff]  ;;  %v2315_v50 = vadd.f32 1.0, %v7331_v38  ;;  %v5767_v34 = vmul.f32 -1.442695, %v1644_v53  ;;  %v3882_v21 = vpack.c.bf16 %v3731_v5, %v3730_v61  ;;  %v10843_v53 = vld [vmem:[#allocation7_spill] sm:$0xff]  ;;  %v10844_v5 = vld [vmem:[#allocation24_spill] sm:$0xff] }
 0x257   : > { %v7335_v25 = vpop.eup %7334  ;;  %v1665_v51 = vadd.f32 %v1497_v3, %v10840_v44  ;;  %7356 = vrcp.f32 %v2331_v37  ;;  %v2726_v3 = vld [vmem:[%s10682_s3 + $0x120] sm:$0xff]  ;;  %v1646_v9 = vadd.f32 %v1478_v22, %v10843_v53  ;;  %v5783_v61 = vmul.f32 -1.442695, %v1660_v4  ;;  %v1483_v44 = vld [vmem:[%s10681_s2 + $0x448] sm:$0xff]  ;;  %v2745_v4 = vld [vmem:[%s10682_s3 + $0x1b8] sm:$0xff] }
 0x258   : > { %v9434_v33 = vpop.permute.xlu1 %3090  ;;  %3470 = vperm.xlu1 %6705, %v7321_v0   ;;  %7358 = vpow2.f32 %v5781_v24  ;;  %v1499_v24 = vld [vmem:[%s10681_s2 + $0x4c8] sm:$0xff]  ;;  %v3734_v57 = vmul.f32 %v9370_v16, %v2726_v3 }
 0x259   : > { %v9436_v39 = vpop.permute.xlu0 %3145  ;;  %4568 = vmatmul.mubr.bf16.gmra.mrb[12].mxu0 %v6723_v32  ;;  %v6729_v32 = vld [vmem:[%s9141_s22 + $0x160] ss:$44 sps:$4 sm:$0xff]   ;;  %7360 = vpow2.f32 %v5770_v47  ;;  %v5788_v37 = vmul.f32 -1.442695, %v1665_v51  ;;  %v1667_v48 = vadd.f32 %v1499_v24, %v10844_v5  ;;  %v3753_v24 = vmul.f32 %v9424_v46, %v2745_v4  ;;  %v1496_v5 = vld [vmem:[%s10681_s2 + $0x4b0] sm:$0xff] }
 0x25a   : > { %3255 = vperm.xlu0 %6704, %v7325_v42   ;;  %4575 = vmatprep.mubr.bf16.mxu0 %v6727_v19  ;;  %v2725_v19 = vld [vmem:[%s10682_s3 + $0x118] sm:$0xff]  ;;  %v1649_v42 = vadd.f32 %v1481_v36, %v10842_v62  ;;  %7362 = vrcp.f32 %v2315_v50  ;;  %v1494_v50 = vld [vmem:[%s10681_s2 + $0x4a0] sm:$0xff] }
 0x25b   : > { %v3733_v45 = vmul.f32 %v9268_v1, %v2725_v19  ;;  %7364 = vpow2.f32 %v5767_v34  ;;  %v2744_v19 = vld [vmem:[%s10682_s3 + $0x1b0] sm:$0xff]  ;;  %v2729_v62 = vld [vmem:[%s10682_s3 + $0x138] sm:$0xff]  ;;  %v2746_v46 = vld [vmem:[%s10682_s3 + $0x1c0] sm:$0xff] }
 0x25c   : > { %v3101_v8 = vpop.permute.xlu1 %3100  ;;  %3240 = vperm.xlu1 %6705, %v9376_v11   ;;  %v7337_v11 = vpop.eup %7336  ;;  %v5772_v36 = vmul.f32 -1.442695, %v1649_v42  ;;  %7366 = vpow2.f32 %v5788_v37  ;;  %v6739_v42 = vld [vmem:[%s9141_s22 + $0x214] ss:$44 sps:$4 sm:$0xff]  }
 0x25d   : > { %v9466_v29 = vpop.permute.xlu0 %3155  ;;  %v3746_v31 = vmul.f32 %v3101_v8, %v2738_v27  ;;  %v7339_v0 = vpop.eup %7338  ;;  %v2312_v58 = vadd.f32 1.0, %v7337_v11  ;;  %v2727_v8 = vld [vmem:[%s10682_s3 + $0x128] sm:$0xff]  ;;  %v3883_v51 = vpack.c.bf16 %v3733_v45, %v3732_v52  ;;  %v10846_v52 = vld [vmem:[#allocation21_spill] sm:$0xff] }
 0x25e   : > { %3405 = vperm.xlu0 %6704, %v7333_v60   ;;  %v7341_v18 = vpop.eup %7340  ;;  %v2333_v26 = vadd.f32 1.0, %v7339_v0  ;;  %v2743_v60 = vld [vmem:[%s10682_s3 + $0x1a8] sm:$0xff]  ;;  %v3735_v12 = vmul.f32 %v9288_v7, %v2727_v8 }
 0x25f   : > { %v3890_v2 = vpack.c.bf16 %v3747_v59, %v3746_v31  ;;  %v7343_v43 = vpop.eup %7342  ;;  %v3751_v16 = vmul.f32 %v9412_v63, %v2743_v60 }
 0x260   : > { %v3111_v54 = vpop.permute.xlu1 %3110  ;;  %3390 = vperm.xlu1 %6705, %v7335_v25   ;;  %v9500_v38 = vpop.eup %7344  ;;  %7368 = vrcp.f32 %v2333_v26  ;;  %v2730_v26 = vld [vmem:[%s10682_s3 + $0x140] sm:$0xff] }
 0x261   : > { %v9494_v28 = vpop.permute.xlu0 %3165  ;;  %v3748_v27 = vmul.f32 %v3111_v54, %v2740_v35  ;;  %6386 = vmatprep.subr.bf16.mxu1 %v3890_v2  ;;  %4576 = vmatmul.mubr.bf16.gmra.mrb[16].mxu0 %v6729_v32  ;;  %v7347_v47 = vpop.eup %7346  ;;  %v2728_v35 = vld [vmem:[%s10682_s3 + $0x130] sm:$0xff]  ;;  %v6735_v2 = vld [vmem:[%s9141_s22 + $0x1b8] ss:$44 sps:$4 sm:$0xff]   ;;  %7370 = vpow2.f32 %v5783_v61  ;;  %v1662_v54 = vadd.f32 %v1494_v50, %v10846_v52 }
 0x262   : > { %3495 = vperm.xlu0 %6704, %v7341_v18   ;;  %6387 = vmatpush3.bf16.msra.mxu1 %v3882_v21  ;;  %v9516_v25 = vpop.eup %7348  ;;  %v2317_v0 = vadd.f32 1.0, %v7347_v47  ;;  %v10845_v18 = vld [vmem:[#allocation9_spill] sm:$0xff]  ;;  %7372 = vrcp.f32 %v2312_v58  ;;  %v3884_v21 = vpack.c.bf16 %v3735_v12, %v3734_v57  ;;  %v2747_v47 = vld [vmem:[%s10682_s3 + $0x1c8] sm:$0xff]  ;;  %v3738_v57 = vmul.f32 %v9397_v56, %v2730_v26 }
 0x263   : > { %v3891_v1 = vpack.c.bf16 %v3749_v40, %v3748_v27  ;;  %4583 = vmatprep.mubr.bf16.mxu0 %v6733_v55  ;;  %v9525_v11 = vpop.eup %7350  ;;  %v5769_v55 = vmul.f32 -1.442695, %v1646_v9  ;;  %v1651_v34 = vadd.f32 %v1483_v44, %v10845_v18  ;;  %7374 = vpow2.f32 %v5772_v36  ;;  %v1480_v9 = vld [vmem:[%s10681_s2 + $0x430] sm:$0xff]  ;;  %v10849_v18 = vld [vmem:[#allocation10_spill] sm:$0xff] }
 0x264   : > { %v3121_v59 = vpop.permute.xlu1 %3120  ;;  %3330 = vperm.xlu1 %6705, %v9446_v30   ;;  %v7353_v30 = vpop.eup %7352  ;;  %v5790_v27 = vmul.f32 -1.442695, %v1667_v48  ;;  %7376 = vrcp.f32 %v2317_v0  ;;  %v5785_v44 = vmul.f32 -1.442695, %v1662_v54  ;;  %v10847_v48 = vld [vmem:[#allocation26_spill] sm:$0xff]  ;;  %v10848_v0 = vld [vmem:[#allocation51_spill] sm:$0xff] }
 0x265   : > { %v9523_v31 = vpop.permute.xlu0 %3175  ;;  %v3750_v32 = vmul.f32 %v3121_v59, %v2742_v15  ;;  %6388 = vmatprep.subr.bf16.mxu1 %v3891_v1  ;;  %v7355_v63 = vpop.eup %7354  ;;  %v3737_v15 = vmul.f32 %v9316_v13, %v2729_v62  ;;  %7378 = vpow2.f32 %v5769_v55  ;;  %v5774_v53 = vmul.f32 -1.442695, %v1651_v34  ;;  %v2731_v13 = vld [vmem:[%s10682_s3 + $0x148] sm:$0xff]  ;;  %v1485_v1 = vld [vmem:[%s10681_s2 + $0x458] sm:$0xff] }
 0x266   : > { %3415 = vperm.xlu0 %6704, %v7343_v43   ;;  %6389 = vmatpush3.bf16.msra.mxu1 %v3883_v51  ;;  %v7357_v22 = vpop.eup %7356  ;;  %v3736_v43 = vmul.f32 %v9382_v6, %v2728_v35  ;;  %v2335_v60 = vadd.f32 1.0, %v7355_v63  ;;  %v1501_v6 = vld [vmem:[%s10681_s2 + $0x4d8] sm:$0xff]  ;;  %7380 = vpow2.f32 %v5790_v27  ;;  %v1648_v12 = vadd.f32 %v1480_v9, %v10848_v0  ;;  %v2734_v27 = vld [vmem:[%s10682_s3 + $0x160] sm:$0xff]  ;;  %v6747_v0 = vld [vmem:[%s9141_s22 + $0x268] ss:$44 sps:$4 sm:$0xff]  }
 0x267   : > { %v3892_v7 = vpack.c.bf16 %v3751_v16, %v3750_v32  ;;  %v7359_v40 = vpop.eup %7358  ;;  %v1669_v35 = vadd.f32 %v1501_v6, %v10847_v48  ;;  %v2732_v16 = vld [vmem:[%s10682_s3 + $0x150] sm:$0xff]  ;;  %v3755_v32 = vmul.f32 %v9436_v39, %v2747_v47  ;;  %v3739_v4 = vmul.f32 %v9331_v49, %v2731_v13  ;;  %v2733_v49 = vld [vmem:[%s10682_s3 + $0x158] sm:$0xff]  ;;  %v2751_v6 = vld [vmem:[%s10682_s3 + $0x1e8] sm:$0xff] }
 0x268   : > { %v3131_v37 = vpop.permute.xlu1 %3130  ;;  %3480 = vperm.xlu1 %6705, %v7353_v30   ;;  %v7361_v58 = vpop.eup %7360  ;;  %v2330_v36 = vadd.f32 1.0, %v7359_v40  ;;  %v3885_v51 = vpack.c.bf16 %v3737_v15, %v3736_v43  ;;  %7382 = vrcp.f32 %v2335_v60  ;;  %v2748_v39 = vld [vmem:[%s10682_s3 + $0x1d0] sm:$0xff]  ;;  %v2314_v55 = vadd.f32 1.0, %v9525_v11 }
 0x269   : > { %v9550_v3 = vpop.permute.xlu0 %3185  ;;  %v3752_v45 = vmul.f32 %v3131_v37, %v2744_v19  ;;  %6390 = vmatprep.subr.bf16.mxu1 %v3892_v7  ;;  %4584 = vmatmul.mubr.bf16.gmra.mrb[20].mxu0 %v6735_v2  ;;  %v7363_v8 = vpop.eup %7362  ;;  %v2319_v30 = vadd.f32 1.0, %v7361_v58  ;;  %v2749_v19 = vld [vmem:[%s10682_s3 + $0x1d8] sm:$0xff]  ;;  %7384 = vpow2.f32 %v5774_v53  ;;  %v1653_v34 = vadd.f32 %v1485_v1, %v10849_v18  ;;  %v2735_v58 = vld [vmem:[%s10682_s3 + $0x168] sm:$0xff]  ;;  %v2736_v48 = vld [vmem:[%s10682_s3 + $0x170] sm:$0xff] }
 0x26a   : > { %3585 = vperm.xlu0 %6704, %v7357_v22   ;;  %6391 = vmatpush3.bf16.msra.mxu1 %v3884_v21  ;;  %v6741_v2 = vld [vmem:[%s9141_s22 + $0x210] ss:$44 sps:$4 sm:$0xff]   ;;  %v6745_v7 = vld [vmem:[%s9141_s22 + $0x26c] ss:$44 sps:$4 sm:$0xff]   ;;  %7386 = vpow2.f32 %v5785_v44  ;;  %v3886_v54 = vpack.c.bf16 %v3739_v4, %v3738_v57  ;;  %v3740_v21 = vmul.f32 %v9410_v17, %v2732_v16  ;;  %v5792_v40 = vmul.f32 -1.442695, %v1669_v35 }
 0x26b   : > { %v3893_v61 = vpack.c.bf16 %v3753_v24, %v3752_v45  ;;  %4591 = vmatprep.mubr.bf16.mxu0 %v6739_v42  ;;  %v10850_v22 = vld [vmem:[#allocation23_spill] sm:$0xff]  ;;  %7388 = vrcp.f32 %v2330_v36  ;;  %v3757_v26 = vmul.f32 %v9466_v29, %v2749_v19  ;;  %v3741_v60 = vmul.f32 %v9351_v41, %v2733_v49  ;;  %v2750_v29 = vld [vmem:[%s10682_s3 + $0x1e0] sm:$0xff]  ;;  %v10852_v4 = vld [vmem:[#allocation25_spill] sm:$0xff] }
 0x26c   : > { %v3141_v59 = vpop.permute.xlu1 %3140  ;;  %3250 = vperm.xlu1 %6705, %v9438_v10   ;;  %v9587_v10 = vpop.eup %7364  ;;  %v1664_v52 = vadd.f32 %v1496_v5, %v10850_v22  ;;  %7390 = vrcp.f32 %v2319_v30  ;;  %v5771_v47 = vmul.f32 -1.442695, %v1648_v12  ;;  %v3742_v1 = vmul.f32 %v9422_v23, %v2734_v27  ;;  %v1487_v57 = vld [vmem:[%s10681_s2 + $0x468] sm:$0xff]  ;;  %v2752_v30 = vld [vmem:[%s10682_s3 + $0x1f0] sm:$0xff]  ;;  %v10853_v18 = vld [vmem:[#allocation13_spill] sm:$0xff] }
 0x26d   : > { %v9577_v50 = vpop.permute.xlu0 %3195  ;;  %v3754_v56 = vmul.f32 %v3141_v59, %v2746_v46  ;;  %6392 = vmatprep.subr.bf16.mxu1 %v3893_v61  ;;  %v7367_v63 = vpop.eup %7366  ;;  %7392 = vrcp.f32 %v2314_v55  ;;  %v5776_v46 = vmul.f32 -1.442695, %v1653_v34  ;;  %v1498_v61 = vld [vmem:[%s10681_s2 + $0x4c0] sm:$0xff]  ;;  %v10851_v59 = vld [vmem:[#allocation29_spill] sm:$0xff]  ;;  %v3759_v23 = vmul.f32 %v9494_v28, %v2751_v6 }
 0x26e   : > { %3505 = vperm.xlu0 %6704, %v7363_v8   ;;  %6393 = vmatpush3.bf16.msra.mxu1 %v3885_v51  ;;  %v7369_v42 = vpop.eup %7368  ;;  %v2337_v17 = vadd.f32 1.0, %v7367_v63  ;;  %v5787_v13 = vmul.f32 -1.442695, %v1664_v52  ;;  %v3887_v8 = vpack.c.bf16 %v3741_v60, %v3740_v21  ;;  %7394 = vpow2.f32 %v5792_v40  ;;  %v1482_v55 = vld [vmem:[%s10681_s2 + $0x440] sm:$0xff]  ;;  %v10854_v40 = vld [vmem:[#allocation11_spill] sm:$0xff] }
 0x26f   : > { %v3894_v62 = vpack.c.bf16 %v3755_v32, %v3754_v56  ;;  %v7371_v37 = vpop.eup %7370  ;;  %v3743_v32 = vmul.f32 %v9363_v14, %v2735_v58  ;;  %v2753_v56 = vld [vmem:[%s10682_s3 + $0x1f8] sm:$0xff]  ;;  %v2316_v28 = vadd.f32 1.0, %v9587_v10  ;;  %v1666_v19 = vadd.f32 %v1498_v61, %v10852_v4  ;;  %v6709_v58 = vld [vmem:[%s9141_s22 + $0x8] ss:$44 sps:$4 sm:$0xff]  }
 0x270   : > { %v3151_v43 = vpop.permute.xlu1 %3150  ;;  %3400 = vperm.xlu1 %6705, %v9500_v38   ;;  %v7373_v45 = vpop.eup %7372  ;;  %v1503_v38 = vld [vmem:[%s10681_s2 + $0x4e8] sm:$0xff]  ;;  %v2332_v9 = vadd.f32 1.0, %v7371_v37  ;;  %7396 = vrcp.f32 %v2337_v17  ;;  %v2737_v14 = vld [vmem:[%s10682_s3 + $0x178] sm:$0xff]  ;;  %v1655_v34 = vadd.f32 %v1487_v57, %v10853_v18  ;;  %v3744_v10 = vmul.f32 %v9434_v33, %v2736_v48  ;;  %v1500_v17 = vld [vmem:[%s10681_s2 + $0x4d0] sm:$0xff] }
 0x271   : > { %v9607_v11 = vpop.permute.xlu0 %3205  ;;  %v3756_v24 = vmul.f32 %v3151_v43, %v2748_v39  ;;  %6394 = vmatprep.subr.bf16.mxu1 %v3894_v62  ;;  %4592 = vmatmul.mubr.bf16.gmra.mrb[24].mxu0 %v6741_v2  ;;  %v7375_v15 = vpop.eup %7374  ;;  %v1671_v5 = vadd.f32 %v1503_v38, %v10851_v59  ;;  %7398 = vpow2.f32 %v5776_v46  ;;  %v6753_v2 = vld [vmem:[%s9141_s22 + $0x14] ss:$44 sps:$4 sm:$0xff]   ;;  %v3888_v49 = vpack.c.bf16 %v3743_v32, %v3742_v1  ;;  %v1505_v33 = vld [vmem:[%s10681_s2 + $0x4f8] sm:$0xff]  ;;  %v10856_v61 = vld [vmem:[#allocation27_spill] sm:$0xff] }
 0x272   : > { %3595 = vperm.xlu0 %6704, %v7369_v42   ;;  %6395 = vmatpush3.bf16.msra.mxu1 %v3886_v54  ;;  %v7377_v41 = vpop.eup %7376  ;;  %v2321_v16 = vadd.f32 1.0, %v7375_v15  ;;  %7400 = vpow2.f32 %v5787_v13  ;;  %v3761_v52 = vmul.f32 %v9523_v31, %v2753_v56  ;;  %v3745_v37 = vmul.f32 %v9372_v20, %v2737_v14  ;;  %v1484_v57 = vld [vmem:[%s10681_s2 + $0x450] sm:$0xff]  ;;  %v10857_v59 = vld [vmem:[#allocation15_spill] sm:$0xff]  ;;  %v1502_v14 = vld [vmem:[%s10681_s2 + $0x4e0] sm:$0xff] }
 0x273   : > { %v3895_v53 = vpack.c.bf16 %v3757_v26, %v3756_v24  ;;  %4599 = vmatprep.mubr.bf16.mxu0 %v6745_v7  ;;  %v9632_v51 = vpop.eup %7378  ;;  %7402 = vrcp.f32 %v2332_v9  ;;  %v5794_v22 = vmul.f32 -1.442695, %v1671_v5  ;;  %v1650_v27 = vadd.f32 %v1482_v55, %v10854_v40  ;;  %v1507_v56 = vld [vmem:[%s10681_s2 + $0x508] sm:$0xff] }
 0x274   : > { %v3161_v36 = vpop.permute.xlu1 %3160  ;;  %3490 = vperm.xlu1 %6705, %v7373_v45   ;;  %v7381_v12 = vpop.eup %7380  ;;  %7404 = vrcp.f32 %v2321_v16  ;;  %v5789_v26 = vmul.f32 -1.442695, %v1666_v19  ;;  %v5778_v45 = vmul.f32 -1.442695, %v1655_v34  ;;  %v3889_v38 = vpack.c.bf16 %v3745_v37, %v3744_v10  ;;  %v10859_v18 = vld [vmem:[#allocation31_spill] sm:$0xff] }
 0x275   : > { %v9630_v44 = vpop.permute.xlu0 %3215  ;;  %v3758_v35 = vmul.f32 %v3161_v36, %v2750_v29  ;;  %6396 = vmatprep.subr.bf16.mxu1 %v3895_v53  ;;  %v7383_v63 = vpop.eup %7382  ;;  %v2339_v43 = vadd.f32 1.0, %v7381_v12  ;;  %7406 = vpow2.f32 %v5771_v47  ;;  %v1489_v29 = vld [vmem:[%s10681_s2 + $0x478] sm:$0xff]  ;;  %v10855_v47 = vld [vmem:[#allocation30_spill] sm:$0xff]  ;;  %v5773_v13 = vmul.f32 -1.442695, %v1650_v27 }
 0x276   : > { %3515 = vperm.xlu0 %6704, %v7377_v41   ;;  %6397 = vmatpush3.bf16.msra.mxu1 %v3887_v8  ;;  %v7385_v42 = vpop.eup %7384  ;;  %7408 = vrcp.f32 %v2316_v28  ;;  %v1673_v46 = vadd.f32 %v1505_v33, %v10855_v47  ;;  %v6718_v41 = vld [vmem:[%s9141_s22 + $0x64] ss:$44 sps:$4 sm:$0xff]   ;;  %v1668_v8 = vadd.f32 %v1500_v17, %v10856_v61  ;;  %v2318_v36 = vadd.f32 1.0, %v9632_v51 }
 0x277   : > { %v3896_v39 = vpack.c.bf16 %v3759_v23, %v3758_v35  ;;  %v7387_v21 = vpop.eup %7386  ;;  %7410 = vpow2.f32 %v5794_v22  ;;  %v2323_v53 = vadd.f32 1.0, %v7385_v42  ;;  %v1657_v5 = vadd.f32 %v1489_v29, %v10857_v59  ;;  %v1509_v42 = vld [vmem:[%s10681_s2 + $0x518] sm:$0xff] }
 0x278   : > { %v3171_v62 = vpop.permute.xlu1 %3170  ;;  %3410 = vperm.xlu1 %6705, %v9516_v25   ;;  %v7389_v25 = vpop.eup %7388  ;;  %v2334_v15 = vadd.f32 1.0, %v7387_v21  ;;  %7412 = vrcp.f32 %v2339_v43  ;;  %v5796_v16 = vmul.f32 -1.442695, %v1673_v46  ;;  %v5791_v28 = vmul.f32 -1.442695, %v1668_v8  ;;  %v10860_v21 = vld [vmem:[#allocation28_spill] sm:$0xff] }
 0x279   : > { %v9662_v7 = vpop.permute.xlu0 %3225  ;;  %v3760_v54 = vmul.f32 %v3171_v62, %v2752_v30  ;;  %6398 = vmatprep.subr.bf16.mxu1 %v3896_v39  ;;  %4600 = vmatmul.mubr.bf16.gmra.mrb[28].mxu0 %v6747_v0  ;;  %v7391_v24 = vpop.eup %7390  ;;  %7414 = vpow2.f32 %v5789_v26  ;;  %v10858_v0 = vld [vmem:[#allocation52_spill] sm:$0xff]  ;;  %v5780_v19 = vmul.f32 -1.442695, %v1657_v5  ;;  %v1675_v34 = vadd.f32 %v1507_v56, %v10859_v18  ;;  %v6724_v22 = vld [vmem:[%s9141_s22 + $0xbc] ss:$44 sps:$4 sm:$0xff]   ;;  %v10864_v56 = vld [vmem:[#allocation38_spill] sm:$0xff] }
 0x27a   : > { %3605 = vperm.xlu0 %6704, %v7383_v63   ;;  %6399 = vmatpush3.bf16.msra.mxu1 %v3888_v49  ;;  %v7393_v6 = vpop.eup %7392  ;;  %7416 = vpow2.f32 %v5778_v45  ;;  %v1652_v12 = vadd.f32 %v1484_v57, %v10858_v0  ;;  %v6720_v49 = vld [vmem:[%s9141_s22 + $0x60] ss:$44 sps:$4 sm:$0xff]   ;;  %v1670_v43 = vadd.f32 %v1502_v14, %v10860_v21  ;;  %v6726_v57 = vld [vmem:[%s9141_s22 + $0xb8] ss:$44 sps:$4 sm:$0xff]  }
 0x27b   : > { %v3897_v31 = vpack.c.bf16 %v3761_v52, %v3760_v54  ;;  %4737 = vmatprep.mubr.bf16.mxu0 %v6753_v2  ;;  %v7395_v9 = vpop.eup %7394  ;;  %7418 = vrcp.f32 %v2334_v15  ;;  %v10862_v15 = vld [vmem:[#allocation12_spill] sm:$0xff] }
 0x27c   : > { %v9673_v20 = vpop.permute.xlu1 %3180  ;;  %3580 = vperm.xlu1 %6705, %v7389_v25   ;;  %v7397_v1 = vpop.eup %7396  ;;  %7420 = vrcp.f32 %v2323_v53  ;;  %v2341_v51 = vadd.f32 1.0, %v7395_v9  ;;  %v5775_v54 = vmul.f32 -1.442695, %v1652_v12  ;;  %v1486_v25 = vld [vmem:[%s10681_s2 + $0x460] sm:$0xff]  ;;  %v5793_v46 = vmul.f32 -1.442695, %v1670_v43 }
 0x27d   : > { %v9675_v60 = vpop.permute.xlu0 %3260  ;;  %6400 = vmatprep.subr.bf16.mxu1 %v3897_v31  ;;  %v7399_v35 = vpop.eup %7398  ;;  %7422 = vpow2.f32 %v5773_v13  ;;  %v5798_v31 = vmul.f32 -1.442695, %v1675_v34  ;;  %v1654_v47 = vadd.f32 %v1486_v25, %v10862_v15  ;;  %v2754_v34 = vld [vmem:[%s10682_s3 + $0x200] sm:$0xff]  ;;  %v2755_v43 = vld [vmem:[%s10682_s3 + $0x208] sm:$0xff] }
 0x27e   : > { %3525 = vperm.xlu0 %6704, %v7391_v24   ;;  %6401 = vmatpush3.bf16.msra.mxu1 %v3889_v38  ;;  %v7401_v32 = vpop.eup %7400  ;;  %7424 = vrcp.f32 %v2318_v36  ;;  %v2325_v62 = vadd.f32 1.0, %v7399_v35  ;;  %v10861_v24 = vld [vmem:[#allocation32_spill] sm:$0xff]  ;;  %v1513_v35 = vld [vmem:[%s10681_s2 + $0x538] sm:$0xff]  ;;  %v3762_v25 = vmul.f32 %v9673_v20, %v2754_v34 }
 0x27f   : > { %v7403_v30 = vpop.eup %7402  ;;  %v2336_v55 = vadd.f32 1.0, %v7401_v32  ;;  %7426 = vpow2.f32 %v5796_v16  ;;  %v1677_v45 = vadd.f32 %v1509_v42, %v10861_v24  ;;  %v6730_v16 = vld [vmem:[%s9141_s22 + $0x114] ss:$44 sps:$4 sm:$0xff]   ;;  %v2771_v42 = vld [vmem:[%s10682_s3 + $0x288] sm:$0xff] }
 0x280   : > { %v9689_v48 = vpop.permute.xlu1 %3190  ;;  %3500 = vperm.xlu1 %6705, %v7393_v6   ;;  %v7405_v4 = vpop.eup %7404  ;;  %7428 = vrcp.f32 %v2341_v51  ;;  %v1511_v6 = vld [vmem:[%s10681_s2 + $0x528] sm:$0xff]  ;;  %v5777_v51 = vmul.f32 -1.442695, %v1654_v47  ;;  %v3763_v47 = vmul.f32 %v9550_v3, %v2755_v43  ;;  %v10867_v3 = vld [vmem:[#allocation40_spill] sm:$0xff] }
 0x281   : > { %v9691_v23 = vpop.permute.xlu0 %3270  ;;  %4641 = vmatmul.mubr.bf16.vlgmr.msra.gmra.mrb[0].mxu1 %v6709_v58  ;;  %v7407_v63 = vpop.eup %7406  ;;  %7430 = vpow2.f32 %v5791_v28  ;;  %v5800_v8 = vmul.f32 -1.442695, %v1677_v45  ;;  %v1488_v28 = vld [vmem:[%s10681_s2 + $0x470] sm:$0xff]  ;;  %v1506_v45 = vld [vmem:[%s10681_s2 + $0x500] sm:$0xff] }
 0x282   : > { %3615 = vperm.xlu0 %6704, %v7397_v1   ;;  %4648 = vmatprep.mubr.bf16.mxu1 %v6718_v41  ;;  %v7409_v10 = vpop.eup %7408  ;;  %v2320_v37 = vadd.f32 1.0, %v7407_v63  ;;  %7432 = vpow2.f32 %v5780_v19  ;;  %v1504_v41 = vld [vmem:[%s10681_s2 + $0x4f0] sm:$0xff]  ;;  %v10863_v1 = vld [vmem:[#allocation34_spill] sm:$0xff] }
 0x283   : > { %v7411_v52 = vpop.eup %7410  ;;  %7434 = vrcp.f32 %v2336_v55  ;;  %v1679_v36 = vadd.f32 %v1511_v6, %v10863_v1  ;;  %v10865_v55 = vld [vmem:[#allocation42_spill] sm:$0xff]  ;;  %v2756_v6 = vld [vmem:[%s10682_s3 + $0x210] sm:$0xff]  ;;  %v6736_v1 = vld [vmem:[%s9141_s22 + $0x16c] ss:$44 sps:$4 sm:$0xff]  }
 0x284   : > { %v9700_v39 = vpop.permute.xlu1 %3200  ;;  %3590 = vperm.xlu1 %6705, %v7403_v30   ;;  %v7413_v33 = vpop.eup %7412  ;;  %7436 = vrcp.f32 %v2325_v62  ;;  %v2343_v38 = vadd.f32 1.0, %v7411_v52  ;;  %v1672_v30 = vadd.f32 %v1504_v41, %v10864_v56  ;;  %v1681_v18 = vadd.f32 %v1513_v35, %v10865_v55  ;;  %v2770_v62 = vld [vmem:[%s10682_s3 + $0x280] sm:$0xff]  ;;  %v1508_v56 = vld [vmem:[%s10681_s2 + $0x510] sm:$0xff] }
 0x285   : > { %v9702_v2 = vpop.permute.xlu0 %3420  ;;  %v7415_v26 = vpop.eup %7414  ;;  %7438 = vpow2.f32 %v5775_v54  ;;  %v5802_v63 = vmul.f32 -1.442695, %v1679_v36  ;;  %v10866_v52 = vld [vmem:[#allocation14_spill] sm:$0xff] }
 0x286   : > { %3535 = vperm.xlu0 %6704, %v7405_v4   ;;  %v7417_v17 = vpop.eup %7416  ;;  %7440 = vrcp.f32 %v2320_v37  ;;  %v2338_v53 = vadd.f32 1.0, %v7415_v26  ;;  %v1656_v54 = vadd.f32 %v1488_v28, %v10866_v52  ;;  %v5795_v21 = vmul.f32 -1.442695, %v1672_v30 }
 0x287   : > { %v7419_v29 = vpop.eup %7418  ;;  %7442 = vpow2.f32 %v5798_v31  ;;  %v2327_v5 = vadd.f32 1.0, %v7417_v17  ;;  %v5804_v17 = vmul.f32 -1.442695, %v1681_v18 }
 0x288   : > { %v9714_v40 = vpop.permute.xlu1 %3210  ;;  %3510 = vperm.xlu1 %6705, %v7409_v10   ;;  %v7421_v58 = vpop.eup %7420  ;;  %7444 = vrcp.f32 %v2343_v38  ;;  %v3778_v38 = vmul.f32 %v9675_v60, %v2770_v62  ;;  %v2773_v60 = vld [vmem:[%s10682_s3 + $0x298] sm:$0xff]  ;;  %v5779_v41 = vmul.f32 -1.442695, %v1656_v54  ;;  %v1510_v54 = vld [vmem:[%s10681_s2 + $0x520] sm:$0xff] }
 0x289   : > { %v9716_v27 = vpop.permute.xlu0 %3340  ;;  %4649 = vmatmul.mubr.bf16.gmra.mrb[4].mxu1 %v6720_v49  ;;  %v7423_v61 = vpop.eup %7422  ;;  %7446 = vpow2.f32 %v5793_v46  ;;  %v2772_v46 = vld [vmem:[%s10682_s3 + $0x290] sm:$0xff] }
 0x28a   : > { %3625 = vperm.xlu0 %6704, %v7413_v33   ;;  %4656 = vmatprep.mubr.bf16.mxu1 %v6724_v22  ;;  %v7425_v59 = vpop.eup %7424  ;;  %v2322_v12 = vadd.f32 1.0, %v7423_v61  ;;  %7448 = vrcp.f32 %v2338_v53  ;;  %v2757_v61 = vld [vmem:[%s10682_s3 + $0x218] sm:$0xff]  ;;  %v3780_v30 = vmul.f32 %v9691_v23, %v2772_v46 }
 0x28b   : > { %v7427_v32 = vpop.eup %7426  ;;  %7450 = vpow2.f32 %v5800_v8 }
 0x28c   : > { %v9726_v9 = vpop.permute.xlu1 %3220  ;;  %3600 = vperm.xlu1 %6705, %v7419_v29   ;;  %v7429_v0 = vpop.eup %7428  ;;  %7452 = vrcp.f32 %v2327_v5  ;;  %v2345_v10 = vadd.f32 1.0, %v7427_v32  ;;  %v3764_v5 = vmul.f32 %v9689_v48, %v2756_v6  ;;  %v3765_v48 = vmul.f32 %v9577_v50, %v2757_v61 }
 0x28d   : > { %v9728_v13 = vpop.permute.xlu0 %3280  ;;  %v7431_v14 = vpop.eup %7430  ;;  %7454 = vpow2.f32 %v5777_v51 }
 0x28e   : > { %3545 = vperm.xlu0 %6704, %v7421_v58   ;;  %v7433_v49 = vpop.eup %7432  ;;  %7456 = vrcp.f32 %v2322_v12  ;;  %v2340_v37 = vadd.f32 1.0, %v7431_v14  ;;  %v6732_v58 = vld [vmem:[%s9141_s22 + $0x110] ss:$44 sps:$4 sm:$0xff]   ;;  %v2802_v14 = vld [vmem:[%s10682_s3 + $0x380] sm:$0xff]  ;;  %v3899_v62 = vpack.c.bf16 %v3765_v48, %v3764_v5 }
 0x28f   : > { %v7435_v22 = vpop.eup %7434  ;;  %7458 = vpow2.f32 %v5802_v63  ;;  %v2329_v15 = vadd.f32 1.0, %v7433_v49  ;;  %v2803_v63 = vld [vmem:[%s10682_s3 + $0x388] sm:$0xff]  ;;  %v10868_v49 = vld [vmem:[#allocation33_spill] sm:$0xff] }
 0x290   : > { %v9740_v4 = vpop.permute.xlu1 %3230  ;;  %3520 = vperm.xlu1 %6705, %v7425_v59   ;;  %v7437_v33 = vpop.eup %7436  ;;  %7460 = vrcp.f32 %v2345_v10  ;;  %v3898_v59 = vpack.c.bf16 %v3763_v47, %v3762_v25  ;;  %v1676_v10 = vadd.f32 %v1508_v56, %v10868_v49  ;;  %v2786_v25 = vld [vmem:[%s10682_s3 + $0x300] sm:$0xff] }
 0x291   : > { %v9742_v19 = vpop.permute.xlu0 %3430  ;;  %4657 = vmatmul.mubr.bf16.gmra.mrb[8].mxu1 %v6726_v57  ;;  %v7439_v24 = vpop.eup %7438  ;;  %7462 = vpow2.f32 %v5795_v21  ;;  %v1674_v57 = vadd.f32 %v1506_v45, %v10867_v3  ;;  %v3810_v21 = vmul.f32 %v9702_v2, %v2802_v14  ;;  %v2775_v3 = vld [vmem:[%s10682_s3 + $0x2a8] sm:$0xff] }
 0x292   : > { %3635 = vperm.xlu0 %6704, %v7429_v0   ;;  %4664 = vmatprep.mubr.bf16.mxu1 %v6730_v16  ;;  %v7441_v29 = vpop.eup %7440  ;;  %7464 = vrcp.f32 %v2340_v37  ;;  %v2324_v51 = vadd.f32 1.0, %v7439_v24  ;;  %v6738_v24 = vld [vmem:[%s9141_s22 + $0x168] ss:$44 sps:$4 sm:$0xff]   ;;  %v5799_v6 = vmul.f32 -1.442695, %v1676_v10 }
 0x293   : > { %v7443_v53 = vpop.eup %7442  ;;  %7466 = vpow2.f32 %v5804_v17  ;;  %v5797_v34 = vmul.f32 -1.442695, %v1674_v57 }
 0x294   : > { %v3266_v26 = vpop.permute.xlu1 %3265  ;;  %3610 = vperm.xlu1 %6705, %v7435_v22   ;;  %v7445_v36 = vpop.eup %7444  ;;  %7468 = vrcp.f32 %v2329_v15  ;;  %v2347_v28 = vadd.f32 1.0, %v7443_v53  ;;  %v2758_v53 = vld [vmem:[%s10682_s3 + $0x220] sm:$0xff] }
 0x295   : > { %v9759_v31 = vpop.permute.xlu0 %3350  ;;  %v3779_v20 = vmul.f32 %v3266_v26, %v2771_v42  ;;  %v7447_v32 = vpop.eup %7446  ;;  %7470 = vpow2.f32 %v5779_v41  ;;  %v2787_v26 = vld [vmem:[%s10682_s3 + $0x308] sm:$0xff]  ;;  %v3794_v41 = vmul.f32 %v9716_v27, %v2786_v25  ;;  %v3766_v56 = vmul.f32 %v9700_v39, %v2758_v53  ;;  %v2804_v39 = vld [vmem:[%s10682_s3 + $0x390] sm:$0xff] }
 0x296   : > { %3555 = vperm.xlu0 %6704, %v7437_v33   ;;  %v7449_v12 = vpop.eup %7448  ;;  %7472 = vrcp.f32 %v2324_v51  ;;  %v2342_v52 = vadd.f32 1.0, %v7447_v32  ;;  %v2759_v27 = vld [vmem:[%s10682_s3 + $0x228] sm:$0xff]  ;;  %v10870_v32 = vld [vmem:[#allocation37_spill] sm:$0xff] }
 0x297   : > { %v3906_v8 = vpack.c.bf16 %v3779_v20, %v3778_v38  ;;  %v7451_v55 = vpop.eup %7450  ;;  %7474 = vrcp.f32 %v2347_v28  ;;  %v6742_v38 = vld [vmem:[%s9141_s22 + $0x1c4] ss:$44 sps:$4 sm:$0xff]   ;;  %v10869_v20 = vld [vmem:[#allocation35_spill] sm:$0xff] }
 0x298   : > { %v3276_v35 = vpop.permute.xlu1 %3275  ;;  %3530 = vperm.xlu1 %6705, %v7441_v29   ;;  %v7453_v18 = vpop.eup %7452  ;;  %v2349_v37 = vadd.f32 1.0, %v7451_v55  ;;  %7476 = vpow2.f32 %v5797_v34  ;;  %v1678_v29 = vadd.f32 %v1510_v54, %v10869_v20  ;;  %v3767_v55 = vmul.f32 %v9607_v11, %v2759_v27 }
 0x299   : > { %v9782_v16 = vpop.permute.xlu0 %3290  ;;  %v3781_v0 = vmul.f32 %v3276_v35, %v2773_v60  ;;  %6450 = vmatprep.subr.bf16.mxu0 %v3906_v8  ;;  %4665 = vmatmul.mubr.bf16.gmra.mrb[12].mxu1 %v6732_v58  ;;  %v7455_v22 = vpop.eup %7454  ;;  %7478 = vrcp.f32 %v2342_v52  ;;  %v1512_v58 = vld [vmem:[%s10681_s2 + $0x530] sm:$0xff]  ;;  %v3812_v54 = vmul.f32 %v9742_v19, %v2804_v39 }
 0x29a   : > { %3645 = vperm.xlu0 %6704, %v7445_v36   ;;  %6451 = vmatpush3.bf16.msra.mxu0 %v3898_v59  ;;  %v7457_v33 = vpop.eup %7456  ;;  %v2326_v60 = vadd.f32 1.0, %v7455_v22  ;;  %7480 = vrcp.f32 %v2349_v37  ;;  %v2774_v36 = vld [vmem:[%s10682_s3 + $0x2a0] sm:$0xff]  ;;  %v5801_v35 = vmul.f32 -1.442695, %v1678_v29  ;;  %v1680_v51 = vadd.f32 %v1512_v58, %v10870_v32  ;;  %v2789_v37 = vld [vmem:[%s10682_s3 + $0x318] sm:$0xff]  ;;  %v2776_v29 = vld [vmem:[%s10682_s3 + $0x2b0] sm:$0xff] }
 0x29b   : > { %v3907_v23 = vpack.c.bf16 %v3781_v0, %v3780_v30  ;;  %4672 = vmatprep.mubr.bf16.mxu1 %v6736_v1  ;;  %v7459_v45 = vpop.eup %7458  ;;  %7482 = vpow2.f32 %v5799_v6  ;;  %v3782_v28 = vmul.f32 %v9728_v13, %v2774_v36  ;;  %v6748_v13 = vld [vmem:[%s9141_s22 + $0x21c] ss:$44 sps:$4 sm:$0xff]  }
 0x29c   : > { %v3426_v50 = vpop.permute.xlu1 %3425  ;;  %3620 = vperm.xlu1 %6705, %v7449_v12   ;;  %v7461_v2 = vpop.eup %7460  ;;  %v2351_v1 = vadd.f32 1.0, %v7459_v45  ;;  %7484 = vrcp.f32 %v2326_v60  ;;  %v2761_v58 = vld [vmem:[%s10682_s3 + $0x238] sm:$0xff] }
 0x29d   : > { %v9796_v42 = vpop.permute.xlu0 %3440  ;;  %v3811_v43 = vmul.f32 %v3426_v50, %v2803_v63  ;;  %6452 = vmatprep.subr.bf16.mxu0 %v3907_v23  ;;  %v7463_v46 = vpop.eup %7462  ;;  %v2805_v23 = vld [vmem:[%s10682_s3 + $0x398] sm:$0xff]  ;;  %v3900_v50 = vpack.c.bf16 %v3767_v55, %v3766_v56 }
 0x29e   : > { %3565 = vperm.xlu0 %6704, %v7453_v18   ;;  %6453 = vmatpush3.bf16.msra.mxu0 %v3899_v62  ;;  %v7465_v8 = vpop.eup %7464  ;;  %v2344_v12 = vadd.f32 1.0, %v7463_v46  ;;  %7486 = vrcp.f32 %v2351_v1  ;;  %v6744_v18 = vld [vmem:[%s9141_s22 + $0x1c0] ss:$44 sps:$4 sm:$0xff]   ;;  %v5803_v62 = vmul.f32 -1.442695, %v1680_v51 }
 0x29f   : > { %v3922_v17 = vpack.c.bf16 %v3811_v43, %v3810_v21  ;;  %v7467_v57 = vpop.eup %7466  ;;  %7488 = vpow2.f32 %v5801_v35  ;;  %v6750_v46 = vld [vmem:[%s9141_s22 + $0x218] ss:$44 sps:$4 sm:$0xff]   ;;  %v6756_v55 = vld [vmem:[%s9141_s22 + $0x270] ss:$44 sps:$4 sm:$0xff]  }
 0x2a0   : > { %v3346_v15 = vpop.permute.xlu1 %3345  ;;  %3540 = vperm.xlu1 %6705, %v7457_v33   ;;  %v7469_v5 = vpop.eup %7468  ;;  %v2353_v63 = vadd.f32 1.0, %v7467_v57  ;;  %7490 = vrcp.f32 %v2344_v12  ;;  %v2788_v33 = vld [vmem:[%s10682_s3 + $0x310] sm:$0xff] }
 0x2a1   : > { %v9811_v47 = vpop.permute.xlu0 %3360  ;;  %v3795_v61 = vmul.f32 %v3346_v15, %v2787_v26  ;;  %6514 = vmatprep.subr.bf16.mxu1 %v3922_v17  ;;  %4673 = vmatmul.mubr.bf16.gmra.mrb[16].mxu1 %v6738_v24  ;;  %v7471_v14 = vpop.eup %7470  ;;  %v2777_v15 = vld [vmem:[%s10682_s3 + $0x2b8] sm:$0xff] }
 0x2a2   : > { %3655 = vperm.xlu0 %6704, %v7461_v2   ;;  %4680 = vmatprep.mubr.bf16.mxu1 %v6742_v38  ;;  %v7473_v34 = vpop.eup %7472  ;;  %v2328_v11 = vadd.f32 1.0, %v7471_v14  ;;  %7492 = vrcp.f32 %v2353_v63  ;;  %v2760_v38 = vld [vmem:[%s10682_s3 + $0x230] sm:$0xff]  ;;  %v3796_v2 = vmul.f32 %v9759_v31, %v2788_v33  ;;  %v2790_v14 = vld [vmem:[%s10682_s3 + $0x320] sm:$0xff]  ;;  %v2791_v63 = vld [vmem:[%s10682_s3 + $0x328] sm:$0xff] }
 0x2a3   : > { %v3914_v59 = vpack.c.bf16 %v3795_v61, %v3794_v41  ;;  %v7475_v10 = vpop.eup %7474  ;;  %7494 = vpow2.f32 %v5803_v62  ;;  %v6754_v31 = vld [vmem:[%s9141_s22 + $0x274] ss:$44 sps:$4 sm:$0xff]   ;;  %v3768_v61 = vmul.f32 %v9714_v40, %v2760_v38  ;;  %v2807_v40 = vld [vmem:[%s10682_s3 + $0x3a8] sm:$0xff] }
 0x2a4   : > { %v3286_v30 = vpop.permute.xlu1 %3285  ;;  %3630 = vperm.xlu1 %6705, %v7465_v8   ;;  %v7477_v43 = vpop.eup %7476  ;;  %7496 = vrcp.f32 %v2328_v11 }
 0x2a5   : > { %v9831_v0 = vpop.permute.xlu0 %3300  ;;  %v3783_v48 = vmul.f32 %v3286_v30, %v2775_v3  ;;  %6515 = vmatpush3.bf16.msra.mxu1 %v3914_v59  ;;  %v7479_v25 = vpop.eup %7478  ;;  %v2346_v17 = vadd.f32 1.0, %v7477_v43  ;;  %v3784_v3 = vmul.f32 %v9782_v16, %v2776_v29  ;;  %v3769_v59 = vmul.f32 %v9630_v44, %v2761_v58  ;;  %v2793_v29 = vld [vmem:[%s10682_s3 + $0x338] sm:$0xff] }
 0x2a6   : > { %3575 = vperm.xlu0 %6704, %v7469_v5   ;;  %v7481_v19 = vpop.eup %7480  ;;  %v2806_v5 = vld [vmem:[%s10682_s3 + $0x3a0] sm:$0xff] }
 0x2a7   : > { %v3908_v49 = vpack.c.bf16 %v3783_v48, %v3782_v28  ;;  %v7483_v20 = vpop.eup %7482  ;;  %7498 = vrcp.f32 %v2346_v17  ;;  %v3901_v51 = vpack.c.bf16 %v3769_v59, %v3768_v61  ;;  %v3814_v12 = vmul.f32 %v9796_v42, %v2806_v5  ;;  %v2781_v61 = vld [vmem:[%s10682_s3 + $0x2d8] sm:$0xff] }
 0x2a8   : > { %v3436_v22 = vpop.permute.xlu1 %3435  ;;  %3550 = vperm.xlu1 %6705, %v7473_v34   ;;  %v7485_v60 = vpop.eup %7484  ;;  %v2348_v36 = vadd.f32 1.0, %v7483_v20 }
 0x2a9   : > { %v9843_v52 = vpop.permute.xlu0 %3450  ;;  %v3813_v21 = vmul.f32 %v3436_v22, %v2805_v23  ;;  %6454 = vmatprep.subr.bf16.mxu0 %v3908_v49  ;;  %4681 = vmatmul.mubr.bf16.gmra.mrb[20].mxu1 %v6744_v18  ;;  %v7487_v41 = vpop.eup %7486  ;;  %v6762_v18 = vld [vmem:[%s9141_s22 + $0x1c] ss:$44 sps:$4 sm:$0xff]  }
 0x2aa   : > { %3665 = vperm.xlu0 %6704, %v7475_v10   ;;  %6455 = vmatpush3.bf16.msra.mxu0 %v3900_v50  ;;  %v7489_v27 = vpop.eup %7488  ;;  %7500 = vrcp.f32 %v2348_v36  ;;  %v3798_v10 = vmul.f32 %v9811_v47, %v2790_v14  ;;  %v2778_v50 = vld [vmem:[%s10682_s3 + $0x2c0] sm:$0xff]  ;;  %v2779_v22 = vld [vmem:[%s10682_s3 + $0x2c8] sm:$0xff]  ;;  %v2764_v36 = vld [vmem:[%s10682_s3 + $0x250] sm:$0xff] }
 0x2ab   : > { %v3923_v26 = vpack.c.bf16 %v3813_v21, %v3812_v54  ;;  %4688 = vmatprep.mubr.bf16.mxu1 %v6748_v13  ;;  %v7491_v35 = vpop.eup %7490  ;;  %v2350_v44 = vadd.f32 1.0, %v7489_v27  ;;  %v2762_v13 = vld [vmem:[%s10682_s3 + $0x240] sm:$0xff]  ;;  %v2763_v54 = vld [vmem:[%s10682_s3 + $0x248] sm:$0xff] }
 0x2ac   : > { %v3356_v24 = vpop.permute.xlu1 %3355  ;;  %3640 = vperm.xlu1 %6705, %v7479_v25   ;;  %v7493_v16 = vpop.eup %7492  ;;  %v3770_v47 = vmul.f32 %v9726_v9, %v2762_v13 }
 0x2ad   : > { %v9852_v45 = vpop.permute.xlu0 %3370  ;;  %v3797_v6 = vmul.f32 %v3356_v24, %v2789_v37  ;;  %6516 = vmatprep.subr.bf16.mxu1 %v3923_v26  ;;  %v7495_v48 = vpop.eup %7494  ;;  %7502 = vrcp.f32 %v2350_v44  ;;  %v3786_v37 = vmul.f32 %v9831_v0, %v2778_v50  ;;  %v3771_v26 = vmul.f32 %v9662_v7, %v2763_v54  ;;  %v2809_v24 = vld [vmem:[%s10682_s3 + $0x3b8] sm:$0xff]  ;;  %v2792_v7 = vld [vmem:[%s10682_s3 + $0x330] sm:$0xff] }
 0x2ae   : > { %3675 = vperm.xlu0 %6704, %v7481_v19   ;;  %v7497_v39 = vpop.eup %7496  ;;  %v2352_v49 = vadd.f32 1.0, %v7495_v48  ;;  %v2808_v19 = vld [vmem:[%s10682_s3 + $0x3b0] sm:$0xff] }
 0x2af   : > { %v3915_v53 = vpack.c.bf16 %v3797_v6, %v3796_v2  ;;  %v3902_v38 = vpack.c.bf16 %v3771_v26, %v3770_v47  ;;  %v3816_v0 = vmul.f32 %v9843_v52, %v2808_v19  ;;  %v2765_v52 = vld [vmem:[%s10682_s3 + $0x258] sm:$0xff]  ;;  %v2767_v47 = vld [vmem:[%s10682_s3 + $0x268] sm:$0xff] }
 0x2b0   : > { %v3296_v8 = vpop.permute.xlu1 %3295  ;;  %3560 = vperm.xlu1 %6705, %v7485_v60   ;;  %7504 = vrcp.f32 %v2352_v49 }
 0x2b1   : > { %v9870_v1 = vpop.permute.xlu0 %3310  ;;  %v3785_v57 = vmul.f32 %v3296_v8, %v2777_v15  ;;  %6517 = vmatpush3.bf16.msra.mxu1 %v3915_v53  ;;  %v7499_v11 = vpop.eup %7498  ;;  %v3800_v53 = vmul.f32 %v9852_v45, %v2792_v7  ;;  %v2784_v7 = vld [vmem:[%s10682_s3 + $0x2f0] sm:$0xff] }
 0x2b2   : > { %3685 = vperm.xlu0 %6704, %v7487_v41   ;;  %4689 = vmatmul.mubr.bf16.gmra.mrb[24].mxu1 %v6750_v46  ;;  %v2780_v41 = vld [vmem:[%s10682_s3 + $0x2d0] sm:$0xff] }
 0x2b3   : > { %v3909_v32 = vpack.c.bf16 %v3785_v57, %v3784_v3  ;;  %4696 = vmatprep.mubr.bf16.mxu1 %v6754_v31  ;;  %v3788_v59 = vmul.f32 %v9870_v1, %v2780_v41  ;;  %v2794_v1 = vld [vmem:[%s10682_s3 + $0x340] sm:$0xff] }
 0x2b4   : > { %v3446_v56 = vpop.permute.xlu1 %3445  ;;  %3650 = vperm.xlu1 %6705, %v7491_v35   ;;  %v7501_v17 = vpop.eup %7500  ;;  %v2810_v35 = vld [vmem:[%s10682_s3 + $0x3c0] sm:$0xff] }
 0x2b5   : > { %v9880_v30 = vpop.permute.xlu0 %3460  ;;  %v3815_v28 = vmul.f32 %v3446_v56, %v2807_v40  ;;  %6456 = vmatprep.subr.bf16.mxu0 %v3909_v32  ;;  %v3772_v40 = vmul.f32 %v9740_v4, %v2764_v36  ;;  %v2811_v32 = vld [vmem:[%s10682_s3 + $0x3c8] sm:$0xff] }
 0x2b6   : > { %3695 = vperm.xlu0 %6704, %v7493_v16   ;;  %6457 = vmatpush3.bf16.msra.mxu0 %v3901_v51  ;;  %v2795_v4 = vld [vmem:[%s10682_s3 + $0x348] sm:$0xff] }
 0x2b7   : > { %v3924_v23 = vpack.c.bf16 %v3815_v28, %v3814_v12  ;;  %v7503_v15 = vpop.eup %7502  ;;  %v3818_v12 = vmul.f32 %v9880_v30, %v2810_v35  ;;  %v2783_v30 = vld [vmem:[%s10682_s3 + $0x2e8] sm:$0xff] }
 0x2b8   : > { %v3366_v34 = vpop.permute.xlu1 %3365  ;;  %3570 = vperm.xlu1 %6705, %v7497_v39   ;;  %v2799_v35 = vld [vmem:[%s10682_s3 + $0x368] sm:$0xff] }
 0x2b9   : > { %v3236_v42 = vpop.permute.xlu0 %3235  ;;  %v3799_v62 = vmul.f32 %v3366_v34, %v2791_v63  ;;  %6518 = vmatprep.subr.bf16.mxu1 %v3924_v23  ;;  %v2782_v23 = vld [vmem:[%s10682_s3 + $0x2e0] sm:$0xff] }
 0x2ba   : > { %4697 = vmatmul.mubr.bf16.gmra.mrb[28].mxu1 %v6756_v55  ;;  %v7505_v8 = vpop.eup %7504  ;;  %v3773_v3 = vmul.f32 %v3236_v42, %v2765_v52  ;;  %v2814_v52 = vld [vmem:[%s10682_s3 + $0x3e0] sm:$0xff] }
 0x2bb   : > { %v3916_v21 = vpack.c.bf16 %v3799_v62, %v3798_v10  ;;  %4834 = vmatprep.mubr.bf16.mxu1 %v6762_v18  ;;  %v2813_v10 = vld [vmem:[%s10682_s3 + $0x3d8] sm:$0xff]  ;;  %v2812_v62 = vld [vmem:[%s10682_s3 + $0x3d0] sm:$0xff] }
 0x2bc   : > { %v3306_v43 = vpop.permute.xlu1 %3305  ;;  %3660 = vperm.xlu1 %6705, %v7499_v11   ;;  %v3903_v51 = vpack.c.bf16 %v3773_v3, %v3772_v40  ;;  %v2768_v3 = vld [vmem:[%s10682_s3 + $0x270] sm:$0xff] }
 0x2bd   : > { %v3386_v33 = vpop.permute.xlu0 %3385  ;;  %v3787_v25 = vmul.f32 %v3306_v43, %v2779_v22  ;;  %6519 = vmatpush3.bf16.msra.mxu1 %v3916_v21  ;;  %v2766_v43 = vld [vmem:[%s10682_s3 + $0x260] sm:$0xff] }
 0x2be   : > { %v3803_v55 = vmul.f32 %v3386_v33, %v2795_v4  ;;  %v6757_v4 = vld [vmem:[%s9141_s22 + $0x6c] ss:$44 sps:$4 sm:$0xff]  }
 0x2bf   : > { %v3910_v9 = vpack.c.bf16 %v3787_v25, %v3786_v37 }
 0x2c0   : > { %v3456_v2 = vpop.permute.xlu1 %3455  ;;  %3670 = vperm.xlu1 %6705, %v7501_v17   ;;  %v2796_v17 = vld [vmem:[%s10682_s3 + $0x350] sm:$0xff] }
 0x2c1   : > { %v3326_v6 = vpop.permute.xlu0 %3325  ;;  %v3817_v20 = vmul.f32 %v3456_v2, %v2809_v24  ;;  %6458 = vmatprep.subr.bf16.mxu0 %v3910_v9  ;;  %v2797_v24 = vld [vmem:[%s10682_s3 + $0x358] sm:$0xff] }
 0x2c2   : > { %6459 = vmatpush3.bf16.msra.mxu0 %v3902_v38  ;;  %v3791_v49 = vmul.f32 %v3326_v6, %v2783_v30 }
 0x2c3   : > { %v3925_v46 = vpack.c.bf16 %v3817_v20, %v3816_v0  ;;  %v2785_v20 = vld [vmem:[%s10682_s3 + $0x2f8] sm:$0xff] }
 0x2c4   : > { %v3376_v60 = vpop.permute.xlu1 %3375  ;;  %3680 = vperm.xlu1 %6705, %v7503_v15  }
 0x2c5   : > { %v3476_v58 = vpop.permute.xlu0 %3475  ;;  %v3801_v31 = vmul.f32 %v3376_v60, %v2793_v29  ;;  %6520 = vmatprep.subr.bf16.mxu1 %v3925_v46 }
 0x2c6   : > { %v3821_v54 = vmul.f32 %v3476_v58, %v2813_v10 }
 0x2c7   : > { %v3917_v45 = vpack.c.bf16 %v3801_v31, %v3800_v53  ;;  %v2815_v53 = vld [vmem:[%s10682_s3 + $0x3e8] sm:$0xff] }
 0x2c8   : > { %v3316_v57 = vpop.permute.xlu1 %3315  ;;  %3690 = vperm.xlu1 %6705, %v7505_v8  }
 0x2c9   : > { %v3246_v27 = vpop.permute.xlu0 %3245  ;;  %v3789_v5 = vmul.f32 %v3316_v57, %v2781_v61  ;;  %6521 = vmatpush3.bf16.msra.mxu1 %v3917_v45  ;;  %v2769_v45 = vld [vmem:[%s10682_s3 + $0x278] sm:$0xff] }
 0x2ca   : > { %v3775_v26 = vmul.f32 %v3246_v27, %v2767_v47 }
 0x2cb   : > { %v3911_v16 = vpack.c.bf16 %v3789_v5, %v3788_v59 }
 0x2cc   : > { %v3466_v56 = vpop.permute.xlu1 %3465 }
 0x2cd   : > { %v3396_v44 = vpop.permute.xlu0 %3395  ;;  %v3819_v28 = vmul.f32 %v3466_v56, %v2811_v32  ;;  %6460 = vmatprep.subr.bf16.mxu0 %v3911_v16  ;;  %v2798_v32 = vld [vmem:[%s10682_s3 + $0x360] sm:$0xff] }
 0x2ce   : > { %6461 = vmatpush3.bf16.msra.mxu0 %v3903_v51  ;;  %v3805_v6 = vmul.f32 %v3396_v44, %v2797_v24  ;;  %v6751_v44 = vld [vmem:[%s9141_s22 + $0x10] ss:$44 sps:$4 sm:$0xff]  }
 0x2cf   : > { %v3926_v48 = vpack.c.bf16 %v3819_v28, %v3818_v12 }
 0x2d0   : > { %v3381_v14 = vpop.permute.xlu1 %3380 }
 0x2d1   : > { %v3336_v63 = vpop.permute.xlu0 %3335  ;;  %v3802_v39 = vmul.f32 %v3381_v14, %v2794_v1  ;;  %6522 = vmatprep.subr.bf16.mxu1 %v3926_v48  ;;  %v2817_v1 = vld [vmem:[%s10682_s3 + $0x3f8] sm:$0xff]  ;;  %v2816_v48 = vld [vmem:[%s10682_s3 + $0x3f0] sm:$0xff] }
 0x2d2   : > { %v3793_v60 = vmul.f32 %v3336_v63, %v2785_v20  ;;  %v2836_v20 = vld [vmem:[%s10682_s3 + $0x490] sm:$0xff] }
 0x2d3   : > { %v3918_v18 = vpack.c.bf16 %v3803_v55, %v3802_v39 }
 0x2d4   : > { %v3321_v34 = vpop.permute.xlu1 %3320 }
 0x2d5   : > { %v3486_v42 = vpop.permute.xlu0 %3485  ;;  %v3790_v13 = vmul.f32 %v3321_v34, %v2782_v23  ;;  %6523 = vmatpush3.bf16.msra.mxu1 %v3918_v18  ;;  %v2801_v23 = vld [vmem:[%s10682_s3 + $0x378] sm:$0xff]  ;;  %v2800_v18 = vld [vmem:[%s10682_s3 + $0x370] sm:$0xff] }
 0x2d6   : > { %v3823_v8 = vmul.f32 %v3486_v42, %v2815_v53 }
 0x2d7   : > { %v3912_v50 = vpack.c.bf16 %v3791_v49, %v3790_v13  ;;  %v6759_v13 = vld [vmem:[%s9141_s22 + $0x68] ss:$44 sps:$4 sm:$0xff]  }
 0x2d8   : > { %v3471_v22 = vpop.permute.xlu1 %3470 }
 0x2d9   : > { %v3256_v11 = vpop.permute.xlu0 %3255  ;;  %v3820_v21 = vmul.f32 %v3471_v22, %v2812_v62  ;;  %6462 = vmatprep.subr.bf16.mxu0 %v3912_v50  ;;  %v6763_v50 = vld [vmem:[%s9141_s22 + $0xc4] ss:$44 sps:$4 sm:$0xff]   ;;  %v2835_v22 = vld [vmem:[%s10682_s3 + $0x488] sm:$0xff] }
 0x2da   : > { %v3777_v5 = vmul.f32 %v3256_v11, %v2769_v45  ;;  %v2834_v11 = vld [vmem:[%s10682_s3 + $0x480] sm:$0xff] }
 0x2db   : > { %v3927_v33 = vpack.c.bf16 %v3821_v54, %v3820_v21  ;;  %v6771_v45 = vld [vmem:[%s9141_s22 + $0x118] ss:$44 sps:$4 sm:$0xff]  }
 0x2dc   : > { %v3241_v37 = vpop.permute.xlu1 %3240 }
 0x2dd   : > { %v3406_v25 = vpop.permute.xlu0 %3405  ;;  %v3774_v19 = vmul.f32 %v3241_v37, %v2766_v43  ;;  %6524 = vmatprep.subr.bf16.mxu1 %v3927_v33  ;;  %v6760_v43 = vld [vmem:[%s9141_s22 + $0x18] ss:$44 sps:$4 sm:$0xff]  }
 0x2de   : > { %v3807_v12 = vmul.f32 %v3406_v25, %v2799_v35  ;;  %v2819_v25 = vld [vmem:[%s10682_s3 + $0x408] sm:$0xff] }
 0x2df   : > { %v3904_v9 = vpack.c.bf16 %v3775_v26, %v3774_v19  ;;  %v2818_v26 = vld [vmem:[%s10682_s3 + $0x400] sm:$0xff] }
 0x2e0   : > { %v3391_v38 = vpop.permute.xlu1 %3390  ;;  %v6766_v19 = vld [vmem:[%s9141_s22 + $0x74] ss:$44 sps:$4 sm:$0xff]  }
 0x2e1   : > { %v3496_v2 = vpop.permute.xlu0 %3495  ;;  %v3804_v0 = vmul.f32 %v3391_v38, %v2796_v17  ;;  %6463 = vmatpush3.bf16.msra.mxu0 %v3904_v9  ;;  %v6765_v38 = vld [vmem:[%s9141_s22 + $0xc0] ss:$44 sps:$4 sm:$0xff]  }
 0x2e2   : > { %v3825_v39 = vmul.f32 %v3496_v2, %v2817_v1 }
 0x2e3   : > { %v3919_v29 = vpack.c.bf16 %v3805_v6, %v3804_v0  ;;  %v2837_v0 = vld [vmem:[%s10682_s3 + $0x498] sm:$0xff] }
 0x2e4   : > { %v3331_v15 = vpop.permute.xlu1 %3330 }
 0x2e5   : > { %v3416_v46 = vpop.permute.xlu0 %3415  ;;  %v3792_v58 = vmul.f32 %v3331_v15, %v2784_v7  ;;  %6525 = vmatpush3.bf16.msra.mxu1 %v3919_v29  ;;  %v6769_v7 = vld [vmem:[%s9141_s22 + $0x11c] ss:$44 sps:$4 sm:$0xff]  }
 0x2e6   : > { %v3809_v10 = vmul.f32 %v3416_v46, %v2801_v23  ;;  %v6781_v23 = vld [vmem:[%s9141_s22 + $0x1cc] ss:$44 sps:$4 sm:$0xff]  }
 0x2e7   : > { %v3913_v31 = vpack.c.bf16 %v3793_v60, %v3792_v58  ;;  %v6768_v60 = vld [vmem:[%s9141_s22 + $0x70] ss:$44 sps:$4 sm:$0xff]  }
 0x2e8   : > { %v3481_v41 = vpop.permute.xlu1 %3480 }
 0x2e9   : > { %v3586_v61 = vpop.permute.xlu0 %3585  ;;  %v3822_v36 = vmul.f32 %v3481_v41, %v2814_v52  ;;  %6464 = vmatprep.subr.bf16.mxu0 %v3913_v31  ;;  %v2821_v52 = vld [vmem:[%s10682_s3 + $0x418] sm:$0xff]  ;;  %v2820_v31 = vld [vmem:[%s10682_s3 + $0x410] sm:$0xff] }
 0x2ea   : > { %v3843_v33 = vmul.f32 %v3586_v61, %v2835_v22  ;;  %v6772_v41 = vld [vmem:[%s9141_s22 + $0xcc] ss:$44 sps:$4 sm:$0xff]   ;;  %v2824_v22 = vld [vmem:[%s10682_s3 + $0x430] sm:$0xff] }
 0x2eb   : > { %v3928_v57 = vpack.c.bf16 %v3823_v8, %v3822_v36 }
 0x2ec   : > { %v3251_v27 = vpop.permute.xlu1 %3250 }
 0x2ed   : > { %v3506_v59 = vpop.permute.xlu0 %3505  ;;  %v3776_v40 = vmul.f32 %v3251_v27, %v2768_v3  ;;  %6526 = vmatprep.subr.bf16.mxu1 %v3928_v57  ;;  %v2839_v27 = vld [vmem:[%s10682_s3 + $0x4a8] sm:$0xff] }
 0x2ee   : > { %v3827_v2 = vmul.f32 %v3506_v59, %v2819_v25  ;;  %v2838_v59 = vld [vmem:[%s10682_s3 + $0x4a0] sm:$0xff] }
 0x2ef   : > { %v3905_v16 = vpack.c.bf16 %v3777_v5, %v3776_v40  ;;  %v6775_v5 = vld [vmem:[%s9141_s22 + $0x174] ss:$44 sps:$4 sm:$0xff]  }
 0x2f0   : > { %v3401_v51 = vpop.permute.xlu1 %3400 }
 0x2f1   : > { %v3596_v56 = vpop.permute.xlu0 %3595  ;;  %v3806_v28 = vmul.f32 %v3401_v51, %v2798_v32  ;;  %6465 = vmatpush3.bf16.msra.mxu0 %v3905_v16  ;;  %v6774_v16 = vld [vmem:[%s9141_s22 + $0xc8] ss:$44 sps:$4 sm:$0xff]  }
 0x2f2   : > { %v3845_v58 = vmul.f32 %v3596_v56, %v2837_v0 }
 0x2f3   : > { %v3920_v14 = vpack.c.bf16 %v3807_v12, %v3806_v28  ;;  %v2822_v12 = vld [vmem:[%s10682_s3 + $0x420] sm:$0xff] }
 0x2f4   : > { %v3491_v63 = vpop.permute.xlu1 %3490  ;;  %4738 = vmatmul.mubr.bf16.vlgmr.msra.gmra.mrb[32].mxu0 %v6751_v44  ;;  %v2823_v44 = vld [vmem:[%s10682_s3 + $0x428] sm:$0xff]  ;;  %v6778_v28 = vld [vmem:[%s9141_s22 + $0x124] ss:$44 sps:$4 sm:$0xff]  }
 0x2f5   : > { %v3516_v55 = vpop.permute.xlu0 %3515  ;;  %v3824_v30 = vmul.f32 %v3491_v63, %v2816_v48  ;;  %6527 = vmatpush3.bf16.msra.mxu1 %v3920_v14  ;;  %4745 = vmatprep.mubr.bf16.mxu0 %v6757_v4  ;;  %v6777_v14 = vld [vmem:[%s9141_s22 + $0x170] ss:$44 sps:$4 sm:$0xff]  }
 0x2f6   : > { %v3829_v3 = vmul.f32 %v3516_v55, %v2821_v52 }
 0x2f7   : > { %v3929_v34 = vpack.c.bf16 %v3825_v39, %v3824_v30  ;;  %v2841_v39 = vld [vmem:[%s10682_s3 + $0x4b8] sm:$0xff]  ;;  %v2840_v30 = vld [vmem:[%s10682_s3 + $0x4b0] sm:$0xff] }
 0x2f8   : > { %v3411_v42 = vpop.permute.xlu1 %3410 }
 0x2f9   : > { %v10010_v49 = vpop.permute.xlu0 %3605  ;;  %v3808_v62 = vmul.f32 %v3411_v42, %v2800_v18  ;;  %6528 = vmatprep.subr.bf16.mxu1 %v3929_v34  ;;  %v6780_v42 = vld [vmem:[%s9141_s22 + $0x120] ss:$44 sps:$4 sm:$0xff]  }
 0x2fa   : > { %v3847_v51 = vmul.f32 %v10010_v49, %v2839_v27  ;;  %v2845_v27 = vld [vmem:[%s10682_s3 + $0x4d8] sm:$0xff] }
 0x2fb   : > { %v3921_v54 = vpack.c.bf16 %v3809_v10, %v3808_v62 }
 0x2fc   : > { %v3581_v21 = vpop.permute.xlu1 %3580  ;;  %4746 = vmatmul.mubr.bf16.gmra.mrb[36].mxu0 %v6759_v13 }
 0x2fd   : > { %v10020_v47 = vpop.permute.xlu0 %3525  ;;  %v3842_v37 = vmul.f32 %v3581_v21, %v2834_v11  ;;  %6529 = vmatpush3.bf16.msra.mxu1 %v3921_v54  ;;  %4753 = vmatprep.mubr.bf16.mxu0 %v6763_v50  ;;  %v2825_v50 = vld [vmem:[%s10682_s3 + $0x438] sm:$0xff] }
 0x2fe   : > { %v3831_v63 = vmul.f32 %v10020_v47, %v2823_v44  ;;  %v6784_v11 = vld [vmem:[%s9141_s22 + $0x17c] ss:$44 sps:$4 sm:$0xff]  }
 0x2ff   : > { %v3938_v24 = vpack.c.bf16 %v3843_v33, %v3842_v37  ;;  %v6783_v37 = vld [vmem:[%s9141_s22 + $0x1c8] ss:$44 sps:$4 sm:$0xff]  }
 0x300   : > { %v3501_v17 = vpop.permute.xlu1 %3500  ;;  %4835 = vmatmul.mubr.bf16.vlgmr.msra.gmra.mrb[32].mxu1 %v6760_v43 }
 0x301   : > { %v10030_v9 = vpop.permute.xlu0 %3615  ;;  %v3826_v6 = vmul.f32 %v3501_v17, %v2818_v26  ;;  %6578 = vmatprep.subr.bf16.mxu0 %v3938_v24  ;;  %6678 = vmatprep.subr.bf16.mxu1 %v3938_v24  ;;  %v2843_v24 = vld [vmem:[%s10682_s3 + $0x4c8] sm:$0xff]  ;;  %v2842_v17 = vld [vmem:[%s10682_s3 + $0x4c0] sm:$0xff] }
 0x302   : > { %4842 = vmatprep.mubr.bf16.mxu1 %v6766_v19  ;;  %v3849_v49 = vmul.f32 %v10030_v9, %v2841_v39  ;;  %v6787_v9 = vld [vmem:[%s9141_s22 + $0x224] ss:$44 sps:$4 sm:$0xff]  }
 0x303   : > { %v3930_v29 = vpack.c.bf16 %v3827_v2, %v3826_v6 }
 0x304   : > { %v3591_v15 = vpop.permute.xlu1 %3590  ;;  %4754 = vmatmul.mubr.bf16.gmra.mrb[40].mxu0 %v6765_v38 }
 0x305   : > { %v10040_v46 = vpop.permute.xlu0 %3535  ;;  %v3844_v53 = vmul.f32 %v3591_v15, %v2836_v20  ;;  %6579 = vmatpush3.bf16.msra.mxu0 %v3930_v29  ;;  %6686 = vmatpush3.bf16.msra.mxu1 %v3930_v29  ;;  %v6786_v20 = vld [vmem:[%s9141_s22 + $0x178] ss:$44 sps:$4 sm:$0xff]  }
 0x306   : > { %4761 = vmatprep.mubr.bf16.mxu0 %v6769_v7  ;;  %v3833_v25 = vmul.f32 %v10040_v46, %v2825_v50  ;;  %v2827_v46 = vld [vmem:[%s10682_s3 + $0x448] sm:$0xff] }
 0x307   : > { %v3939_v61 = vpack.c.bf16 %v3845_v58, %v3844_v53  ;;  %v6790_v58 = vld [vmem:[%s9141_s22 + $0x1d4] ss:$44 sps:$4 sm:$0xff]  }
 0x308   : > { %v3511_v8 = vpop.permute.xlu1 %3510  ;;  %4843 = vmatmul.mubr.bf16.gmra.mrb[36].mxu1 %v6768_v60  ;;  %v2826_v60 = vld [vmem:[%s10682_s3 + $0x440] sm:$0xff] }
 0x309   : > { %v10050_v36 = vpop.permute.xlu0 %3625  ;;  %v3828_v57 = vmul.f32 %v3511_v8, %v2820_v31  ;;  %6580 = vmatprep.subr.bf16.mxu0 %v3939_v61  ;;  %6679 = vmatprep.subr.bf16.mxu1 %v3939_v61  ;;  %v6789_v8 = vld [vmem:[%s9141_s22 + $0x220] ss:$44 sps:$4 sm:$0xff]  }
 0x30a   : > { %4850 = vmatprep.mubr.bf16.mxu1 %v6772_v41  ;;  %v3851_v7 = vmul.f32 %v10050_v36, %v2843_v24 }
 0x30b   : > { %v3931_v40 = vpack.c.bf16 %v3829_v3, %v3828_v57 }
 0x30c   : > { %v3601_v35 = vpop.permute.xlu1 %3600  ;;  %4762 = vmatmul.mubr.bf16.gmra.mrb[44].mxu0 %v6771_v45 }
 0x30d   : > { %v10060_v32 = vpop.permute.xlu0 %3545  ;;  %v3846_v56 = vmul.f32 %v3601_v35, %v2838_v59  ;;  %6581 = vmatpush3.bf16.msra.mxu0 %v3931_v40  ;;  %6687 = vmatpush3.bf16.msra.mxu1 %v3931_v40  ;;  %v2844_v59 = vld [vmem:[%s10682_s3 + $0x4d0] sm:$0xff] }
 0x30e   : > { %4769 = vmatprep.mubr.bf16.mxu0 %v6775_v5  ;;  %v3835_v36 = vmul.f32 %v10060_v32, %v2827_v46  ;;  %v6793_v5 = vld [vmem:[%s9141_s22 + $0x27c] ss:$44 sps:$4 sm:$0xff]  }
 0x30f   : > { %v3940_v4 = vpack.c.bf16 %v3847_v51, %v3846_v56 }
 0x310   : > { %v3521_v1 = vpop.permute.xlu1 %3520  ;;  %4851 = vmatmul.mubr.bf16.gmra.mrb[40].mxu1 %v6774_v16  ;;  %v6792_v16 = vld [vmem:[%s9141_s22 + $0x1d0] ss:$44 sps:$4 sm:$0xff]  }
 0x311   : > { %v10071_v48 = vpop.permute.xlu0 %3635  ;;  %v3830_v55 = vmul.f32 %v3521_v1, %v2822_v12  ;;  %6582 = vmatprep.subr.bf16.mxu0 %v3940_v4  ;;  %6680 = vmatprep.subr.bf16.mxu1 %v3940_v4  ;;  %v2829_v12 = vld [vmem:[%s10682_s3 + $0x458] sm:$0xff] }
 0x312   : > { %4858 = vmatprep.mubr.bf16.mxu1 %v6778_v28  ;;  %v3853_v51 = vmul.f32 %v10071_v48, %v2845_v27  ;;  %v2828_v28 = vld [vmem:[%s10682_s3 + $0x450] sm:$0xff]  ;;  %v6796_v4 = vld [vmem:[%s9141_s22 + $0x22c] ss:$44 sps:$4 sm:$0xff]  }
 0x313   : > { %v3932_v18 = vpack.c.bf16 %v3831_v63, %v3830_v55 }
 0x314   : > { %v3611_v34 = vpop.permute.xlu1 %3610  ;;  %4770 = vmatmul.mubr.bf16.gmra.mrb[48].mxu0 %v6777_v14  ;;  %v6338_v62 = vpop.f32.mrb[0].mxu0 }
 0x315   : > { %v3848_v13 = vmul.f32 %v3611_v34, %v2840_v30  ;;  %v10084_v10 = vpop.permute.xlu0 %3555  ;;  %6583 = vmatpush3.bf16.msra.mxu0 %v3932_v18  ;;  %6688 = vmatpush3.bf16.msra.mxu1 %v3932_v18  ;;  %v6339_v54 = vpop.f32.mrb[1].mxu0  ;;  %v6795_v30 = vld [vmem:[%s9141_s22 + $0x278] ss:$44 sps:$4 sm:$0xff]  }
 0x316   : > { %4777 = vmatprep.mubr.bf16.mxu0 %v6781_v23  ;;  %v10093_v47 = vadd.f32 %v6339_v54, %v6338_v62  ;;  %v6341_v43 = vpop.f32.mrb[2].mxu0  ;;  %v3837_v23 = vmul.f32 %v10084_v10, %v2829_v12  ;;  %v6798_v10 = vld [vmem:[%s9141_s22 + $0x228] ss:$44 sps:$4 sm:$0xff]  }
 0x317   : > { %v3941_v21 = vpack.c.bf16 %v3849_v49, %v3848_v13  ;;  %v6342_v19 = vpop.f32.mrb[3].mxu0  ;;  %v2846_v49 = vld [vmem:[%s10682_s3 + $0x4e0] sm:$0xff] }
 0x318   : > { %v3531_v33 = vpop.permute.xlu1 %3530  ;;  %4859 = vmatmul.mubr.bf16.gmra.mrb[44].mxu1 %v6780_v42  ;;  %v10104_v38 = vadd.f32 %v6342_v19, %v6341_v43  ;;  %v2847_v42 = vld [vmem:[%s10682_s3 + $0x4e8] sm:$0xff]  ;;  %v6804_v13 = vld [vmem:[%s9141_s22 + $0x24] ss:$44 sps:$4 sm:$0xff]  }
 0x319   : > { %v3832_v26 = vmul.f32 %v3531_v33, %v2824_v22  ;;  %6584 = vmatprep.subr.bf16.mxu0 %v3941_v21  ;;  %6681 = vmatprep.subr.bf16.mxu1 %v3941_v21  ;;  %v10106_v6 = vpop.permute.xlu0 %3645  ;;  %v2831_v33 = vld [vmem:[%s10682_s3 + $0x468] sm:$0xff] }
 0x31a   : > { %4866 = vmatprep.mubr.bf16.mxu1 %v6784_v11  ;;  %v3855_v11 = vmul.f32 %v10106_v6, %v2847_v42 }
 0x31b   : > { %v3933_v2 = vpack.c.bf16 %v3833_v25, %v3832_v26  ;;  %v6799_v25 = vld [vmem:[%s9141_s22 + $0x284] ss:$44 sps:$4 sm:$0xff]  }
 0x31c   : > { %v3621_v0 = vpop.permute.xlu1 %3620  ;;  %4778 = vmatmul.mubr.bf16.gmra.mrb[52].mxu0 %v6783_v37  ;;  %v6344_v15 = vpop.f32.mrb[4].mxu0  ;;  %v2830_v37 = vld [vmem:[%s10682_s3 + $0x460] sm:$0xff] }
 0x31d   : > { %v3850_v29 = vmul.f32 %v3621_v0, %v2842_v17  ;;  %6585 = vmatpush3.bf16.msra.mxu0 %v3933_v2  ;;  %6689 = vmatpush3.bf16.msra.mxu1 %v3933_v2  ;;  %v6345_v53 = vpop.f32.mrb[5].mxu0  ;;  %v3566_v45 = vpop.permute.xlu0 %3565 }
 0x31e   : > { %4785 = vmatprep.mubr.bf16.mxu0 %v6787_v9  ;;  %v10117_v31 = vadd.f32 %v6345_v53, %v6344_v15  ;;  %v6347_v41 = vpop.f32.mrb[6].mxu0  ;;  %v3839_v2 = vmul.f32 %v3566_v45, %v2831_v33  ;;  %v2854_v33 = vld [vmem:[%s10682_s3 + $0x520] sm:$0xff] }
 0x31f   : > { %v3942_v52 = vpack.c.bf16 %v3851_v7, %v3850_v29  ;;  %v6348_v57 = vpop.f32.mrb[7].mxu0  ;;  %v2848_v7 = vld [vmem:[%s10682_s3 + $0x4f0] sm:$0xff] }
 0x320   : > { %v3541_v61 = vpop.permute.xlu1 %3540  ;;  %4867 = vmatmul.mubr.bf16.gmra.mrb[48].mxu1 %v6786_v20  ;;  %v10128_v40 = vadd.f32 %v6348_v57, %v6347_v41  ;;  %v2849_v20 = vld [vmem:[%s10682_s3 + $0x4f8] sm:$0xff] }
 0x321   : > { %v3834_v3 = vmul.f32 %v3541_v61, %v2826_v60  ;;  %6586 = vmatprep.subr.bf16.mxu0 %v3942_v52  ;;  %6682 = vmatprep.subr.bf16.mxu1 %v3942_v52  ;;  %v3656_v14 = vpop.permute.xlu0 %3655  ;;  %v2833_v61 = vld [vmem:[%s10682_s3 + $0x478] sm:$0xff] }
 0x322   : > { %4874 = vmatprep.mubr.bf16.mxu1 %v6790_v58  ;;  %v6801_v58 = vld [vmem:[%s9141_s22 + $0x280] ss:$44 sps:$4 sm:$0xff]   ;;  %v3857_v53 = vmul.f32 %v3656_v14, %v2849_v20 }
 0x323   : > { %v3934_v35 = vpack.c.bf16 %v3835_v36, %v3834_v3  ;;  %v6807_v36 = vld [vmem:[%s9141_s22 + $0x234] ss:$44 sps:$4 sm:$0xff]  }
 0x324   : > { %v3631_v32 = vpop.permute.xlu1 %3630  ;;  %4786 = vmatmul.mubr.bf16.gmra.mrb[56].mxu0 %v6789_v8  ;;  %v6350_v44 = vpop.f32.mrb[8].mxu0  ;;  %v2832_v8 = vld [vmem:[%s10682_s3 + $0x470] sm:$0xff] }
 0x325   : > { %v3852_v56 = vmul.f32 %v3631_v32, %v2844_v59  ;;  %6587 = vmatpush3.bf16.msra.mxu0 %v3934_v35  ;;  %6690 = vmatpush3.bf16.msra.mxu1 %v3934_v35  ;;  %v6351_v1 = vpop.f32.mrb[9].mxu0  ;;  %v3576_v54 = vpop.permute.xlu0 %3575 }
 0x326   : > { %4793 = vmatprep.mubr.bf16.mxu0 %v6793_v5  ;;  %v10139_v48 = vadd.f32 %v6351_v1, %v6350_v44  ;;  %v6353_v55 = vpop.f32.mrb[10].mxu0  ;;  %v3841_v35 = vmul.f32 %v3576_v54, %v2833_v61  ;;  %v2850_v44 = vld [vmem:[%s10682_s3 + $0x500] sm:$0xff]  ;;  %v6805_v1 = vld [vmem:[%s9141_s22 + $0x230] ss:$44 sps:$4 sm:$0xff]  }
 0x327   : > { %v3943_v63 = vpack.c.bf16 %v3853_v51, %v3852_v56  ;;  %v6354_v34 = vpop.f32.mrb[11].mxu0  ;;  %v2851_v56 = vld [vmem:[%s10682_s3 + $0x508] sm:$0xff] }
 0x328   : > { %v3551_v39 = vpop.permute.xlu1 %3550  ;;  %4875 = vmatmul.mubr.bf16.gmra.mrb[52].mxu1 %v6792_v16  ;;  %v10150_v62 = vadd.f32 %v6354_v34, %v6353_v55  ;;  %v6808_v55 = vld [vmem:[%s9141_s22 + $0x7c] ss:$44 sps:$4 sm:$0xff]  }
 0x329   : > { %v3836_v18 = vmul.f32 %v3551_v39, %v2828_v28  ;;  %6588 = vmatprep.subr.bf16.mxu0 %v3943_v63  ;;  %6683 = vmatprep.subr.bf16.mxu1 %v3943_v63  ;;  %v3666_v15 = vpop.permute.xlu0 %3665 }
 0x32a   : > { %4882 = vmatprep.mubr.bf16.mxu1 %v6796_v4  ;;  %v6802_v4 = vld [vmem:[%s9141_s22 + $0x20] ss:$44 sps:$4 sm:$0xff]   ;;  %v3859_v14 = vmul.f32 %v3666_v15, %v2851_v56  ;;  %v6817_v15 = vld [vmem:[%s9141_s22 + $0x28] ss:$44 sps:$4 sm:$0xff]  }
 0x32b   : > { %v3935_v50 = vpack.c.bf16 %v3837_v23, %v3836_v18  ;;  %v2852_v23 = vld [vmem:[%s10682_s3 + $0x510] sm:$0xff]  ;;  %v6810_v18 = vld [vmem:[%s9141_s22 + $0x28c] ss:$44 sps:$4 sm:$0xff]  }
 0x32c   : > { %v3641_v22 = vpop.permute.xlu1 %3640  ;;  %4794 = vmatmul.mubr.bf16.gmra.mrb[60].mxu0 %v6795_v30  ;;  %v6356_v43 = vpop.f32.mrb[12].mxu0  ;;  %v2853_v30 = vld [vmem:[%s10682_s3 + $0x518] sm:$0xff] }
 0x32d   : > { %v3854_v21 = vmul.f32 %v3641_v22, %v2846_v49  ;;  %6589 = vmatpush3.bf16.msra.mxu0 %v3935_v50  ;;  %6691 = vmatpush3.bf16.msra.mxu1 %v3935_v50  ;;  %v6357_v26 = vpop.f32.mrb[13].mxu0  ;;  %v3676_v32 = vpop.permute.xlu0 %3675 }
 0x32e   : > { %4931 = vmatprep.mubr.bf16.mxu0 %v6804_v13  ;;  %v10161_v24 = vadd.f32 %v6357_v26, %v6356_v43  ;;  %v6359_v17 = vpop.f32.mrb[14].mxu0  ;;  %v2855_v43 = vld [vmem:[%s10682_s3 + $0x528] sm:$0xff]  ;;  %v6812_v26 = vld [vmem:[%s9141_s22 + $0x78] ss:$44 sps:$4 sm:$0xff]  }
 0x32f   : > { %v3944_v19 = vpack.c.bf16 %v3855_v11, %v3854_v21  ;;  %v6360_v0 = vpop.f32.mrb[15].mxu0  ;;  %v3861_v11 = vmul.f32 %v3676_v32, %v2853_v30 }
 0x330   : > { %v3561_v9 = vpop.permute.xlu1 %3560  ;;  %4883 = vmatmul.mubr.bf16.gmra.mrb[56].mxu1 %v6798_v10  ;;  %v10169_v29 = vadd.f32 %v6360_v0, %v6359_v17  ;;  %v2857_v0 = vld [vmem:[%s10682_s3 + $0x538] sm:$0xff] }
 0x331   : > { %v3838_v6 = vmul.f32 %v3561_v9, %v2830_v37  ;;  %6590 = vmatprep.subr.bf16.mxu0 %v3944_v19  ;;  %6684 = vmatprep.subr.bf16.mxu1 %v3944_v19  ;;  %v3686_v42 = vpop.permute.xlu0 %3685  ;;  %v6813_v19 = vld [vmem:[%s9141_s22 + $0x288] ss:$44 sps:$4 sm:$0xff]  }
 0x332   : > { %4890 = vmatprep.mubr.bf16.mxu1 %v6799_v25  ;;  %v3863_v17 = vmul.f32 %v3686_v42, %v2855_v43 }
 0x333   : > { %v3936_v46 = vpack.c.bf16 %v3839_v2, %v3838_v6  ;;  %v6814_v2 = vld [vmem:[%s9141_s22 + $0xd4] ss:$44 sps:$4 sm:$0xff]  }
 0x334   : > { %v3651_v60 = vpop.permute.xlu1 %3650  ;;  %v6362_v41 = vpop.f32.mrb[16].mxu0 }
 0x335   : > { %v3856_v52 = vmul.f32 %v3651_v60, %v2848_v7  ;;  %6591 = vmatpush3.bf16.msra.mxu0 %v3936_v46  ;;  %6692 = vmatpush3.bf16.msra.mxu1 %v3936_v46  ;;  %v6363_v45 = vpop.f32.mrb[17].mxu0  ;;  %v3696_v20 = vpop.permute.xlu0 %3695  ;;  %v2856_v7 = vld [vmem:[%s10682_s3 + $0x530] sm:$0xff] }
 0x336   : > { %v10179_v57 = vadd.f32 %v6363_v45, %v6362_v41  ;;  %v6365_v27 = vpop.f32.mrb[18].mxu0  ;;  %v3865_v61 = vmul.f32 %v3696_v20, %v2857_v0 }
 0x337   : > { %v3945_v3 = vpack.c.bf16 %v3857_v53, %v3856_v52  ;;  %v6366_v5 = vpop.f32.mrb[19].mxu0 }
 0x338   : > { %v3571_v59 = vpop.permute.xlu1 %3570  ;;  %4891 = vmatmul.mubr.bf16.gmra.mrb[60].mxu1 %v6801_v58  ;;  %v10181_v51 = vadd.f32 %v6366_v5, %v6365_v27  ;;  %v6818_v27 = vld [vmem:[%s9141_s22 + $0x80] ss:$44 sps:$4 sm:$0xff]  }
 0x339   : > { %v3840_v16 = vmul.f32 %v3571_v59, %v2832_v8  ;;  %6592 = vmatprep.subr.bf16.mxu0 %v3945_v3  ;;  %6685 = vmatprep.subr.bf16.mxu1 %v3945_v3  ;;  %v6816_v3 = vld [vmem:[%s9141_s22 + $0xd0] ss:$44 sps:$4 sm:$0xff]   ;;  %v6819_v59 = vld [vmem:[%s9141_s22 + $0x12c] ss:$44 sps:$4 sm:$0xff]  }
 0x33a   : > { %4979 = vmatprep.mubr.bf16.mxu1 %v6807_v36 }
 0x33b   : > { %v3937_v12 = vpack.c.bf16 %v3841_v35, %v3840_v16  ;;  %v6822_v35 = vld [vmem:[%s9141_s22 + $0xd8] ss:$44 sps:$4 sm:$0xff]  }
 0x33c   : > { %v3661_v28 = vpop.permute.xlu1 %3660  ;;  %v6368_v39 = vpop.f32.mrb[20].mxu0 }
 0x33d   : > { %v3858_v63 = vmul.f32 %v3661_v28, %v2850_v44  ;;  %6593 = vmatpush3.bf16.msra.mxu0 %v3937_v12  ;;  %6693 = vmatpush3.bf16.msra.mxu1 %v3937_v12  ;;  %v6369_v34 = vpop.f32.mrb[21].mxu0  ;;  %v6821_v28 = vld [vmem:[%s9141_s22 + $0x128] ss:$44 sps:$4 sm:$0xff]  }
 0x33e   : > { %v10199_v13 = vadd.f32 %v6369_v34, %v6368_v39  ;;  %v6371_v50 = vpop.f32.mrb[22].mxu0 }
 0x33f   : > { %v3946_v49 = vpack.c.bf16 %v3859_v14, %v3858_v63  ;;  %v6372_v10 = vpop.f32.mrb[23].mxu0  ;;  %v6824_v14 = vld [vmem:[%s9141_s22 + $0x184] ss:$44 sps:$4 sm:$0xff]  }
 0x340   : > { %v3671_v22 = vpop.permute.xlu1 %3670  ;;  %4932 = vmatmul.mubr.bf16.vlgmr.msra.gmra.mrb[64].mxu0 %v6802_v4  ;;  %4980 = vmatmul.mubr.bf16.vlgmr.msra.gmra.mrb[64].mxu1 %v6805_v1  ;;  %v10201_v21 = vadd.f32 %v6372_v10, %v6371_v50  ;;  %v6823_v1 = vld [vmem:[%s9141_s22 + $0x130] ss:$44 sps:$4 sm:$0xff]  }
 0x341   : > { %v3860_v54 = vmul.f32 %v3671_v22, %v2852_v23  ;;  %6654 = vmatprep.subr.bf16.mxu1 %v3946_v49  ;;  %4939 = vmatprep.mubr.bf16.mxu0 %v6808_v55  ;;  %v6827_v55 = vld [vmem:[%s9141_s22 + $0x188] ss:$44 sps:$4 sm:$0xff]   ;;  %v6828_v22 = vld [vmem:[%s9141_s22 + $0x1e0] ss:$44 sps:$4 sm:$0xff]  }
 0x342   : > { %6655 = vmatpush3.bf16.msra.mxu1 %v3946_v49  ;;  %4987 = vmatprep.mubr.bf16.mxu1 %v6810_v18  ;;  %v6826_v49 = vld [vmem:[%s9141_s22 + $0x180] ss:$44 sps:$4 sm:$0xff]   ;;  %v6829_v10 = vld [vmem:[%s9141_s22 + $0x1dc] ss:$44 sps:$4 sm:$0xff]  }
 0x343   : > { %v3947_v37 = vpack.c.bf16 %v3861_v11, %v3860_v54  ;;  %v6832_v54 = vld [vmem:[%s9141_s22 + $0x238] ss:$44 sps:$4 sm:$0xff]  }
 0x344   : > { %v3681_v25 = vpop.permute.xlu1 %3680  ;;  %v6374_v6 = vpop.f32.mrb[24].mxu0 }
 0x345   : > { %v3862_v9 = vmul.f32 %v3681_v25, %v2854_v33  ;;  %6656 = vmatprep.subr.bf16.mxu1 %v3947_v37  ;;  %v6375_v46 = vpop.f32.mrb[25].mxu0 }
 0x346   : > { %6657 = vmatpush3.bf16.msra.mxu1 %v3947_v37  ;;  %v10219_v58 = vadd.f32 %v6375_v46, %v6374_v6  ;;  %v6377_v53 = vpop.f32.mrb[26].mxu0 }
 0x347   : > { %v3948_v60 = vpack.c.bf16 %v3863_v17, %v3862_v9  ;;  %v6378_v41 = vpop.f32.mrb[27].mxu0  ;;  %v6833_v17 = vld [vmem:[%s9141_s22 + $0x290] ss:$44 sps:$4 sm:$0xff]  }
 0x348   : > { %v3691_v52 = vpop.permute.xlu1 %3690  ;;  %4940 = vmatmul.mubr.bf16.gmra.mrb[68].mxu0 %v6812_v26  ;;  %4988 = vmatmul.mubr.bf16.gmra.mrb[68].mxu1 %v6813_v19  ;;  %v10221_v36 = vadd.f32 %v6378_v41, %v6377_v53  ;;  %v6831_v26 = vld [vmem:[%s9141_s22 + $0x1d8] ss:$44 sps:$4 sm:$0xff]   ;;  %s10426_s22 = sshll.u32 %s10872_s11, 3 }
 0x349   : > { %v3864_v8 = vmul.f32 %v3691_v52, %v2856_v7  ;;  %6658 = vmatprep.subr.bf16.mxu1 %v3948_v60  ;;  %4947 = vmatprep.mubr.bf16.mxu0 %v6814_v2  ;;  %s10432_s14 = scalar_lea.vmem %s10684_s5, %s10426_s22  ;;  %s10453_s16 = scalar_lea.vmem %s10685_s6, %s10426_s22 }
 0x34a   : > { %6659 = vmatpush3.bf16.msra.mxu1 %v3948_v60  ;;  %6662 = vmatprep.mubr.msk.bf16.mxu1 %vm4486_vm1, %v6817_v15  ;;  %s10615_s19 = scalar_lea.vmem %s10686_s7, %s10426_s22 }
 0x34b   : > { %v3949_v45 = vpack.c.bf16 %v3865_v61, %v3864_v8 }
 0x34c   : > { %v6380_v5 = vpop.f32.mrb[28].mxu0 }
 0x34d   : > { %6660 = vmatprep.subr.bf16.mxu1 %v3949_v45  ;;  %v6381_v32 = vpop.f32.mrb[29].mxu0 }
 0x34e   : > { %6661 = vmatpush3.bf16.msra.mxu1 %v3949_v45  ;;  %v10228_v16 = vadd.f32 %v6381_v32, %v6380_v5  ;;  %v6383_v56 = vpop.f32.mrb[30].mxu0 }
 0x34f   : > { %v6384_v44 = vpop.f32.mrb[31].mxu0 }
 0x350   : > { %4948 = vmatmul.mubr.bf16.gmra.mrb[72].mxu0 %v6816_v3  ;;  %v10231_v12 = vadd.f32 %v6384_v44, %v6383_v56 }
 0x351   : > { %6663 = vmatmul.mubr.msk.bf16.vlgmr.msra.gmra.mrb[72].mxu1 %vm4486_vm1, %v6818_v27  ;;  %4955 = vmatprep.mubr.bf16.mxu0 %v6819_v59 }
 0x352   : > { %6666 = vmatprep.mubr.msk.bf16.mxu1 %vm4486_vm1, %v6822_v35 }
 0x354   : > { %v6402_v4 = vpop.f32.mrb[0].mxu1 }
 0x355   : > { %v6403_v63 = vpop.f32.mrb[1].mxu1 }
 0x356   : > { %v6404_v39 = vadd.f32 %v6403_v63, %v6402_v4  ;;  %v6405_v30 = vpop.f32.mrb[2].mxu1 }
 0x357   : > { %v6406_v23 = vpop.f32.mrb[3].mxu1 }
 0x358   : > { %4956 = vmatmul.mubr.bf16.gmra.mrb[76].mxu0 %v6821_v28  ;;  %v10239_v18 = vadd.f32 %v6404_v39, %v10093_v47  ;;  %v6407_v34 = vadd.f32 %v6406_v23, %v6405_v30 }
 0x359   : > { %6667 = vmatmul.mubr.msk.bf16.gmra.mrb[76].mxu1 %vm4486_vm1, %v6823_v1  ;;  %4963 = vmatprep.mubr.bf16.mxu0 %v6824_v14 }
 0x35a   : > { %6670 = vmatprep.mubr.msk.bf16.mxu1 %vm4486_vm1, %v6827_v55  ;;  %v10244_v42 = vadd.f32 %v6407_v34, %v10104_v38 }
 0x35c   : > { %v6408_v50 = vpop.f32.mrb[4].mxu1 }
 0x35d   : > { %v6409_v11 = vpop.f32.mrb[5].mxu1 }
 0x35e   : > { %v6410_v43 = vadd.f32 %v6409_v11, %v6408_v50  ;;  %v6411_v47 = vpop.f32.mrb[6].mxu1 }
 0x35f   : > { %v6412_v33 = vpop.f32.mrb[7].mxu1 }
 0x360   : > { %4964 = vmatmul.mubr.bf16.gmra.mrb[80].mxu0 %v6826_v49  ;;  %v10251_v37 = vadd.f32 %v6410_v43, %v10117_v31  ;;  %v6413_v25 = vadd.f32 %v6412_v33, %v6411_v47 }
 0x361   : > { %6671 = vmatmul.mubr.msk.bf16.gmra.mrb[80].mxu1 %vm4486_vm1, %v6828_v22  ;;  %4971 = vmatprep.mubr.bf16.mxu0 %v6829_v10 }
 0x362   : > { %6674 = vmatprep.mubr.msk.bf16.mxu1 %vm4486_vm1, %v6832_v54  ;;  %v10256_v38 = vadd.f32 %v6413_v25, %v10128_v40 }
 0x364   : > { %v6414_v19 = vpop.f32.mrb[8].mxu1 }
 0x365   : > { %v6415_v9 = vpop.f32.mrb[9].mxu1 }
 0x366   : > { %v6416_v2 = vadd.f32 %v6415_v9, %v6414_v19  ;;  %v6417_v6 = vpop.f32.mrb[10].mxu1 }
 0x367   : > { %v6418_v0 = vpop.f32.mrb[11].mxu1 }
 0x368   : > { %4972 = vmatmul.mubr.bf16.gmra.mrb[84].mxu0 %v6831_v26  ;;  %v10261_v31 = vadd.f32 %v6416_v2, %v10139_v48  ;;  %v6419_v20 = vadd.f32 %v6418_v0, %v6417_v6 }
 0x369   : > { %6675 = vmatmul.mubr.msk.bf16.gmra.mrb[84].mxu1 %vm4486_vm1, %v6833_v17 }
 0x36a   : > { %v10265_v7 = vadd.f32 %v6419_v20, %v10150_v62 }
 0x36c   : > { %v6420_v15 = vpop.f32.mrb[12].mxu1 }
 0x36d   : > { %v6421_v40 = vpop.f32.mrb[13].mxu1 }
 0x36e   : > { %v6422_v46 = vadd.f32 %v6421_v40, %v6420_v15  ;;  %v6423_v60 = vpop.f32.mrb[14].mxu1 }
 0x36f   : > { %v6424_v53 = vpop.f32.mrb[15].mxu1 }
 0x370   : > { %v10268_v52 = vadd.f32 %v6422_v46, %v10161_v24  ;;  %v6425_v41 = vadd.f32 %v6424_v53, %v6423_v60 }
 0x372   : > { %v10271_v61 = vadd.f32 %v6425_v41, %v10169_v29 }
 0x374   : > { %v6426_v48 = vpop.f32.mrb[16].mxu1 }
 0x375   : > { %v6427_v8 = vpop.f32.mrb[17].mxu1 }
 0x376   : > { %v6428_v45 = vadd.f32 %v6427_v8, %v6426_v48  ;;  %v6429_v3 = vpop.f32.mrb[18].mxu1 }
 0x377   : > { %v6430_v27 = vpop.f32.mrb[19].mxu1 }
 0x378   : > { %v10274_v62 = vadd.f32 %v6428_v45, %v10179_v57  ;;  %v6431_v59 = vadd.f32 %v6430_v27, %v6429_v3 }
 0x37a   : > { %v10277_v5 = vadd.f32 %v6431_v59, %v10181_v51 }
 0x37c   : > { %v6432_v35 = vpop.f32.mrb[20].mxu1 }
 0x37d   : > { %v6433_v32 = vpop.f32.mrb[21].mxu1 }
 0x37e   : > { %v6434_v24 = vadd.f32 %v6433_v32, %v6432_v35  ;;  %v6435_v56 = vpop.f32.mrb[22].mxu1 }
 0x37f   : > { %v6436_v44 = vpop.f32.mrb[23].mxu1 }
 0x380   : > { %v10280_v29 = vadd.f32 %v6434_v24, %v10199_v13  ;;  %v6437_v28 = vadd.f32 %v6436_v44, %v6435_v56 }
 0x382   : > { %v10283_v4 = vadd.f32 %v6437_v28, %v10201_v21 }
 0x385   : > { %v6438_v1 = vpop.f32.mrb[24].mxu1 }
 0x386   : > { %v6439_v14 = vpop.f32.mrb[25].mxu1 }
 0x387   : > { %v6440_v57 = vadd.f32 %v6439_v14, %v6438_v1  ;;  %v6441_v63 = vpop.f32.mrb[26].mxu1 }
 0x388   : > { %v6442_v55 = vpop.f32.mrb[27].mxu1 }
 0x389   : > { %v10286_v51 = vadd.f32 %v6440_v57, %v10219_v58  ;;  %v6443_v39 = vadd.f32 %v6442_v55, %v6441_v63 }
 0x38b   : > { %v10289_v30 = vadd.f32 %v6443_v39, %v10221_v36 }
 0x38d   : > { %v6444_v23 = vpop.f32.mrb[28].mxu1 }
 0x38e   : > { %v6445_v34 = vpop.f32.mrb[29].mxu1 }
 0x38f   : > { %v6446_v13 = vadd.f32 %v6445_v34, %v6444_v23  ;;  %v6447_v49 = vpop.f32.mrb[30].mxu1 }
 0x390   : > { %v6448_v50 = vpop.f32.mrb[31].mxu1 }
 0x391   : > { %v10292_v21 = vadd.f32 %v6446_v13, %v10228_v16  ;;  %v6449_v22 = vadd.f32 %v6448_v50, %v6447_v49 }
 0x393   : > { %v10295_v10 = vadd.f32 %v6449_v22, %v10231_v12 }
 0x3c7   : > { %v6466_v11 = vpop.f32.mrb[32].mxu0 }
 0x3c8   : > { %v6467_v54 = vpop.f32.mrb[33].mxu0 }
 0x3c9   : > { %v6468_v58 = vadd.f32 %v6467_v54, %v6466_v11  ;;  %v6469_v43 = vpop.f32.mrb[34].mxu0 }
 0x3ca   : > { %v6470_v47 = vpop.f32.mrb[35].mxu0 }
 0x3cb   : > { %v4740_v36 = vadd.f32 %v6468_v58, %v10239_v18  ;;  %v6471_v33 = vadd.f32 %v6470_v47, %v6469_v43 }
 0x3cd   : > { %v4743_v25 = vadd.f32 %v6471_v33, %v10244_v42 }
 0x3cf   : > { %v6472_v26 = vpop.f32.mrb[36].mxu0 }
 0x3d0   : > { %v6473_v19 = vpop.f32.mrb[37].mxu0 }
 0x3d1   : > { %v6474_v17 = vadd.f32 %v6473_v19, %v6472_v26  ;;  %v6475_v9 = vpop.f32.mrb[38].mxu0 }
 0x3d2   : > { %v6476_v16 = vpop.f32.mrb[39].mxu0 }
 0x3d3   : > { %v4748_v2 = vadd.f32 %v6474_v17, %v10251_v37  ;;  %v6477_v6 = vadd.f32 %v6476_v16, %v6475_v9  ;;  %v6530_v12 = vpop.f32.mrb[32].mxu1 }
 0x3d4   : > { %v6531_v0 = vpop.f32.mrb[33].mxu1 }
 0x3d5   : > { %v4751_v20 = vadd.f32 %v6477_v6, %v10256_v38  ;;  %v6532_v15 = vadd.f32 %v6531_v0, %v6530_v12  ;;  %v6533_v40 = vpop.f32.mrb[34].mxu1 }
 0x3d6   : > { %v6534_v46 = vpop.f32.mrb[35].mxu1 }
 0x3d7   : > { %v10301_v60 = vadd.f32 %v6532_v15, %v4740_v36  ;;  %v6535_v18 = vadd.f32 %v6534_v46, %v6533_v40  ;;  %v6478_v53 = vpop.f32.mrb[40].mxu0 }
 0x3d8   : > { %v6479_v42 = vpop.f32.mrb[41].mxu0 }
 0x3d9   : > { %v10303_v41 = vadd.f32 %v6535_v18, %v4743_v25  ;;  %v6480_v48 = vadd.f32 %v6479_v42, %v6478_v53  ;;  %v6481_v8 = vpop.f32.mrb[42].mxu0 }
 0x3da   : > { %v6482_v45 = vpop.f32.mrb[43].mxu0 }
 0x3db   : > { %v4756_v37 = vadd.f32 %v6480_v48, %v10261_v31  ;;  %v6483_v3 = vadd.f32 %v6482_v45, %v6481_v8  ;;  %v6536_v27 = vpop.f32.mrb[36].mxu1 }
 0x3dc   : > { %v6537_v59 = vpop.f32.mrb[37].mxu1 }
 0x3dd   : > { %v4759_v38 = vadd.f32 %v6483_v3, %v10265_v7  ;;  %v6538_v35 = vadd.f32 %v6537_v59, %v6536_v27  ;;  %v6539_v32 = vpop.f32.mrb[38].mxu1 }
 0x3de   : > { %v6540_v24 = vpop.f32.mrb[39].mxu1 }
 0x3df   : > { %v10307_v56 = vadd.f32 %v6538_v35, %v4748_v2  ;;  %v6541_v44 = vadd.f32 %v6540_v24, %v6539_v32  ;;  %v6484_v28 = vpop.f32.mrb[44].mxu0 }
 0x3e0   : > { %v6485_v1 = vpop.f32.mrb[45].mxu0 }
 0x3e1   : > { %v10309_v14 = vadd.f32 %v6541_v44, %v4751_v20  ;;  %v6486_v57 = vadd.f32 %v6485_v1, %v6484_v28  ;;  %v6487_v63 = vpop.f32.mrb[46].mxu0 }
 0x3e2   : > { %v6488_v55 = vpop.f32.mrb[47].mxu0 }
 0x3e3   : > { %v4764_v31 = vadd.f32 %v6486_v57, %v10268_v52  ;;  %v6489_v39 = vadd.f32 %v6488_v55, %v6487_v63  ;;  %v6542_v23 = vpop.f32.mrb[40].mxu1 }
 0x3e4   : > { %v6543_v34 = vpop.f32.mrb[41].mxu1 }
 0x3e5   : > { %v4767_v7 = vadd.f32 %v6489_v39, %v10271_v61  ;;  %v6544_v13 = vadd.f32 %v6543_v34, %v6542_v23  ;;  %v6545_v49 = vpop.f32.mrb[42].mxu1 }
 0x3e6   : > { %v6546_v50 = vpop.f32.mrb[43].mxu1 }
 0x3e7   : > { %v10313_v22 = vadd.f32 %v6544_v13, %v4756_v37  ;;  %v6547_v11 = vadd.f32 %v6546_v50, %v6545_v49  ;;  %v6490_v54 = vpop.f32.mrb[48].mxu0 }
 0x3e8   : > { %v6491_v58 = vpop.f32.mrb[49].mxu0 }
 0x3e9   : > { %v10315_v43 = vadd.f32 %v6547_v11, %v4759_v38  ;;  %v6492_v47 = vadd.f32 %v6491_v58, %v6490_v54  ;;  %v6493_v36 = vpop.f32.mrb[50].mxu0 }
 0x3ea   : > { %v6494_v33 = vpop.f32.mrb[51].mxu0 }
 0x3eb   : > { %v4772_v52 = vadd.f32 %v6492_v47, %v10274_v62  ;;  %v6495_v25 = vadd.f32 %v6494_v33, %v6493_v36  ;;  %v6548_v26 = vpop.f32.mrb[44].mxu1 }
 0x3ec   : > { %v6549_v19 = vpop.f32.mrb[45].mxu1 }
 0x3ed   : > { %v4775_v61 = vadd.f32 %v6495_v25, %v10277_v5  ;;  %v6550_v17 = vadd.f32 %v6549_v19, %v6548_v26  ;;  %v6551_v9 = vpop.f32.mrb[46].mxu1 }
 0x3ee   : > { %v6552_v16 = vpop.f32.mrb[47].mxu1 }
 0x3ef   : > { %v10319_v2 = vadd.f32 %v6550_v17, %v4764_v31  ;;  %v6553_v6 = vadd.f32 %v6552_v16, %v6551_v9  ;;  %v6496_v12 = vpop.f32.mrb[52].mxu0 }
 0x3f0   : > { %v6497_v0 = vpop.f32.mrb[53].mxu0 }
 0x3f1   : > { %v10321_v20 = vadd.f32 %v6553_v6, %v4767_v7  ;;  %v6498_v15 = vadd.f32 %v6497_v0, %v6496_v12  ;;  %v6499_v40 = vpop.f32.mrb[54].mxu0 }
 0x3f2   : > { %v6500_v46 = vpop.f32.mrb[55].mxu0 }
 0x3f3   : > { %v4780_v62 = vadd.f32 %v6498_v15, %v10280_v29  ;;  %v6501_v18 = vadd.f32 %v6500_v46, %v6499_v40  ;;  %v6554_v53 = vpop.f32.mrb[48].mxu1 }
 0x3f4   : > { %v6555_v42 = vpop.f32.mrb[49].mxu1 }
 0x3f5   : > { %v4783_v5 = vadd.f32 %v6501_v18, %v10283_v4  ;;  %v6556_v48 = vadd.f32 %v6555_v42, %v6554_v53  ;;  %v6557_v8 = vpop.f32.mrb[50].mxu1 }
 0x3f6   : > { %v6558_v45 = vpop.f32.mrb[51].mxu1 }
 0x3f7   : > { %v10325_v37 = vadd.f32 %v6556_v48, %v4772_v52  ;;  %v6559_v3 = vadd.f32 %v6558_v45, %v6557_v8  ;;  %v6502_v27 = vpop.f32.mrb[56].mxu0 }
 0x3f8   : > { %v6503_v59 = vpop.f32.mrb[57].mxu0 }
 0x3f9   : > { %v10327_v38 = vadd.f32 %v6559_v3, %v4775_v61  ;;  %v6504_v35 = vadd.f32 %v6503_v59, %v6502_v27  ;;  %v6505_v32 = vpop.f32.mrb[58].mxu0 }
 0x3fa   : > { %v6506_v24 = vpop.f32.mrb[59].mxu0 }
 0x3fb   : > { %v4788_v29 = vadd.f32 %v6504_v35, %v10286_v51  ;;  %v6507_v44 = vadd.f32 %v6506_v24, %v6505_v32  ;;  %v6560_v28 = vpop.f32.mrb[52].mxu1 }
 0x3fc   : > { %v6561_v1 = vpop.f32.mrb[53].mxu1 }
 0x3fd   : > { %v4791_v4 = vadd.f32 %v6507_v44, %v10289_v30  ;;  %v6562_v57 = vadd.f32 %v6561_v1, %v6560_v28  ;;  %v6563_v63 = vpop.f32.mrb[54].mxu1 }
 0x3fe   : > { %v6564_v55 = vpop.f32.mrb[55].mxu1 }
 0x3ff   : > { %v10331_v31 = vadd.f32 %v6562_v57, %v4780_v62  ;;  %v6565_v39 = vadd.f32 %v6564_v55, %v6563_v63  ;;  %v6508_v23 = vpop.f32.mrb[60].mxu0 }
 0x400   : > { %v6509_v34 = vpop.f32.mrb[61].mxu0 }
 0x401   : > { %v10333_v7 = vadd.f32 %v6565_v39, %v4783_v5  ;;  %v6510_v13 = vadd.f32 %v6509_v34, %v6508_v23  ;;  %v6511_v49 = vpop.f32.mrb[62].mxu0 }
 0x402   : > { %v6512_v50 = vpop.f32.mrb[63].mxu0 }
 0x403   : > { %v4796_v51 = vadd.f32 %v6510_v13, %v10292_v21  ;;  %v6513_v11 = vadd.f32 %v6512_v50, %v6511_v49  ;;  %v6566_v54 = vpop.f32.mrb[56].mxu1 }
 0x404   : > { %v6567_v58 = vpop.f32.mrb[57].mxu1 }
 0x405   : > { %v4799_v30 = vadd.f32 %v6513_v11, %v10295_v10  ;;  %v6568_v47 = vadd.f32 %v6567_v58, %v6566_v54  ;;  %v6569_v36 = vpop.f32.mrb[58].mxu1 }
 0x406   : > { %v6570_v33 = vpop.f32.mrb[59].mxu1 }
 0x407   : > { %v4885_v52 = vadd.f32 %v6568_v47, %v4788_v29  ;;  %v6571_v25 = vadd.f32 %v6570_v33, %v6569_v36 }
 0x409   : > { %v4888_v26 = vadd.f32 %v6571_v25, %v4791_v4 }
 0x40b   : > { %v6572_v19 = vpop.f32.mrb[60].mxu1 }
 0x40c   : > { %v6573_v61 = vpop.f32.mrb[61].mxu1 }
 0x40d   : > { %v6574_v17 = vadd.f32 %v6573_v61, %v6572_v19  ;;  %v6575_v9 = vpop.f32.mrb[62].mxu1 }
 0x40e   : > { %v6576_v16 = vpop.f32.mrb[63].mxu1 }
 0x40f   : > { %v4893_v6 = vadd.f32 %v6574_v17, %v4796_v51  ;;  %v6577_v12 = vadd.f32 %v6576_v16, %v6575_v9 }
 0x411   : > { %v4896_v0 = vadd.f32 %v6577_v12, %v4799_v30 }
 0x413   : > { %v6594_v21 = vpop.f32.mrb[64].mxu0  ;;  %v6630_v15 = vpop.f32.mrb[64].mxu1 }
 0x414   : > { %v6595_v40 = vpop.f32.mrb[65].mxu0  ;;  %v6631_v46 = vpop.f32.mrb[65].mxu1 }
 0x415   : > { %v6596_v62 = vadd.f32 %v6595_v40, %v6594_v21  ;;  %v6632_v10 = vadd.f32 %v6631_v46, %v6630_v15  ;;  %v6597_v18 = vpop.f32.mrb[66].mxu0  ;;  %v6633_v53 = vpop.f32.mrb[66].mxu1 }
 0x416   : > { %v6598_v42 = vpop.f32.mrb[67].mxu0  ;;  %v6634_v5 = vpop.f32.mrb[67].mxu1 }
 0x417   : > { %v6599_v48 = vadd.f32 %v6598_v42, %v6597_v18  ;;  %v6635_v8 = vadd.f32 %v6634_v5, %v6633_v53  ;;  %v4934_v45 = vadd.f32 %v6596_v62, %v10301_v60  ;;  %v10338_v3 = vadd.f32 %v6632_v10, %v4885_v52 }
 0x419   : > { %v4937_v27 = vadd.f32 %v6599_v48, %v10303_v41  ;;  %v10341_v59 = vadd.f32 %v6635_v8, %v4888_v26 }
 0x41b   : > { %v6600_v35 = vpop.f32.mrb[68].mxu0  ;;  %v6636_v32 = vpop.f32.mrb[68].mxu1 }
 0x41c   : > { %v6601_v24 = vpop.f32.mrb[69].mxu0  ;;  %v6637_v29 = vpop.f32.mrb[69].mxu1 }
 0x41d   : > { %v6602_v44 = vadd.f32 %v6601_v24, %v6600_v35  ;;  %v6638_v28 = vadd.f32 %v6637_v29, %v6636_v32  ;;  %v6603_v1 = vpop.f32.mrb[70].mxu0  ;;  %v6639_v4 = vpop.f32.mrb[70].mxu1 }
 0x41e   : > { %v6604_v57 = vpop.f32.mrb[71].mxu0  ;;  %v6640_v63 = vpop.f32.mrb[71].mxu1 }
 0x41f   : > { %v6605_v55 = vadd.f32 %v6604_v57, %v6603_v1  ;;  %v6641_v39 = vadd.f32 %v6640_v63, %v6639_v4  ;;  %v4942_v60 = vadd.f32 %v6602_v44, %v10307_v56  ;;  %v10344_v23 = vadd.f32 %v6638_v28, %v4893_v6 }
 0x421   : > { %v4945_v41 = vadd.f32 %v6605_v55, %v10309_v14  ;;  %v10347_v34 = vadd.f32 %v6641_v39, %v4896_v0 }
 0x423   : > { %v6606_v13 = vpop.f32.mrb[72].mxu0 }
 0x424   : > { %v6607_v49 = vpop.f32.mrb[73].mxu0  ;;  %v6664_v50 = vpop.f32.mrb[72].mxu1 }
 0x425   : > { %v6608_v51 = vadd.f32 %v6607_v49, %v6606_v13  ;;  %v10349_v11 = vadd.f32 %v6664_v50, %v4942_v60  ;;  %v6609_v54 = vpop.f32.mrb[74].mxu0  ;;  %v5030_v58 = vpop.f32.mrb[73].mxu1 }
 0x426   : > { %v10351_v30 = vadd.f32 %v5030_v58, %v4934_v45  ;;  %v6610_v47 = vpop.f32.mrb[75].mxu0  ;;  %v6665_v36 = vpop.f32.mrb[74].mxu1 }
 0x427   : > { %v6611_v56 = vadd.f32 %v6610_v47, %v6609_v54  ;;  %v10353_v33 = vadd.f32 %v6665_v36, %v4945_v41  ;;  %v5033_v52 = vpop.f32.mrb[75].mxu1  ;;  %v4950_v14 = vadd.f32 %v6608_v51, %v10313_v22 }
 0x428   : > { %v10356_v25 = vadd.f32 %v5033_v52, %v4937_v27  ;;  %v5094_v26 = vsel %vm5093_vm2, %v10351_v30, 0.0 }
 0x429   : > { %5095 = vadd.xlane.f32.xlu1 %v5094_v26  ;;  %v4953_v19 = vadd.f32 %v6611_v56, %v10315_v43  ;;  %v5103_v6 = vsel %vm5093_vm2, %v10353_v33, 0.0  ;;  %v5100_v43 = vsel %vm5093_vm2, %v10349_v11, 0.0 }
 0x42a   : > { %v5097_v61 = vsel %vm5093_vm2, %v10356_v25, 0.0 }
 0x42b   : > { %v6612_v17 = vpop.f32.mrb[76].mxu0  ;;  %5098 = vadd.xlane.f32.xlu0 %v5097_v61 }
 0x42c   : > { %v6613_v9 = vpop.f32.mrb[77].mxu0  ;;  %v6668_v16 = vpop.f32.mrb[76].mxu1 }
 0x42d   : > { %v6614_v12 = vadd.f32 %v6613_v9, %v6612_v17  ;;  %v6615_v22 = vpop.f32.mrb[78].mxu0  ;;  %v5046_v0 = vpop.f32.mrb[77].mxu1  ;;  %5104 = vadd.xlane.f32.xlu1 %v5103_v6  ;;  %v5287_v6 = vld [vmem:[%s10432_s14] sm:$0xff] }
 0x42e   : > { %v10365_v21 = vadd.f32 %v5046_v0, %v4950_v14  ;;  %v6616_v15 = vpop.f32.mrb[79].mxu0  ;;  %v6669_v40 = vpop.f32.mrb[78].mxu1  ;;  %v5291_v0 = vld [vmem:[%s10432_s14 + $0x20] sm:$0xff] }
 0x42f   : > { %v4958_v46 = vadd.f32 %v6614_v12, %v10319_v2  ;;  %v6617_v62 = vadd.f32 %v6616_v15, %v6615_v22  ;;  %v5049_v10 = vpop.f32.mrb[79].mxu1  ;;  %5101 = vadd.xlane.f32.xlu0 %v5100_v43  ;;  %v5289_v12 = vld [vmem:[%s10432_s14 + $0x10] sm:$0xff]  ;;  %v5290_v22 = vld [vmem:[%s10432_s14 + $0x18] sm:$0xff]  ;;  %v5292_v15 = vld [vmem:[%s10432_s14 + $0x28] sm:$0xff] }
 0x430   : > { %v10370_v18 = vadd.f32 %v5049_v10, %v4953_v19  ;;  %v5106_v5 = vsel %vm5093_vm2, %v10365_v21, 0.0  ;;  %v5294_v43 = vld [vmem:[%s10432_s14 + $0x38] sm:$0xff]  ;;  %v5297_v10 = vld [vmem:[%s10432_s14 + $0x50] sm:$0xff] }
 0x431   : > { %v10372_v53 = vadd.f32 %v6668_v16, %v4958_v46  ;;  %v4961_v42 = vadd.f32 %v6617_v62, %v10321_v20  ;;  %v5288_v16 = vld [vmem:[%s10432_s14 + $0x8] sm:$0xff]  ;;  %v5295_v46 = vld [vmem:[%s10432_s14 + $0x40] sm:$0xff] }
 0x432   : > { %v5109_v48 = vsel %vm5093_vm2, %v10370_v18, 0.0  ;;  %v5296_v62 = vld [vmem:[%s10432_s14 + $0x48] sm:$0xff] }
 0x433   : > { %v10379_v8 = vadd.f32 %v6669_v40, %v4961_v42  ;;  %v6618_v45 = vpop.f32.mrb[80].mxu0  ;;  %5107 = vadd.xlane.f32.xlu0 %v5106_v5  ;;  %5110 = vadd.xlane.f32.xlu1 %v5109_v48  ;;  %v5112_v44 = vsel %vm5093_vm2, %v10372_v53, 0.0  ;;  %v5293_v40 = vld [vmem:[%s10432_s14 + $0x30] sm:$0xff]  ;;  %v5298_v42 = vld [vmem:[%s10432_s14 + $0x58] sm:$0xff]  ;;  %v5299_v5 = vld [vmem:[%s10432_s14 + $0x60] sm:$0xff] }
 0x434   : > { %v6619_v2 = vpop.f32.mrb[81].mxu0  ;;  %v6672_v27 = vpop.f32.mrb[80].mxu1  ;;  %v5300_v48 = vld [vmem:[%s10432_s14 + $0x68] sm:$0xff] }
 0x435   : > { %v6620_v35 = vadd.f32 %v6619_v2, %v6618_v45  ;;  %v6621_v32 = vpop.f32.mrb[82].mxu0  ;;  %v5115_v24 = vsel %vm5093_vm2, %v10379_v8, 0.0  ;;  %v5062_v29 = vpop.f32.mrb[81].mxu1  ;;  %v5301_v45 = vld [vmem:[%s10432_s14 + $0x70] sm:$0xff]  ;;  %v5302_v2 = vld [vmem:[%s10432_s14 + $0x78] sm:$0xff] }
 0x436   : > { %v6622_v20 = vpop.f32.mrb[83].mxu0  ;;  %v6673_v28 = vpop.f32.mrb[82].mxu1 }
 0x437   : > { %v6623_v1 = vadd.f32 %v6622_v20, %v6621_v32  ;;  %5113 = vadd.xlane.f32.xlu0 %v5112_v44  ;;  %5116 = vadd.xlane.f32.xlu1 %v5115_v24  ;;  %v4966_v4 = vadd.f32 %v6620_v35, %v10325_v37  ;;  %v5065_v57 = vpop.f32.mrb[83].mxu1  ;;  %v5416_v35 = vld [vmem:[%s10453_s16 + $0x8] sm:$0xff]  ;;  %v5417_v32 = vld [vmem:[%s10453_s16 + $0x10] sm:$0xff]  ;;  %v5418_v24 = vld [vmem:[%s10453_s16 + $0x18] sm:$0xff] }
 0x438   : > { %v5420_v20 = vld [vmem:[%s10453_s16 + $0x28] sm:$0xff]  ;;  %v5421_v44 = vld [vmem:[%s10453_s16 + $0x30] sm:$0xff] }
 0x439   : > { %v10386_v63 = vadd.f32 %v5062_v29, %v4966_v4  ;;  %v4969_v55 = vadd.f32 %v6623_v1, %v10327_v38  ;;  %v5419_v29 = vld [vmem:[%s10453_s16 + $0x20] sm:$0xff]  ;;  %v5424_v4 = vld [vmem:[%s10453_s16 + $0x48] sm:$0xff] }
 0x43a   : > { %v5423_v1 = vld [vmem:[%s10453_s16 + $0x40] sm:$0xff] }
 0x43b   : > { %v10389_v39 = vadd.f32 %v5065_v57, %v4969_v55  ;;  %v6624_v60 = vpop.f32.mrb[84].mxu0  ;;  %v5118_v41 = vsel %vm5093_vm2, %v10386_v63, 0.0  ;;  %v5425_v57 = vld [vmem:[%s10453_s16 + $0x50] sm:$0xff]  ;;  %v5426_v55 = vld [vmem:[%s10453_s16 + $0x58] sm:$0xff] }
 0x43c   : > { %v6625_v13 = vpop.f32.mrb[85].mxu0  ;;  %v6676_v49 = vpop.f32.mrb[84].mxu1  ;;  %5119 = vadd.xlane.f32.xlu0 %v5118_v41  ;;  %v5428_v41 = vld [vmem:[%s10453_s16 + $0x68] sm:$0xff] }
 0x43d   : > { %v6626_v50 = vadd.f32 %v6625_v13, %v6624_v60  ;;  %v10394_v51 = vadd.f32 %v6676_v49, %v10344_v23  ;;  %v6627_v54 = vpop.f32.mrb[86].mxu0  ;;  %v5078_v37 = vpop.f32.mrb[85].mxu1  ;;  %v5121_v58 = vsel %vm5093_vm2, %v10389_v39, 0.0  ;;  %v5427_v60 = vld [vmem:[%s10453_s16 + $0x60] sm:$0xff] }
 0x43e   : > { %v10399_v38 = vadd.f32 %v5078_v37, %v10338_v3  ;;  %v6628_v47 = vpop.f32.mrb[87].mxu0  ;;  %v6677_v36 = vpop.f32.mrb[86].mxu1  ;;  %5122 = vadd.xlane.f32.xlu1 %v5121_v58 }
 0x43f   : > { %v4974_v56 = vadd.f32 %v6626_v50, %v10331_v31  ;;  %v6629_v52 = vadd.f32 %v6628_v47, %v6627_v54  ;;  %v10403_v14 = vadd.f32 %v6677_v36, %v10347_v34  ;;  %v5081_v26 = vpop.f32.mrb[87].mxu1 }
 0x440   : > { %v10406_v23 = vadd.f32 %v5081_v26, %v10341_v59  ;;  %v5130_v34 = vsel %vm5093_vm2, %v10399_v38, 0.0 }
 0x441   : > { %v4977_v19 = vadd.f32 %v6629_v52, %v10333_v7  ;;  %v10409_v61 = vadd.f32 %v6672_v27, %v4974_v56  ;;  %v5136_v7 = vsel %vm5093_vm2, %v10394_v51, 0.0  ;;  %v5139_v9 = vsel %vm5093_vm2, %v10403_v14, 0.0  ;;  %v5415_v27 = vld [vmem:[%s10453_s16] sm:$0xff] }
 0x442   : > { %v5133_v59 = vsel %vm5093_vm2, %v10406_v23, 0.0 }
 0x443   : > { %v5124_v3 = vsel %vm5093_vm2, %v10409_v61, 0.0  ;;  %v10413_v17 = vadd.f32 %v6673_v28, %v4977_v19  ;;  %v5422_v28 = vld [vmem:[%s10453_s16 + $0x38] sm:$0xff] }
 0x444   : > { %5125 = vadd.xlane.f32.xlu0 %v5124_v3 }
 0x445   : > { %v5127_v31 = vsel %vm5093_vm2, %v10413_v17, 0.0 }
 0x446   : > { %5128 = vadd.xlane.f32.xlu1 %v5127_v31 }
 0x448   : > { %5131 = vadd.xlane.f32.xlu0 %v5130_v34 }
 0x44a   : > { %5134 = vadd.xlane.f32.xlu1 %v5133_v59 }
 0x44c   : > { %5137 = vadd.xlane.f32.xlu0 %v5136_v7 }
 0x44e   : > { %5140 = vadd.xlane.f32.xlu1 %v5139_v9 }
 0x45f   : > { %5310 = vperm.xlu1 %6705, %v5288_v16  }
 0x462   : > { %5305 = vperm.xlu0 %6704, %v5287_v6  }
 0x463   : > { %5315 = vperm.xlu1 %6705, %v5289_v12  }
 0x466   : > { %5320 = vperm.xlu0 %6704, %v5290_v22  }
 0x467   : > { %5325 = vperm.xlu1 %6705, %v5291_v0  }
 0x46a   : > { %5330 = vperm.xlu0 %6704, %v5292_v15  }
 0x46b   : > { %5335 = vperm.xlu1 %6705, %v5293_v40  }
 0x46e   : > { %5340 = vperm.xlu0 %6704, %v5294_v43  }
 0x46f   : > { %5345 = vperm.xlu1 %6705, %v5295_v46  }
 0x472   : > { %5350 = vperm.xlu0 %6704, %v5296_v62  }
 0x473   : > { %5355 = vperm.xlu1 %6705, %v5297_v10  }
 0x476   : > { %5360 = vperm.xlu0 %6704, %v5298_v42  }
 0x477   : > { %5365 = vperm.xlu1 %6705, %v5299_v5  }
 0x47a   : > { %5370 = vperm.xlu0 %6704, %v5300_v48  }
 0x47b   : > { %5375 = vperm.xlu1 %6705, %v5301_v45  }
 0x47e   : > { %5380 = vperm.xlu0 %6704, %v5302_v2  }
 0x47f   : > { %5433 = vperm.xlu1 %6705, %v5415_v27  }
 0x482   : > { %5438 = vperm.xlu0 %6704, %v5416_v35  }
 0x483   : > { %5443 = vperm.xlu1 %6705, %v5417_v32  }
 0x486   : > { %5448 = vperm.xlu0 %6704, %v5418_v24  }
 0x487   : > { %5453 = vperm.xlu1 %6705, %v5419_v29  }
 0x48a   : > { %5458 = vperm.xlu0 %6704, %v5420_v20  }
 0x48b   : > { %5463 = vperm.xlu1 %6705, %v5421_v44  }
 0x48e   : > { %5468 = vperm.xlu0 %6704, %v5422_v28  }
 0x48f   : > { %5473 = vperm.xlu1 %6705, %v5423_v1  }
 0x492   : > { %5478 = vperm.xlu0 %6704, %v5424_v4  }
 0x493   : > { %5483 = vperm.xlu1 %6705, %v5425_v57  }
 0x496   : > { %5488 = vperm.xlu0 %6704, %v5426_v55  }
 0x497   : > { %5493 = vperm.xlu1 %6705, %v5427_v60  }
 0x49a   : > { %5498 = vperm.xlu0 %6704, %v5428_v41  }
 0x4b6   : > { %v5096_v13 = vpop.xlane.xlu1 %5095 }
 0x4b7   : > { %v5143_v37 = vmul.f32 0.020408163, %v5096_v13 }
 0x4b8   : > { %v5099_v49 = vpop.xlane.xlu0 %5098 }
 0x4b9   : > { %v5144_v50 = vmul.f32 0.020408163, %v5099_v49  ;;  %v10477_v26 = vsub.f32 %v10351_v30, %v5143_v37 }
 0x4ba   : > { %v5105_v54 = vpop.xlane.xlu1 %5104 }
 0x4bb   : > { %v5146_v58 = vmul.f32 0.020408163, %v5105_v54  ;;  %v10471_v47 = vsub.f32 %v10356_v25, %v5144_v50  ;;  %v5175_v6 = vmul.f32 %v10477_v26, %v10477_v26 }
 0x4bc   : > { %v5102_v36 = vpop.xlane.xlu0 %5101 }
 0x4bd   : > { %v10474_v56 = vsub.f32 %v10353_v33, %v5146_v58  ;;  %v5145_v52 = vmul.f32 0.020408163, %v5102_v36  ;;  %v5176_v25 = vmul.f32 %v10471_v47, %v10471_v47  ;;  %v5191_v46 = vsel %vm5093_vm2, %v5175_v6, 0.0 }
 0x4bf   : > { %v10480_v19 = vsub.f32 %v10349_v11, %v5145_v52  ;;  %v5178_v3 = vmul.f32 %v10474_v56, %v10474_v56  ;;  %v5194_v40 = vsel %vm5093_vm2, %v5176_v25, 0.0 }
 0x4c0   : > { %v5108_v31 = vpop.xlane.xlu0 %5107  ;;  %v5111_v34 = vpop.xlane.xlu1 %5110 }
 0x4c1   : > { %v5147_v59 = vmul.f32 0.020408163, %v5108_v31  ;;  %v5148_v7 = vmul.f32 0.020408163, %v5111_v34  ;;  %v5200_v33 = vsel %vm5093_vm2, %v5178_v3, 0.0  ;;  %v5177_v9 = vmul.f32 %v10480_v19, %v10480_v19 }
 0x4c2   : > { %5201 = vadd.xlane.f32.xlu1 %v5200_v33 }
 0x4c3   : > { %v10490_v30 = vsub.f32 %v10365_v21, %v5147_v59  ;;  %v10493_v11 = vsub.f32 %v10370_v18, %v5148_v7  ;;  %v5197_v16 = vsel %vm5093_vm2, %v5177_v9, 0.0 }
 0x4c4   : > { %5198 = vadd.xlane.f32.xlu0 %v5197_v16  ;;  %v5114_v12 = vpop.xlane.xlu0 %5113  ;;  %v5117_v22 = vpop.xlane.xlu1 %5116 }
 0x4c5   : > { %v5149_v0 = vmul.f32 0.020408163, %v5114_v12  ;;  %v5150_v15 = vmul.f32 0.020408163, %v5117_v22  ;;  %v5180_v43 = vmul.f32 %v10493_v11, %v10493_v11  ;;  %v5179_v62 = vmul.f32 %v10490_v30, %v10490_v30 }
 0x4c6   : > { %5195 = vadd.xlane.f32.xlu1 %v5194_v40 }
 0x4c7   : > { %v10502_v21 = vsub.f32 %v10372_v53, %v5149_v0  ;;  %v10505_v18 = vsub.f32 %v10379_v8, %v5150_v15  ;;  %v5206_v42 = vsel %vm5093_vm2, %v5180_v43, 0.0  ;;  %v5203_v53 = vsel %vm5093_vm2, %v5179_v62, 0.0 }
 0x4c8   : > { %5192 = vadd.xlane.f32.xlu0 %v5191_v46 }
 0x4c9   : > { %v5120_v10 = vpop.xlane.xlu0 %5119  ;;  %v5182_v5 = vmul.f32 %v10505_v18, %v10505_v18  ;;  %v5181_v8 = vmul.f32 %v10502_v21, %v10502_v21 }
 0x4ca   : > { %v5151_v48 = vmul.f32 0.020408163, %v5120_v10  ;;  %5207 = vadd.xlane.f32.xlu1 %v5206_v42 }
 0x4cb   : > { %v5123_v45 = vpop.xlane.xlu1 %5122  ;;  %v5212_v35 = vsel %vm5093_vm2, %v5182_v5, 0.0  ;;  %v5209_v24 = vsel %vm5093_vm2, %v5181_v8, 0.0 }
 0x4cc   : > { %v10517_v2 = vsub.f32 %v10386_v63, %v5151_v48  ;;  %v5152_v27 = vmul.f32 0.020408163, %v5123_v45  ;;  %5204 = vadd.xlane.f32.xlu0 %v5203_v53 }
 0x4ce   : > { %v10521_v32 = vsub.f32 %v10389_v39, %v5152_v27  ;;  %5213 = vadd.xlane.f32.xlu1 %v5212_v35  ;;  %v5183_v29 = vmul.f32 %v10517_v2, %v10517_v2 }
 0x4d0   : > { %5210 = vadd.xlane.f32.xlu0 %v5209_v24  ;;  %v5184_v20 = vmul.f32 %v10521_v32, %v10521_v32  ;;  %v5215_v1 = vsel %vm5093_vm2, %v5183_v29, 0.0  ;;  %v5429_v24 = vld [vmem:[%s10453_s16 + $0x70] sm:$0xff] }
 0x4d1   : > { %v5126_v44 = vpop.xlane.xlu0 %5125 }
 0x4d2   : > { %v5218_v63 = vsel %vm5093_vm2, %v5184_v20, 0.0  ;;  %v5153_v13 = vmul.f32 0.020408163, %v5126_v44  ;;  %v5430_v44 = vld [vmem:[%s10453_s16 + $0x78] sm:$0xff] }
 0x4d3   : > { %5219 = vadd.xlane.f32.xlu1 %v5218_v63  ;;  %v5129_v28 = vpop.xlane.xlu1 %5128 }
 0x4d4   : > { %5216 = vadd.xlane.f32.xlu0 %v5215_v1  ;;  %v5154_v58 = vmul.f32 0.020408163, %v5129_v28  ;;  %v5169_v31 = vsub.f32 %v10409_v61, %v5153_v13 }
 0x4d5   : > { %v5132_v39 = vpop.xlane.xlu0 %5131 }
 0x4d6   : > { %v5155_v57 = vmul.f32 0.020408163, %v5132_v39  ;;  %v5185_v6 = vmul.f32 %v5169_v31, %v5169_v31 }
 0x4d7   : > { %v5135_v4 = vpop.xlane.xlu1 %5134 }
 0x4d8   : > { %v5156_v60 = vmul.f32 0.020408163, %v5135_v4  ;;  %v5171_v50 = vsub.f32 %v10399_v38, %v5155_v57  ;;  %v5221_v40 = vsel %vm5093_vm2, %v5185_v6, 0.0 }
 0x4d9   : > { %v5138_v55 = vpop.xlane.xlu0 %5137 }
 0x4da   : > { %v5157_v41 = vmul.f32 0.020408163, %v5138_v55  ;;  %v5172_v36 = vsub.f32 %v10406_v23, %v5156_v60  ;;  %v5187_v33 = vmul.f32 %v5171_v50, %v5171_v50 }
 0x4db   : > { %v5141_v49 = vpop.xlane.xlu1 %5140 }
 0x4dc   : > { %v5173_v54 = vsub.f32 %v10394_v51, %v5157_v41  ;;  %v5158_v37 = vmul.f32 0.020408163, %v5141_v49  ;;  %v5170_v51 = vsub.f32 %v10413_v17, %v5154_v58  ;;  %v5188_v23 = vmul.f32 %v5172_v36, %v5172_v36 }
 0x4de   : > { %v5174_v52 = vsub.f32 %v10403_v14, %v5158_v37  ;;  %v5189_v3 = vmul.f32 %v5173_v54, %v5173_v54  ;;  %v5230_v17 = vsel %vm5093_vm2, %v5188_v23, 0.0 }
 0x4df   : > { %v5311_v34 = vpop.permute.xlu1 %5310 }
 0x4e0   : > { %v10536_v25 = vmul.f32 %v5311_v34, %v10471_v47  ;;  %v5233_v59 = vsel %vm5093_vm2, %v5189_v3, 0.0  ;;  %v5190_v7 = vmul.f32 %v5174_v52, %v5174_v52  ;;  %v5227_v47 = vsel %vm5093_vm2, %v5187_v33, 0.0 }
 0x4e1   : > { %v5306_v38 = vpop.permute.xlu0 %5305  ;;  %5234 = vadd.xlane.f32.xlu0 %v5233_v59 }
 0x4e2   : > { %v10541_v9 = vmul.f32 %v5306_v38, %v10477_v26  ;;  %v5236_v14 = vsel %vm5093_vm2, %v5190_v7, 0.0  ;;  %v5186_v26 = vmul.f32 %v5170_v51, %v5170_v51 }
 0x4e3   : > { %5237 = vadd.xlane.f32.xlu1 %v5236_v14  ;;  %v5316_v61 = vpop.permute.xlu1 %5315 }
 0x4e4   : > { %v10545_v16 = vmul.f32 %v5316_v61, %v10480_v19  ;;  %v5224_v46 = vsel %vm5093_vm2, %v5186_v26, 0.0 }
 0x4e5   : > { %v5321_v12 = vpop.permute.xlu0 %5320  ;;  %5228 = vadd.xlane.f32.xlu0 %v5227_v47 }
 0x4e6   : > { %v10549_v22 = vmul.f32 %v5321_v12, %v10474_v56 }
 0x4e7   : > { %5231 = vadd.xlane.f32.xlu1 %v5230_v17  ;;  %v5326_v0 = vpop.permute.xlu1 %5325 }
 0x4e8   : > { %v10553_v15 = vmul.f32 %v5326_v0, %v10490_v30 }
 0x4e9   : > { %v5331_v19 = vpop.permute.xlu0 %5330  ;;  %5222 = vadd.xlane.f32.xlu0 %v5221_v40 }
 0x4ea   : > { %v10557_v43 = vmul.f32 %v5331_v19, %v10493_v11 }
 0x4eb   : > { %5225 = vadd.xlane.f32.xlu1 %v5224_v46  ;;  %v5336_v56 = vpop.permute.xlu1 %5335 }
 0x4ec   : > { %v10561_v62 = vmul.f32 %v5336_v56, %v10502_v21 }
 0x4ed   : > { %v5341_v10 = vpop.permute.xlu0 %5340 }
 0x4ee   : > { %v10564_v42 = vmul.f32 %v5341_v10, %v10505_v18 }
 0x4ef   : > { %v5346_v30 = vpop.permute.xlu1 %5345 }
 0x4f0   : > { %v10567_v5 = vmul.f32 %v5346_v30, %v10517_v2 }
 0x4f1   : > { %v5351_v48 = vpop.permute.xlu0 %5350 }
 0x4f2   : > { %v10570_v11 = vmul.f32 %v5351_v48, %v10521_v32 }
 0x4f3   : > { %v5356_v45 = vpop.permute.xlu1 %5355 }
 0x4f4   : > { %v10572_v53 = vmul.f32 %v5356_v45, %v5169_v31 }
 0x4f5   : > { %v5361_v8 = vpop.permute.xlu0 %5360 }
 0x4f6   : > { %v10574_v27 = vmul.f32 %v5361_v8, %v5170_v51 }
 0x4f7   : > { %v5366_v21 = vpop.permute.xlu1 %5365 }
 0x4f8   : > { %v10576_v35 = vmul.f32 %v5366_v21, %v5171_v50 }
 0x4f9   : > { %v5371_v18 = vpop.permute.xlu0 %5370 }
 0x4fa   : > { %v10579_v29 = vmul.f32 %v5371_v18, %v5172_v36 }
 0x4fb   : > { %v5376_v20 = vpop.permute.xlu1 %5375 }
 0x4fc   : > { %v10581_v2 = vmul.f32 %v5376_v20, %v5173_v54  ;;  %5503 = vperm.xlu1 %6705, %v5429_v24  }
 0x4fd   : > { %v5381_v32 = vpop.permute.xlu0 %5380 }
 0x4fe   : > { %v10584_v63 = vmul.f32 %v5381_v32, %v5174_v52 }
 0x4ff   : > { %5508 = vperm.xlu0 %6704, %v5430_v44   ;;  %v10586_v28 = vpop.permute.xlu1 %5433 }
 0x501   : > { %v10588_v1 = vpop.permute.xlu0 %5438 }
 0x503   : > { %v5444_v39 = vpop.permute.xlu1 %5443 }
 0x505   : > { %v5449_v4 = vpop.permute.xlu0 %5448 }
 0x507   : > { %v10590_v57 = vpop.permute.xlu1 %5453 }
 0x509   : > { %v10592_v55 = vpop.permute.xlu0 %5458 }
 0x50b   : > { %v10594_v60 = vpop.permute.xlu1 %5463 }
 0x50d   : > { %v10596_v41 = vpop.permute.xlu0 %5468 }
 0x50f   : > { %v10598_v13 = vpop.permute.xlu1 %5473 }
 0x511   : > { %v10600_v49 = vpop.permute.xlu0 %5478 }
 0x513   : > { %v10602_v50 = vpop.permute.xlu1 %5483 }
 0x515   : > { %v10604_v54 = vpop.permute.xlu0 %5488 }
 0x517   : > { %v10606_v37 = vpop.permute.xlu1 %5493 }
 0x519   : > { %v10608_v58 = vpop.permute.xlu0 %5498 }
 0x54f   : > { %v5202_v36 = vpop.xlane.xlu1 %5201 }
 0x550   : > { %v5242_v52 = vmul.f32 0.020408163, %v5202_v36 }
 0x551   : > { %v5199_v3 = vpop.xlane.xlu0 %5198 }
 0x552   : > { %v5258_v31 = vadd.f32 0.001, %v5242_v52  ;;  %v5241_v34 = vmul.f32 0.020408163, %v5199_v3 }
 0x553   : > { %v5196_v59 = vpop.xlane.xlu1 %5195 }
 0x554   : > { %7506 = vrsqrt.f32 %v5258_v31  ;;  %v5257_v7 = vadd.f32 0.001, %v5241_v34  ;;  %v5240_v33 = vmul.f32 0.020408163, %v5196_v59 }
 0x555   : > { %v5193_v38 = vpop.xlane.xlu0 %5192 }
 0x556   : > { %7508 = vrsqrt.f32 %v5257_v7  ;;  %v5256_v51 = vadd.f32 0.001, %v5240_v33  ;;  %v5239_v14 = vmul.f32 0.020408163, %v5193_v38 }
 0x557   : > { %v5208_v23 = vpop.xlane.xlu1 %5207 }
 0x558   : > { %7510 = vrsqrt.f32 %v5256_v51  ;;  %v5255_v61 = vadd.f32 0.001, %v5239_v14  ;;  %v5244_v47 = vmul.f32 0.020408163, %v5208_v23 }
 0x559   : > { %v5205_v6 = vpop.xlane.xlu0 %5204 }
 0x55a   : > { %7512 = vrsqrt.f32 %v5255_v61  ;;  %v5260_v12 = vadd.f32 0.001, %v5244_v47  ;;  %v5243_v17 = vmul.f32 0.020408163, %v5205_v6 }
 0x55b   : > { %v5214_v26 = vpop.xlane.xlu1 %5213 }
 0x55c   : > { %7514 = vrsqrt.f32 %v5260_v12  ;;  %v5259_v0 = vadd.f32 0.001, %v5243_v17  ;;  %v5246_v40 = vmul.f32 0.020408163, %v5214_v26 }
 0x55d   : > { %v5211_v19 = vpop.xlane.xlu0 %5210 }
 0x55e   : > { %v7507_v46 = vpop.eup %7506  ;;  %7516 = vrsqrt.f32 %v5259_v0  ;;  %v5262_v56 = vadd.f32 0.001, %v5246_v40  ;;  %v5245_v10 = vmul.f32 0.020408163, %v5211_v19 }
 0x55f   : > { %v5402_v30 = vmul.f32 %v7507_v46, %v10549_v22 }
 0x560   : > { %v7509_v48 = vpop.eup %7508  ;;  %7518 = vrsqrt.f32 %v5262_v56  ;;  %v5261_v45 = vadd.f32 0.001, %v5245_v10  ;;  %v5220_v8 = vpop.xlane.xlu1 %5219 }
 0x561   : > { %v5514_v21 = vadd.f32 %v5449_v4, %v5402_v30  ;;  %v5401_v18 = vmul.f32 %v7509_v48, %v10545_v16  ;;  %v5248_v24 = vmul.f32 0.020408163, %v5220_v8  ;;  %v5217_v20 = vpop.xlane.xlu0 %5216 }
 0x562   : > { %v7511_v44 = vpop.eup %7510  ;;  %7520 = vrsqrt.f32 %v5261_v45  ;;  %v5247_v22 = vmul.f32 0.020408163, %v5217_v20 }
 0x563   : > { %5530 = vst.msk [vmem:[%s10615_s19 + $0x18] sm:$0xff] %vm5093_vm2, %v5514_v21  ;;  %v5513_v32 = vadd.f32 %v5444_v39, %v5401_v18  ;;  %v5400_v36 = vmul.f32 %v7511_v44, %v10536_v25  ;;  %v5264_v52 = vadd.f32 0.001, %v5248_v24 }
 0x564   : > { %v7513_v3 = vpop.eup %7512  ;;  %v5263_v31 = vadd.f32 0.001, %v5247_v22 }
 0x565   : > { %5529 = vst.msk [vmem:[%s10615_s19 + $0x10] sm:$0xff] %vm5093_vm2, %v5513_v32  ;;  %v5512_v16 = vadd.f32 %v10588_v1, %v5400_v36  ;;  %v5399_v4 = vmul.f32 %v7513_v3, %v10541_v9  ;;  %7522 = vrsqrt.f32 %v5264_v52 }
 0x566   : > { %v7515_v34 = vpop.eup %7514  ;;  %7524 = vrsqrt.f32 %v5263_v31 }
 0x567   : > { %5528 = vst.msk [vmem:[%s10615_s19 + $0x8] sm:$0xff] %vm5093_vm2, %v5512_v16  ;;  %v5511_v39 = vadd.f32 %v10586_v28, %v5399_v4  ;;  %v5404_v25 = vmul.f32 %v7515_v34, %v10557_v43 }
 0x568   : > { %v7517_v59 = vpop.eup %7516 }
 0x569   : > { %5527 = vst.msk [vmem:[%s10615_s19] sm:$0xff] %vm5093_vm2, %v5511_v39  ;;  %v5516_v7 = vadd.f32 %v10592_v55, %v5404_v25  ;;  %v5403_v1 = vmul.f32 %v7517_v59, %v10553_v15 }
 0x56a   : > { %v7519_v33 = vpop.eup %7518 }
 0x56b   : > { %5532 = vst.msk [vmem:[%s10615_s19 + $0x28] sm:$0xff] %vm5093_vm2, %v5516_v7  ;;  %v5515_v9 = vadd.f32 %v10590_v57, %v5403_v1  ;;  %v5406_v38 = vmul.f32 %v7519_v33, %v10564_v42 }
 0x56c   : > { %v7521_v51 = vpop.eup %7520 }
 0x56d   : > { %5531 = vst.msk [vmem:[%s10615_s19 + $0x20] sm:$0xff] %vm5093_vm2, %v5515_v9  ;;  %v5518_v43 = vadd.f32 %v10596_v41, %v5406_v38  ;;  %v5405_v28 = vmul.f32 %v7521_v51, %v10561_v62 }
 0x56e   : > { %v5235_v14 = vpop.xlane.xlu0 %5234 }
 0x56f   : > { %v7523_v23 = vpop.eup %7522  ;;  %5534 = vst.msk [vmem:[%s10615_s19 + $0x38] sm:$0xff] %vm5093_vm2, %v5518_v43  ;;  %v5517_v15 = vadd.f32 %v10594_v60, %v5405_v28  ;;  %v5253_v55 = vmul.f32 0.020408163, %v5235_v14 }
 0x570   : > { %v7525_v61 = vpop.eup %7524  ;;  %v5408_v57 = vmul.f32 %v7523_v23, %v10570_v11  ;;  %v5238_v42 = vpop.xlane.xlu1 %5237 }
 0x571   : > { %5533 = vst.msk [vmem:[%s10615_s19 + $0x30] sm:$0xff] %vm5093_vm2, %v5517_v15  ;;  %v5407_v47 = vmul.f32 %v7525_v61, %v10567_v5  ;;  %v5269_v41 = vadd.f32 0.001, %v5253_v55  ;;  %v5254_v6 = vmul.f32 0.020408163, %v5238_v42 }
 0x572   : > { %v5520_v62 = vadd.f32 %v10600_v49, %v5408_v57  ;;  %v5229_v12 = vpop.xlane.xlu0 %5228 }
 0x573   : > { %v5519_v17 = vadd.f32 %v10598_v13, %v5407_v47  ;;  %7526 = vrsqrt.f32 %v5269_v41  ;;  %v5270_v26 = vadd.f32 0.001, %v5254_v6  ;;  %v5251_v60 = vmul.f32 0.020408163, %v5229_v12 }
 0x574   : > { %5536 = vst.msk [vmem:[%s10615_s19 + $0x48] sm:$0xff] %vm5093_vm2, %v5520_v62  ;;  %v5232_v0 = vpop.xlane.xlu1 %5231 }
 0x575   : > { %5535 = vst.msk [vmem:[%s10615_s19 + $0x40] sm:$0xff] %vm5093_vm2, %v5519_v17  ;;  %7528 = vrsqrt.f32 %v5270_v26  ;;  %v5267_v11 = vadd.f32 0.001, %v5251_v60  ;;  %v5252_v40 = vmul.f32 0.020408163, %v5232_v0 }
 0x576   : > { %v5223_v19 = vpop.xlane.xlu0 %5222 }
 0x577   : > { %7530 = vrsqrt.f32 %v5267_v11  ;;  %v5268_v5 = vadd.f32 0.001, %v5252_v40  ;;  %v5249_v46 = vmul.f32 0.020408163, %v5223_v19 }
 0x578   : > { %v5226_v56 = vpop.xlane.xlu1 %5225 }
 0x579   : > { %7532 = vrsqrt.f32 %v5268_v5  ;;  %v5265_v49 = vadd.f32 0.001, %v5249_v46  ;;  %v5250_v13 = vmul.f32 0.020408163, %v5226_v56 }
 0x57b   : > { %7534 = vrsqrt.f32 %v5265_v49  ;;  %v5266_v10 = vadd.f32 0.001, %v5250_v13 }
 0x57c   : > { %v5504_v8 = vpop.permute.xlu1 %5503 }
 0x57d   : > { %v7527_v30 = vpop.eup %7526  ;;  %7536 = vrsqrt.f32 %v5266_v10 }
 0x57e   : > { %v5413_v48 = vmul.f32 %v7527_v30, %v10581_v2  ;;  %v5509_v20 = vpop.permute.xlu0 %5508 }
 0x57f   : > { %v7529_v45 = vpop.eup %7528 }
 0x580   : > { %v5525_v21 = vadd.f32 %v5504_v8, %v5413_v48  ;;  %v5414_v18 = vmul.f32 %v7529_v45, %v10584_v63 }
 0x581   : > { %v7531_v24 = vpop.eup %7530 }
 0x582   : > { %v5411_v44 = vmul.f32 %v7531_v24, %v10576_v35  ;;  %5541 = vst.msk [vmem:[%s10615_s19 + $0x70] sm:$0xff] %vm5093_vm2, %v5525_v21  ;;  %v5526_v22 = vadd.f32 %v5509_v20, %v5414_v18 }
 0x583   : > { %v7533_v32 = vpop.eup %7532 }
 0x584   : > { %v5523_v36 = vadd.f32 %v10606_v37, %v5411_v44  ;;  %v5412_v2 = vmul.f32 %v7533_v32, %v10579_v29  ;;  %5542 = vst.msk [vmem:[%s10615_s19 + $0x78] sm:$0xff] %vm5093_vm2, %v5526_v22 }
 0x585   : > { %v7535_v52 = vpop.eup %7534 }
 0x586   : > { %5539 = vst.msk [vmem:[%s10615_s19 + $0x60] sm:$0xff] %vm5093_vm2, %v5523_v36  ;;  %v5524_v63 = vadd.f32 %v10608_v58, %v5412_v2  ;;  %v5409_v3 = vmul.f32 %v7535_v52, %v10572_v53 }
 0x587   : > { %v7537_v31 = vpop.eup %7536 }
 0x588   : > { %5540 = vst.msk [vmem:[%s10615_s19 + $0x68] sm:$0xff] %vm5093_vm2, %v5524_v63  ;;  %v5521_v35 = vadd.f32 %v10602_v50, %v5409_v3  ;;  %v5410_v16 = vmul.f32 %v7537_v31, %v10574_v27 }
 0x58a   : > { %5537 = vst.msk [vmem:[%s10615_s19 + $0x50] sm:$0xff] %vm5093_vm2, %v5521_v35  ;;  %v5522_v29 = vadd.f32 %v10604_v54, %v5410_v16 }
 0x58c   : > { %5538 = vst.msk [vmem:[%s10615_s19 + $0x58] sm:$0xff] %vm5093_vm2, %v5522_v29 }
 0x58d PF: > { %s17_s24 = sadd.s32 1, %s7545_s24  }
 0x58e   : > { %p14_p4 = scmp.ge.s32.totalorder %s17_s24, 5  }
 0x590   :  { %16 = sbr.rel (!%p14_p4) target bundleno = 1 (0x1), region = 84 }

</bundles_post_ra>
